<compile_context>
chip_gen: v7x
topology: tpu7x:2x2x1
jax: 0.10.0
libtpu: 0.0.40
codegen_flags: <defaults>
</compile_context>

<pallas_src>
import functools

import jax
import jax.numpy as jnp
from jax import lax
from jax.experimental import pallas as pl
from jax.experimental.pallas import tpu as pltpu


def _round_up(x, m):
    return ((x + m - 1) // m) * m


# ----------------------------------------------------------------------------
# Fused matmul + bias Pallas kernel (bf16 operands, f32 accumulate, lane-dense N)
# used for the hoisted encoder/decoder input-side projections.
# ----------------------------------------------------------------------------
def _matmul_bias_kernel(a_ref, b_ref, bias_ref, o_ref):
    acc = jnp.dot(a_ref[...], b_ref[...], preferred_element_type=jnp.float32)
    o_ref[...] = (acc + bias_ref[...]).astype(o_ref.dtype)


def pallas_matmul_bias(a, b, bias):
    M, K = a.shape
    K2, N = b.shape
    assert K == K2
    Np = _round_up(max(N, 128), 128)
    if Np != N:
        b = jnp.pad(b, ((0, 0), (0, Np - N)))
        bias = jnp.pad(bias, (0, Np - N))
    a16 = a.astype(jnp.bfloat16)
    b16 = b.astype(jnp.bfloat16)
    bias2 = bias.reshape(1, Np).astype(jnp.float32)

    tm = M
    for cand in (512, 256, 128, 64, 32, 16, 8):
        if M % cand == 0:
            tm = cand
            break

    out = pl.pallas_call(
        _matmul_bias_kernel,
        out_shape=jax.ShapeDtypeStruct((M, Np), jnp.float32),
        grid=(M // tm,),
        in_specs=[
            pl.BlockSpec((tm, K), lambda i: (i, 0)),
            pl.BlockSpec((K, Np), lambda i: (0, 0)),
            pl.BlockSpec((1, Np), lambda i: (0, 0)),
        ],
        out_specs=pl.BlockSpec((tm, Np), lambda i: (i, 0)),
        compiler_params=pltpu.CompilerParams(dimension_semantics=("parallel",)),
    )(a16, b16, bias2)
    return out[:, :N] if Np != N else out


# ----------------------------------------------------------------------------
# Conv 3x3 (pad=1, stride=1), no im2col: the padded image is flattened row-major
# (padded width Wp) in the wrapper and the kernel accumulates the 9 taps as 9 dots
# against statically shifted windows of that flat buffer.  Output channels are
# padded to a multiple of 128 (lane-dense stores) and sliced off in the wrapper.
# weight layout: [9, Cin, Cout] in (di, dj) tap order.
# ----------------------------------------------------------------------------
def _conv3x3_flat_kernel(x_ref, w_ref, b_ref, o_ref, *, taps, tm, relu):
    # x_ref: (1, L, Cin) bf16 ; w_ref: (9, Cin, Coutp) bf16 ; b_ref: (1, Coutp) f32
    # o_ref: (1, Mp, Coutp) f32
    m_pad = o_ref.shape[1]
    coutp = o_ref.shape[2]
    for r0 in range(0, m_pad, tm):
        acc = jnp.zeros((tm, coutp), jnp.float32)
        for k, sh in enumerate(taps):
            lhs = x_ref[0, r0 + sh:r0 + sh + tm, :]
            acc = acc + jnp.dot(lhs, w_ref[k], preferred_element_type=jnp.float32)
        acc = acc + b_ref[...]
        if relu:
            acc = jnp.maximum(acc, 0.0)
        o_ref[0, r0:r0 + tm, :] = acc


def conv3x3(x_nhwc, w9, bias, relu=True, tm=64):
    B, H, W, Cin = x_nhwc.shape
    Cout = w9.shape[-1]
    Coutp = _round_up(max(Cout, 128), 128)
    Wp, Hp = W + 2, H + 2
    M = H * Wp                      # outputs are computed on the padded-width grid
    Mp = _round_up(M, tm)
    L = Mp + 2 * Wp + 2             # flat-input length so every tap read is in-bounds

    xp = jnp.pad(x_nhwc, ((0, 0), (1, 1), (1, 1), (0, 0)))
    x_flat = xp.reshape(B, Hp * Wp, Cin)
    x_flat = jnp.pad(x_flat, ((0, 0), (0, L - Hp * Wp), (0, 0))).astype(jnp.bfloat16)

    w = jnp.pad(w9, ((0, 0), (0, 0), (0, Coutp - Cout))).astype(jnp.bfloat16)
    b = jnp.pad(bias, (0, Coutp - Cout)).reshape(1, Coutp).astype(jnp.float32)
    taps = tuple(di * Wp + dj for di in range(3) for dj in range(3))

    out_flat = pl.pallas_call(
        functools.partial(_conv3x3_flat_kernel, taps=taps, tm=tm, relu=relu),
        out_shape=jax.ShapeDtypeStruct((B, Mp, Coutp), jnp.float32),
        grid=(B,),
        in_specs=[
            pl.BlockSpec((1, L, Cin), lambda i: (i, 0, 0)),
            pl.BlockSpec((9, Cin, Coutp), lambda i: (0, 0, 0)),
            pl.BlockSpec((1, Coutp), lambda i: (0, 0)),
        ],
        out_specs=pl.BlockSpec((1, Mp, Coutp), lambda i: (i, 0, 0)),
        compiler_params=pltpu.CompilerParams(dimension_semantics=("parallel",)),
    )(x_flat, w, b)

    out = out_flat[:, :H * Wp, :].reshape(B, H, Wp, Coutp)[:, :, :W, :Cout]
    return out


def maxpool2(x):
    B, H, W, C = x.shape
    return x.reshape(B, H // 2, 2, W // 2, 2, C).max(axis=(2, 4))


# ----------------------------------------------------------------------------
# Shared LSTM gate nonlinearity (f32 state).
# ----------------------------------------------------------------------------
def _lstm_gates(g, c, H):
    i = jax.nn.sigmoid(g[:, 0:H])
    f = jax.nn.sigmoid(g[:, H:2 * H])
    gg = jnp.tanh(g[:, 2 * H:3 * H])
    o = jax.nn.sigmoid(g[:, 3 * H:4 * H])
    c_new = f * c + i * gg
    return o * jnp.tanh(c_new), c_new


# ----------------------------------------------------------------------------
# Encoder: vertical max-pool (precomputed in the wrapper) + 2-layer LSTM over width.
# Layer-1 input projection is hoisted into one big matmul (xg1); the per-step loop
# only does the h-dependent work (layer-2 dots are fused via a stacked weight).
# One grid point per batch element ("parallel" for the 2nd TC on v7x).
# ----------------------------------------------------------------------------
def _encoder_kernel(xg1_ref, wh1_ref, w2s_ref, b2_ref, hw_ref, h1, c1, h2, c2):
    T = xg1_ref.shape[1]
    H = wh1_ref.shape[0]
    G = 4 * H
    h1[...] = jnp.zeros_like(h1)
    c1[...] = jnp.zeros_like(c1)
    h2[...] = jnp.zeros_like(h2)
    c2[...] = jnp.zeros_like(c2)

    def step(t, carry):
        xg = xg1_ref[:, pl.ds(t, 1), :].reshape(1, G)
        g1 = xg + jnp.dot(h1[...].astype(jnp.bfloat16), wh1_ref[...],
                          preferred_element_type=jnp.float32)
        hn1, cn1 = _lstm_gates(g1, c1[...], H)
        h1[...] = hn1
        c1[...] = cn1
        hc = jnp.concatenate([hn1, h2[...]], axis=-1).astype(jnp.bfloat16)
        g2 = jnp.dot(hc, w2s_ref[...], preferred_element_type=jnp.float32) + b2_ref[...]
        hn2, cn2 = _lstm_gates(g2, c2[...], H)
        h2[...] = hn2
        c2[...] = cn2
        return carry

    lax.fori_loop(0, T, step, 0)
    hw_ref[...] = h2[...].reshape(1, 1, H)


def encoder_forward(V_nhwc, params):
    B, Hf, Wf, C = V_nhwc.shape
    H = params["enc_wh1"].shape[0]
    T = Wf
    G = 4 * H

    x_seq = jnp.max(V_nhwc, axis=1)                           # [B, Wf, C] vertical max-pool
    xg1 = pallas_matmul_bias(x_seq.reshape(B * T, C),
                             params["enc_wx1"], params["enc_b1"]).reshape(B, T, G)

    wh1 = params["enc_wh1"].astype(jnp.bfloat16)
    w2s = jnp.concatenate([params["enc_wx2"], params["enc_wh2"]],
                          axis=0).astype(jnp.bfloat16)
    b2 = params["enc_b2"].reshape(1, G).astype(jnp.float32)

    hw = pl.pallas_call(
        _encoder_kernel,
        out_shape=jax.ShapeDtypeStruct((B, 1, H), jnp.float32),
        grid=(B,),
        in_specs=[
            pl.BlockSpec((1, T, G), lambda b: (b, 0, 0)),
            pl.BlockSpec((H, G), lambda b: (0, 0)),
            pl.BlockSpec((2 * H, G), lambda b: (0, 0)),
            pl.BlockSpec((1, G), lambda b: (0, 0)),
        ],
        out_specs=pl.BlockSpec((1, 1, H), lambda b: (b, 0, 0)),
        scratch_shapes=[pltpu.VMEM((1, H), jnp.float32)] * 4,
        compiler_params=pltpu.CompilerParams(dimension_semantics=("parallel",)),
    )(xg1, wh1, w2s, b2)
    return hw.reshape(B, H)


# ----------------------------------------------------------------------------
# Decoder: 2-layer LSTM + 2-D attention + output projection, teacher forcing.
# Layer-1 input projections (hw for t=0, embed(y[t-1]) for t>0) are precomputed as
# one big matmul (the embedding is folded into wx1).  Attention P and output OC are
# padded to 128 for lane-dense stores; padded P positions are masked in the softmax.
# One grid point per batch element.
# ----------------------------------------------------------------------------
def _decoder_kernel(xg1_ref, wh1_ref, w2s_ref, b2_ref,
                    wq_ref, bq_ref, we_ref, be_ref,
                    wout_ref, bo_ref, v_ref, vatt_ref,
                    out_ref, attn_ref,
                    h1, c1, h2, c2, *, p_valid):
    T = xg1_ref.shape[1]
    H = wh1_ref.shape[0]
    G = 4 * H
    P_pad = v_ref.shape[1]
    OCp = out_ref.shape[2]

    h1[...] = jnp.zeros_like(h1)
    c1[...] = jnp.zeros_like(c1)
    h2[...] = jnp.zeros_like(h2)
    c2[...] = jnp.zeros_like(c2)

    # additive mask killing padded attention positions (hoisted out of the loop)
    pos = lax.broadcasted_iota(jnp.int32, (1, P_pad), 1)
    neg_mask = jnp.where(pos < p_valid, 0.0, -1e30).astype(jnp.float32)

    def step(t, carry):
        xg = xg1_ref[:, pl.ds(t, 1), :].reshape(1, G)
        g1 = xg + jnp.dot(h1[...].astype(jnp.bfloat16), wh1_ref[...],
                          preferred_element_type=jnp.float32)
        hn1, cn1 = _lstm_gates(g1, c1[...], H)
        h1[...] = hn1
        c1[...] = cn1
        hc = jnp.concatenate([hn1, h2[...]], axis=-1).astype(jnp.bfloat16)
        g2 = jnp.dot(hc, w2s_ref[...], preferred_element_type=jnp.float32) + b2_ref[...]
        hn2, cn2 = _lstm_gates(g2, c2[...], H)
        h2[...] = hn2
        c2[...] = cn2

        # 2-D attention over the (flattened, P-padded) backbone feature map
        q = jnp.dot(hn2.astype(jnp.bfloat16), wq_ref[...],
                    preferred_element_type=jnp.float32) + bq_ref[...]          # [1, A]
        e = jnp.tanh(vatt_ref[...] + q[:, None, :])                            # [1, Pp, A]
        score = (jnp.sum(e * we_ref[...][None, :, :], axis=-1)
                 + be_ref[...] + neg_mask)                                     # [1, Pp]
        score = score - jnp.max(score, axis=-1, keepdims=True)
        ex = jnp.exp(score)
        alpha = ex * pl.reciprocal(jnp.sum(ex, axis=-1, keepdims=True), approx=True)
        glimpse = jnp.dot(alpha.astype(jnp.bfloat16), v_ref[0],
                          preferred_element_type=jnp.float32)                  # [1, C]

        hg = jnp.concatenate([hn2, glimpse], axis=-1).astype(jnp.bfloat16)     # [1, H+C]
        logits = (jnp.dot(hg, wout_ref[...], preferred_element_type=jnp.float32)
                  + bo_ref[...])                                               # [1, OCp]

        out_ref[:, pl.ds(t, 1), :] = logits.reshape(1, 1, OCp)
        attn_ref[:, pl.ds(t, 1), :] = alpha.reshape(1, 1, P_pad)
        return carry

    lax.fori_loop(0, T, step, 0)


def decoder_forward(hw, y_onehot, V_nhwc, vatt_nhwc, params):
    B, Hf, Wf, C = V_nhwc.shape
    H = hw.shape[1]
    G = 4 * H
    T = y_onehot.shape[1]
    OC = y_onehot.shape[2]
    A = params["att_wq"].shape[1]
    P = Hf * Wf
    Pp = _round_up(max(P, 128), 128)
    OCp = _round_up(max(OC, 128), 128)

    # hoisted layer-1 input projections (teacher forcing => fully known ahead of time)
    xg0 = pallas_matmul_bias(hw, params["dec_wx1"], params["dec_b1"])          # [B, G]
    if T > 1:
        w_combo = jnp.dot(params["emb_w"], params["dec_wx1"])                  # embed . wx1
        b_combo = jnp.dot(params["emb_b"], params["dec_wx1"]) + params["dec_b1"]
        y_prev = y_onehot[:, :T - 1, :].reshape(B * (T - 1), OC).astype(jnp.float32)
        xg_rest = pallas_matmul_bias(y_prev, w_combo, b_combo).reshape(B, T - 1, G)
        xg1 = jnp.concatenate([xg0[:, None, :], xg_rest], axis=1)              # [B, T, G]
    else:
        xg1 = xg0[:, None, :]

    wh1 = params["dec_wh1"].astype(jnp.bfloat16)
    w2s = jnp.concatenate([params["dec_wx2"], params["dec_wh2"]],
                          axis=0).astype(jnp.bfloat16)
    b2 = params["dec_b2"].reshape(1, G).astype(jnp.float32)
    wq = params["att_wq"].astype(jnp.bfloat16)
    bq = params["att_bq"].reshape(1, A).astype(jnp.float32)
    we = params["att_we"].reshape(1, A).astype(jnp.float32)
    be = params["att_be"].reshape(1, 1).astype(jnp.float32)
    wout = jnp.concatenate([params["out_wh"], params["out_wg"]], axis=0)       # [H+C, OC]
    wout = jnp.pad(wout, ((0, 0), (0, OCp - OC))).astype(jnp.bfloat16)
    bo = jnp.pad(params["out_b"], (0, OCp - OC)).reshape(1, OCp).astype(jnp.float32)
    v_p = jnp.pad(V_nhwc.reshape(B, P, C),
                  ((0, 0), (0, Pp - P), (0, 0))).astype(jnp.bfloat16)
    vatt_p = jnp.pad(vatt_nhwc.reshape(B, P, A),
                     ((0, 0), (0, Pp - P), (0, 0))).astype(jnp.float32)

    out_p, attn_p = pl.pallas_call(
        functools.partial(_decoder_kernel, p_valid=P),
        out_shape=(jax.ShapeDtypeStruct((B, T, OCp), jnp.float32),
                   jax.ShapeDtypeStruct((B, T, Pp), jnp.float32)),
        grid=(B,),
        in_specs=[
            pl.BlockSpec((1, T, G), lambda b: (b, 0, 0)),
            pl.BlockSpec((H, G), lambda b: (0, 0)),
            pl.BlockSpec((2 * H, G), lambda b: (0, 0)),
            pl.BlockSpec((1, G), lambda b: (0, 0)),
            pl.BlockSpec((H, A), lambda b: (0, 0)),
            pl.BlockSpec((1, A), lambda b: (0, 0)),
            pl.BlockSpec((1, A), lambda b: (0, 0)),
            pl.BlockSpec((1, 1), lambda b: (0, 0)),
            pl.BlockSpec((H + C, OCp), lambda b: (0, 0)),
            pl.BlockSpec((1, OCp), lambda b: (0, 0)),
            pl.BlockSpec((1, Pp, C), lambda b: (b, 0, 0)),
            pl.BlockSpec((1, Pp, A), lambda b: (b, 0, 0)),
        ],
        out_specs=(pl.BlockSpec((1, T, OCp), lambda b: (b, 0, 0)),
                   pl.BlockSpec((1, T, Pp), lambda b: (b, 0, 0))),
        scratch_shapes=[pltpu.VMEM((1, H), jnp.float32)] * 4,
        compiler_params=pltpu.CompilerParams(dimension_semantics=("parallel",)),
    )(xg1, wh1, w2s, b2, wq, bq, we, be, wout, bo, v_p, vatt_p)

    outputs = out_p[:, :, :OC]
    attn = attn_p[:, :, :P].reshape(B, T, 1, Hf, Wf)
    return outputs, attn


# ----------------------------------------------------------------------------
# Parameter init (deterministic, in-script) + end-to-end forward.
# ----------------------------------------------------------------------------
def init_sar_params(key, channel, hidden_units, output_classes,
                    feat_channels=512, attention_dim=None):
    H = hidden_units
    A = attention_dim if attention_dim is not None else hidden_units
    OC = output_classes
    C = feat_channels

    keys = iter(jax.random.split(key, 32))

    def nrm(shape, scale=0.05):
        return scale * jax.random.normal(next(keys), shape, dtype=jnp.float32)

    p = {}
    # backbone (simplified SAR CNN): conv3x3(channel->64)+relu+pool, conv3x3(64->512)+relu+pool
    # TODO(synk): original SAR backbone is a deeper ResNet; its source was not provided.
    p["bb_w1"] = nrm((9, channel, 64))
    p["bb_b1"] = jnp.zeros((64,), jnp.float32)
    p["bb_w2"] = nrm((9, 64, C))
    p["bb_b2"] = jnp.zeros((C,), jnp.float32)
    # encoder 2-layer LSTM
    p["enc_wx1"] = nrm((C, 4 * H)); p["enc_wh1"] = nrm((H, 4 * H))
    p["enc_b1"] = jnp.zeros((4 * H,), jnp.float32)
    p["enc_wx2"] = nrm((H, 4 * H)); p["enc_wh2"] = nrm((H, 4 * H))
    p["enc_b2"] = jnp.zeros((4 * H,), jnp.float32)
    # decoder 2-layer LSTM
    p["dec_wx1"] = nrm((H, 4 * H)); p["dec_wh1"] = nrm((H, 4 * H))
    p["dec_b1"] = jnp.zeros((4 * H,), jnp.float32)
    p["dec_wx2"] = nrm((H, 4 * H)); p["dec_wh2"] = nrm((H, 4 * H))
    p["dec_b2"] = jnp.zeros((4 * H,), jnp.float32)
    # 2-D attention: conv3x3 on V (C->A), linear on hidden (H->A), 1x1 score (A->1)
    p["att_wv"] = nrm((9, C, A)); p["att_bv"] = jnp.zeros((A,), jnp.float32)
    p["att_wq"] = nrm((H, A));    p["att_bq"] = jnp.zeros((A,), jnp.float32)
    p["att_we"] = nrm((A,));      p["att_be"] = jnp.zeros((1,), jnp.float32)
    # output projection concat(h, glimpse) -> OC, stored as two stacked pieces
    p["out_wh"] = nrm((H, OC)); p["out_wg"] = nrm((C, OC))
    p["out_b"] = jnp.zeros((OC,), jnp.float32)
    # embedding of one-hot previous char -> H
    p["emb_w"] = nrm((OC, H)); p["emb_b"] = jnp.zeros((H,), jnp.float32)
    return p


def sar_forward(params, x_nchw, y_onehot):
    # ---- backbone -> V ----
    x = jnp.transpose(x_nchw, (0, 2, 3, 1)).astype(jnp.float32)     # NCHW -> NHWC
    f1 = conv3x3(x, params["bb_w1"], params["bb_b1"], relu=True)
    f1 = maxpool2(f1)
    f2 = conv3x3(f1, params["bb_w2"], params["bb_b2"], relu=True)
    V = maxpool2(f2)                                                # [B, Hf, Wf, 512]

    # ---- encoder -> holistic feature hw ----
    hw = encoder_forward(V, params)                                 # [B, H]

    # ---- attention key map (step-independent 3x3 conv on V) ----
    vatt = conv3x3(V, params["att_wv"], params["att_bv"], relu=False)   # [B, Hf, Wf, A]

    # ---- decoder ----
    outputs, attention_weights = decoder_forward(hw, y_onehot, V, vatt, params)

    V_nchw = jnp.transpose(V, (0, 3, 1, 2))                         # back to NCHW

    # TODO(synk): RadicalBranch source not provided; only the
    # length_radical=None / radical_input=None path is exercised -> radical_outputs=None.
    radical_outputs = None
    return outputs, attention_weights, V_nchw, hw, radical_outputs


if __name__ == "__main__":
    key = jax.random.PRNGKey(0)
    k_param, k_x, k_y = jax.random.split(key, 3)

    batch, channel = 2, 4
    img_h, img_w = 16, 32          # backbone downsamples x4 -> feature map 4 x 8
    hidden_units = 32
    output_classes = 16
    seq_len = 8

    params = init_sar_params(k_param, channel, hidden_units, output_classes)

    x = jax.random.normal(k_x, (batch, channel, img_h, img_w), dtype=jnp.float32)
    labels = jax.random.randint(k_y, (batch, seq_len), 0, output_classes)
    y = jax.nn.one_hot(labels, output_classes, dtype=jnp.float32)

    outputs, attn, V, hw, radical = sar_forward(params, x, y)
    jax.block_until_ready((outputs, attn, V, hw))

    assert outputs.shape == (batch, seq_len, output_classes)
    assert attn.shape == (batch, seq_len, 1, img_h // 4, img_w // 4)
    assert V.shape == (batch, 512, img_h // 4, img_w // 4)
    assert hw.shape == (batch, hidden_units)
    assert radical is None

    print("KERNEL_OK")
</pallas_src>

<mosaic_0001>
module attributes {stable_mosaic.version = 11 : i64} {
  func.func @_conv3x3_flat_kernel(%arg0: i32, %arg1: memref<1x646x4xbf16, #tpu.memory_space<vmem>>, %arg2: memref<9x4x128xbf16, #tpu.memory_space<vmem>>, %arg3: memref<1x128xf32, #tpu.memory_space<vmem>>, %arg4: memref<1x576x128xf32, #tpu.memory_space<vmem>>) attributes {dimension_semantics = [#tpu.dimension_semantics<parallel>], iteration_bounds = array<i64: 2>, scalar_prefetch = 0 : i64, scratch_operands = 0 : i64, tpu.core_type = #tpu.core_type<tc>, window_params = [{transform_indices = @transform_0, window_bounds = array<i64: 1, 646, 4>}, {pipeline_mode = #tpu.pipeline_mode<synchronous>, transform_indices = @transform_1, window_bounds = array<i64: 9, 4, 128>}, {pipeline_mode = #tpu.pipeline_mode<synchronous>, transform_indices = @transform_2, window_bounds = array<i64: 1, 128>}, {transform_indices = @transform_3, window_bounds = array<i64: 1, 576, 128>}]} {
    %cst = arith.constant 0.000000e+00 : f32
    %0 = vector.broadcast %cst : f32 to vector<64x128xf32>
    %c0 = arith.constant 0 : index
    %c0_0 = arith.constant 0 : index
    %c0_1 = arith.constant 0 : index
    %1 = vector.load %arg1[%c0, %c0_0, %c0_1] : memref<1x646x4xbf16, #tpu.memory_space<vmem>>, vector<1x64x4xbf16>
    %2 = vector.shape_cast %1 : vector<1x64x4xbf16> to vector<64x4xbf16>
    %c0_2 = arith.constant 0 : index
    %c0_3 = arith.constant 0 : index
    %c0_4 = arith.constant 0 : index
    %3 = vector.load %arg2[%c0_2, %c0_3, %c0_4] : memref<9x4x128xbf16, #tpu.memory_space<vmem>>, vector<1x4x128xbf16>
    %4 = vector.shape_cast %3 : vector<1x4x128xbf16> to vector<4x128xbf16>
    %cst_5 = arith.constant dense<0.000000e+00> : vector<64x128xf32>
    %5 = tpu.matmul %2, %4, %cst_5 {dimension_numbers = #tpu.dot_dimension_numbers<[1], [0], [0], [1], [0, 0, 1, 1], [], []>} : vector<64x4xbf16>, vector<4x128xbf16>, vector<64x128xf32> -> vector<64x128xf32>
    %6 = arith.addf %0, %5 : vector<64x128xf32>
    %c0_6 = arith.constant 0 : index
    %c1 = arith.constant 1 : index
    %c0_7 = arith.constant 0 : index
    %7 = vector.load %arg1[%c0_6, %c1, %c0_7] : memref<1x646x4xbf16, #tpu.memory_space<vmem>>, vector<1x64x4xbf16>
    %8 = vector.shape_cast %7 : vector<1x64x4xbf16> to vector<64x4xbf16>
    %c1_8 = arith.constant 1 : index
    %c0_9 = arith.constant 0 : index
    %c0_10 = arith.constant 0 : index
    %9 = vector.load %arg2[%c1_8, %c0_9, %c0_10] : memref<9x4x128xbf16, #tpu.memory_space<vmem>>, vector<1x4x128xbf16>
    %10 = vector.shape_cast %9 : vector<1x4x128xbf16> to vector<4x128xbf16>
    %cst_11 = arith.constant dense<0.000000e+00> : vector<64x128xf32>
    %11 = tpu.matmul %8, %10, %cst_11 {dimension_numbers = #tpu.dot_dimension_numbers<[1], [0], [0], [1], [0, 0, 1, 1], [], []>} : vector<64x4xbf16>, vector<4x128xbf16>, vector<64x128xf32> -> vector<64x128xf32>
    %12 = arith.addf %6, %11 : vector<64x128xf32>
    %c0_12 = arith.constant 0 : index
    %c2 = arith.constant 2 : index
    %c0_13 = arith.constant 0 : index
    %13 = vector.load %arg1[%c0_12, %c2, %c0_13] : memref<1x646x4xbf16, #tpu.memory_space<vmem>>, vector<1x64x4xbf16>
    %14 = vector.shape_cast %13 : vector<1x64x4xbf16> to vector<64x4xbf16>
    %c2_14 = arith.constant 2 : index
    %c0_15 = arith.constant 0 : index
    %c0_16 = arith.constant 0 : index
    %15 = vector.load %arg2[%c2_14, %c0_15, %c0_16] : memref<9x4x128xbf16, #tpu.memory_space<vmem>>, vector<1x4x128xbf16>
    %16 = vector.shape_cast %15 : vector<1x4x128xbf16> to vector<4x128xbf16>
    %cst_17 = arith.constant dense<0.000000e+00> : vector<64x128xf32>
    %17 = tpu.matmul %14, %16, %cst_17 {dimension_numbers = #tpu.dot_dimension_numbers<[1], [0], [0], [1], [0, 0, 1, 1], [], []>} : vector<64x4xbf16>, vector<4x128xbf16>, vector<64x128xf32> -> vector<64x128xf32>
    %18 = arith.addf %12, %17 : vector<64x128xf32>
    %c0_18 = arith.constant 0 : index
    %c34 = arith.constant 34 : index
    %c0_19 = arith.constant 0 : index
    %19 = vector.load %arg1[%c0_18, %c34, %c0_19] : memref<1x646x4xbf16, #tpu.memory_space<vmem>>, vector<1x64x4xbf16>
    %20 = vector.shape_cast %19 : vector<1x64x4xbf16> to vector<64x4xbf16>
    %c3 = arith.constant 3 : index
    %c0_20 = arith.constant 0 : index
    %c0_21 = arith.constant 0 : index
    %21 = vector.load %arg2[%c3, %c0_20, %c0_21] : memref<9x4x128xbf16, #tpu.memory_space<vmem>>, vector<1x4x128xbf16>
    %22 = vector.shape_cast %21 : vector<1x4x128xbf16> to vector<4x128xbf16>
    %cst_22 = arith.constant dense<0.000000e+00> : vector<64x128xf32>
    %23 = tpu.matmul %20, %22, %cst_22 {dimension_numbers = #tpu.dot_dimension_numbers<[1], [0], [0], [1], [0, 0, 1, 1], [], []>} : vector<64x4xbf16>, vector<4x128xbf16>, vector<64x128xf32> -> vector<64x128xf32>
    %24 = arith.addf %18, %23 : vector<64x128xf32>
    %c0_23 = arith.constant 0 : index
    %c35 = arith.constant 35 : index
    %c0_24 = arith.constant 0 : index
    %25 = vector.load %arg1[%c0_23, %c35, %c0_24] : memref<1x646x4xbf16, #tpu.memory_space<vmem>>, vector<1x64x4xbf16>
    %26 = vector.shape_cast %25 : vector<1x64x4xbf16> to vector<64x4xbf16>
    %c4 = arith.constant 4 : index
    %c0_25 = arith.constant 0 : index
    %c0_26 = arith.constant 0 : index
    %27 = vector.load %arg2[%c4, %c0_25, %c0_26] : memref<9x4x128xbf16, #tpu.memory_space<vmem>>, vector<1x4x128xbf16>
    %28 = vector.shape_cast %27 : vector<1x4x128xbf16> to vector<4x128xbf16>
    %cst_27 = arith.constant dense<0.000000e+00> : vector<64x128xf32>
    %29 = tpu.matmul %26, %28, %cst_27 {dimension_numbers = #tpu.dot_dimension_numbers<[1], [0], [0], [1], [0, 0, 1, 1], [], []>} : vector<64x4xbf16>, vector<4x128xbf16>, vector<64x128xf32> -> vector<64x128xf32>
    %30 = arith.addf %24, %29 : vector<64x128xf32>
    %c0_28 = arith.constant 0 : index
    %c36 = arith.constant 36 : index
    %c0_29 = arith.constant 0 : index
    %31 = vector.load %arg1[%c0_28, %c36, %c0_29] : memref<1x646x4xbf16, #tpu.memory_space<vmem>>, vector<1x64x4xbf16>
    %32 = vector.shape_cast %31 : vector<1x64x4xbf16> to vector<64x4xbf16>
    %c5 = arith.constant 5 : index
    %c0_30 = arith.constant 0 : index
    %c0_31 = arith.constant 0 : index
    %33 = vector.load %arg2[%c5, %c0_30, %c0_31] : memref<9x4x128xbf16, #tpu.memory_space<vmem>>, vector<1x4x128xbf16>
    %34 = vector.shape_cast %33 : vector<1x4x128xbf16> to vector<4x128xbf16>
    %cst_32 = arith.constant dense<0.000000e+00> : vector<64x128xf32>
    %35 = tpu.matmul %32, %34, %cst_32 {dimension_numbers = #tpu.dot_dimension_numbers<[1], [0], [0], [1], [0, 0, 1, 1], [], []>} : vector<64x4xbf16>, vector<4x128xbf16>, vector<64x128xf32> -> vector<64x128xf32>
    %36 = arith.addf %30, %35 : vector<64x128xf32>
    %c0_33 = arith.constant 0 : index
    %c68 = arith.constant 68 : index
    %c0_34 = arith.constant 0 : index
    %37 = vector.load %arg1[%c0_33, %c68, %c0_34] : memref<1x646x4xbf16, #tpu.memory_space<vmem>>, vector<1x64x4xbf16>
    %38 = vector.shape_cast %37 : vector<1x64x4xbf16> to vector<64x4xbf16>
    %c6 = arith.constant 6 : index
    %c0_35 = arith.constant 0 : index
    %c0_36 = arith.constant 0 : index
    %39 = vector.load %arg2[%c6, %c0_35, %c0_36] : memref<9x4x128xbf16, #tpu.memory_space<vmem>>, vector<1x4x128xbf16>
    %40 = vector.shape_cast %39 : vector<1x4x128xbf16> to vector<4x128xbf16>
    %cst_37 = arith.constant dense<0.000000e+00> : vector<64x128xf32>
    %41 = tpu.matmul %38, %40, %cst_37 {dimension_numbers = #tpu.dot_dimension_numbers<[1], [0], [0], [1], [0, 0, 1, 1], [], []>} : vector<64x4xbf16>, vector<4x128xbf16>, vector<64x128xf32> -> vector<64x128xf32>
    %42 = arith.addf %36, %41 : vector<64x128xf32>
    %c0_38 = arith.constant 0 : index
    %c69 = arith.constant 69 : index
    %c0_39 = arith.constant 0 : index
    %43 = vector.load %arg1[%c0_38, %c69, %c0_39] : memref<1x646x4xbf16, #tpu.memory_space<vmem>>, vector<1x64x4xbf16>
    %44 = vector.shape_cast %43 : vector<1x64x4xbf16> to vector<64x4xbf16>
    %c7 = arith.constant 7 : index
    %c0_40 = arith.constant 0 : index
    %c0_41 = arith.constant 0 : index
    %45 = vector.load %arg2[%c7, %c0_40, %c0_41] : memref<9x4x128xbf16, #tpu.memory_space<vmem>>, vector<1x4x128xbf16>
    %46 = vector.shape_cast %45 : vector<1x4x128xbf16> to vector<4x128xbf16>
    %cst_42 = arith.constant dense<0.000000e+00> : vector<64x128xf32>
    %47 = tpu.matmul %44, %46, %cst_42 {dimension_numbers = #tpu.dot_dimension_numbers<[1], [0], [0], [1], [0, 0, 1, 1], [], []>} : vector<64x4xbf16>, vector<4x128xbf16>, vector<64x128xf32> -> vector<64x128xf32>
    %48 = arith.addf %42, %47 : vector<64x128xf32>
    %c0_43 = arith.constant 0 : index
    %c70 = arith.constant 70 : index
    %c0_44 = arith.constant 0 : index
    %49 = vector.load %arg1[%c0_43, %c70, %c0_44] : memref<1x646x4xbf16, #tpu.memory_space<vmem>>, vector<1x64x4xbf16>
    %50 = vector.shape_cast %49 : vector<1x64x4xbf16> to vector<64x4xbf16>
    %c8 = arith.constant 8 : index
    %c0_45 = arith.constant 0 : index
    %c0_46 = arith.constant 0 : index
    %51 = vector.load %arg2[%c8, %c0_45, %c0_46] : memref<9x4x128xbf16, #tpu.memory_space<vmem>>, vector<1x4x128xbf16>
    %52 = vector.shape_cast %51 : vector<1x4x128xbf16> to vector<4x128xbf16>
    %cst_47 = arith.constant dense<0.000000e+00> : vector<64x128xf32>
    %53 = tpu.matmul %50, %52, %cst_47 {dimension_numbers = #tpu.dot_dimension_numbers<[1], [0], [0], [1], [0, 0, 1, 1], [], []>} : vector<64x4xbf16>, vector<4x128xbf16>, vector<64x128xf32> -> vector<64x128xf32>
    %54 = arith.addf %48, %53 : vector<64x128xf32>
    %c0_48 = arith.constant 0 : index
    %c0_49 = arith.constant 0 : index
    %55 = vector.load %arg3[%c0_48, %c0_49] : memref<1x128xf32, #tpu.memory_space<vmem>>, vector<1x128xf32>
    %56 = vector.broadcast %55 : vector<1x128xf32> to vector<64x128xf32>
    %57 = arith.addf %54, %56 : vector<64x128xf32>
    %cst_50 = arith.constant 0.000000e+00 : f32
    %58 = vector.broadcast %cst_50 : f32 to vector<64x128xf32>
    %59 = arith.maximumf %57, %58 : vector<64x128xf32>
    %c0_51 = arith.constant 0 : index
    %c0_52 = arith.constant 0 : index
    %c0_53 = arith.constant 0 : index
    %60 = vector.load %arg4[%c0_51, %c0_52, %c0_53] : memref<1x576x128xf32, #tpu.memory_space<vmem>>, vector<1x64x128xf32>
    %61 = vector.shape_cast %60 : vector<1x64x128xf32> to vector<64x128xf32>
    %62 = vector.shape_cast %59 : vector<64x128xf32> to vector<1x64x128xf32>
    tpu.vector_store %arg4[%c0_51, %c0_52, %c0_53], %62 {strides = array<i32>} : memref<1x576x128xf32, #tpu.memory_space<vmem>>, vector<1x64x128xf32>,
    %cst_54 = arith.constant 0.000000e+00 : f32
    %63 = vector.broadcast %cst_54 : f32 to vector<64x128xf32>
    %c0_55 = arith.constant 0 : index
    %c64 = arith.constant 64 : index
    %c0_56 = arith.constant 0 : index
    %64 = vector.load %arg1[%c0_55, %c64, %c0_56] : memref<1x646x4xbf16, #tpu.memory_space<vmem>>, vector<1x64x4xbf16>
    %65 = vector.shape_cast %64 : vector<1x64x4xbf16> to vector<64x4xbf16>
    %c0_57 = arith.constant 0 : index
    %c0_58 = arith.constant 0 : index
    %c0_59 = arith.constant 0 : index
    %66 = vector.load %arg2[%c0_57, %c0_58, %c0_59] : memref<9x4x128xbf16, #tpu.memory_space<vmem>>, vector<1x4x128xbf16>
    %67 = vector.shape_cast %66 : vector<1x4x128xbf16> to vector<4x128xbf16>
    %cst_60 = arith.constant dense<0.000000e+00> : vector<64x128xf32>
    %68 = tpu.matmul %65, %67, %cst_60 {dimension_numbers = #tpu.dot_dimension_numbers<[1], [0], [0], [1], [0, 0, 1, 1], [], []>} : vector<64x4xbf16>, vector<4x128xbf16>, vector<64x128xf32> -> vector<64x128xf32>
    %69 = arith.addf %63, %68 : vector<64x128xf32>
    %c0_61 = arith.constant 0 : index
    %c65 = arith.constant 65 : index
    %c0_62 = arith.constant 0 : index
    %70 = vector.load %arg1[%c0_61, %c65, %c0_62] : memref<1x646x4xbf16, #tpu.memory_space<vmem>>, vector<1x64x4xbf16>
    %71 = vector.shape_cast %70 : vector<1x64x4xbf16> to vector<64x4xbf16>
    %c1_63 = arith.constant 1 : index
    %c0_64 = arith.constant 0 : index
    %c0_65 = arith.constant 0 : index
    %72 = vector.load %arg2[%c1_63, %c0_64, %c0_65] : memref<9x4x128xbf16, #tpu.memory_space<vmem>>, vector<1x4x128xbf16>
    %73 = vector.shape_cast %72 : vector<1x4x128xbf16> to vector<4x128xbf16>
    %cst_66 = arith.constant dense<0.000000e+00> : vector<64x128xf32>
    %74 = tpu.matmul %71, %73, %cst_66 {dimension_numbers = #tpu.dot_dimension_numbers<[1], [0], [0], [1], [0, 0, 1, 1], [], []>} : vector<64x4xbf16>, vector<4x128xbf16>, vector<64x128xf32> -> vector<64x128xf32>
    %75 = arith.addf %69, %74 : vector<64x128xf32>
    %c0_67 = arith.constant 0 : index
    %c66 = arith.constant 66 : index
    %c0_68 = arith.constant 0 : index
    %76 = vector.load %arg1[%c0_67, %c66, %c0_68] : memref<1x646x4xbf16, #tpu.memory_space<vmem>>, vector<1x64x4xbf16>
    %77 = vector.shape_cast %76 : vector<1x64x4xbf16> to vector<64x4xbf16>
    %c2_69 = arith.constant 2 : index
    %c0_70 = arith.constant 0 : index
    %c0_71 = arith.constant 0 : index
    %78 = vector.load %arg2[%c2_69, %c0_70, %c0_71] : memref<9x4x128xbf16, #tpu.memory_space<vmem>>, vector<1x4x128xbf16>
    %79 = vector.shape_cast %78 : vector<1x4x128xbf16> to vector<4x128xbf16>
    %cst_72 = arith.constant dense<0.000000e+00> : vector<64x128xf32>
    %80 = tpu.matmul %77, %79, %cst_72 {dimension_numbers = #tpu.dot_dimension_numbers<[1], [0], [0], [1], [0, 0, 1, 1], [], []>} : vector<64x4xbf16>, vector<4x128xbf16>, vector<64x128xf32> -> vector<64x128xf32>
    %81 = arith.addf %75, %80 : vector<64x128xf32>
    %c0_73 = arith.constant 0 : index
    %c98 = arith.constant 98 : index
    %c0_74 = arith.constant 0 : index
    %82 = vector.load %arg1[%c0_73, %c98, %c0_74] : memref<1x646x4xbf16, #tpu.memory_space<vmem>>, vector<1x64x4xbf16>
    %83 = vector.shape_cast %82 : vector<1x64x4xbf16> to vector<64x4xbf16>
    %c3_75 = arith.constant 3 : index
    %c0_76 = arith.constant 0 : index
    %c0_77 = arith.constant 0 : index
    %84 = vector.load %arg2[%c3_75, %c0_76, %c0_77] : memref<9x4x128xbf16, #tpu.memory_space<vmem>>, vector<1x4x128xbf16>
    %85 = vector.shape_cast %84 : vector<1x4x128xbf16> to vector<4x128xbf16>
    %cst_78 = arith.constant dense<0.000000e+00> : vector<64x128xf32>
    %86 = tpu.matmul %83, %85, %cst_78 {dimension_numbers = #tpu.dot_dimension_numbers<[1], [0], [0], [1], [0, 0, 1, 1], [], []>} : vector<64x4xbf16>, vector<4x128xbf16>, vector<64x128xf32> -> vector<64x128xf32>
    %87 = arith.addf %81, %86 : vector<64x128xf32>
    %c0_79 = arith.constant 0 : index
    %c99 = arith.constant 99 : index
    %c0_80 = arith.constant 0 : index
    %88 = vector.load %arg1[%c0_79, %c99, %c0_80] : memref<1x646x4xbf16, #tpu.memory_space<vmem>>, vector<1x64x4xbf16>
    %89 = vector.shape_cast %88 : vector<1x64x4xbf16> to vector<64x4xbf16>
    %c4_81 = arith.constant 4 : index
    %c0_82 = arith.constant 0 : index
    %c0_83 = arith.constant 0 : index
    %90 = vector.load %arg2[%c4_81, %c0_82, %c0_83] : memref<9x4x128xbf16, #tpu.memory_space<vmem>>, vector<1x4x128xbf16>
    %91 = vector.shape_cast %90 : vector<1x4x128xbf16> to vector<4x128xbf16>
    %cst_84 = arith.constant dense<0.000000e+00> : vector<64x128xf32>
    %92 = tpu.matmul %89, %91, %cst_84 {dimension_numbers = #tpu.dot_dimension_numbers<[1], [0], [0], [1], [0, 0, 1, 1], [], []>} : vector<64x4xbf16>, vector<4x128xbf16>, vector<64x128xf32> -> vector<64x128xf32>
    %93 = arith.addf %87, %92 : vector<64x128xf32>
    %c0_85 = arith.constant 0 : index
    %c100 = arith.constant 100 : index
    %c0_86 = arith.constant 0 : index
    %94 = vector.load %arg1[%c0_85, %c100, %c0_86] : memref<1x646x4xbf16, #tpu.memory_space<vmem>>, vector<1x64x4xbf16>
    %95 = vector.shape_cast %94 : vector<1x64x4xbf16> to vector<64x4xbf16>
    %c5_87 = arith.constant 5 : index
    %c0_88 = arith.constant 0 : index
    %c0_89 = arith.constant 0 : index
    %96 = vector.load %arg2[%c5_87, %c0_88, %c0_89] : memref<9x4x128xbf16, #tpu.memory_space<vmem>>, vector<1x4x128xbf16>
    %97 = vector.shape_cast %96 : vector<1x4x128xbf16> to vector<4x128xbf16>
    %cst_90 = arith.constant dense<0.000000e+00> : vector<64x128xf32>
    %98 = tpu.matmul %95, %97, %cst_90 {dimension_numbers = #tpu.dot_dimension_numbers<[1], [0], [0], [1], [0, 0, 1, 1], [], []>} : vector<64x4xbf16>, vector<4x128xbf16>, vector<64x128xf32> -> vector<64x128xf32>
    %99 = arith.addf %93, %98 : vector<64x128xf32>
    %c0_91 = arith.constant 0 : index
    %c132 = arith.constant 132 : index
    %c0_92 = arith.constant 0 : index
    %100 = vector.load %arg1[%c0_91, %c132, %c0_92] : memref<1x646x4xbf16, #tpu.memory_space<vmem>>, vector<1x64x4xbf16>
    %101 = vector.shape_cast %100 : vector<1x64x4xbf16> to vector<64x4xbf16>
    %c6_93 = arith.constant 6 : index
    %c0_94 = arith.constant 0 : index
    %c0_95 = arith.constant 0 : index
    %102 = vector.load %arg2[%c6_93, %c0_94, %c0_95] : memref<9x4x128xbf16, #tpu.memory_space<vmem>>, vector<1x4x128xbf16>
    %103 = vector.shape_cast %102 : vector<1x4x128xbf16> to vector<4x128xbf16>
    %cst_96 = arith.constant dense<0.000000e+00> : vector<64x128xf32>
    %104 = tpu.matmul %101, %103, %cst_96 {dimension_numbers = #tpu.dot_dimension_numbers<[1], [0], [0], [1], [0, 0, 1, 1], [], []>} : vector<64x4xbf16>, vector<4x128xbf16>, vector<64x128xf32> -> vector<64x128xf32>
    %105 = arith.addf %99, %104 : vector<64x128xf32>
    %c0_97 = arith.constant 0 : index
    %c133 = arith.constant 133 : index
    %c0_98 = arith.constant 0 : index
    %106 = vector.load %arg1[%c0_97, %c133, %c0_98] : memref<1x646x4xbf16, #tpu.memory_space<vmem>>, vector<1x64x4xbf16>
    %107 = vector.shape_cast %106 : vector<1x64x4xbf16> to vector<64x4xbf16>
    %c7_99 = arith.constant 7 : index
    %c0_100 = arith.constant 0 : index
    %c0_101 = arith.constant 0 : index
    %108 = vector.load %arg2[%c7_99, %c0_100, %c0_101] : memref<9x4x128xbf16, #tpu.memory_space<vmem>>, vector<1x4x128xbf16>
    %109 = vector.shape_cast %108 : vector<1x4x128xbf16> to vector<4x128xbf16>
    %cst_102 = arith.constant dense<0.000000e+00> : vector<64x128xf32>
    %110 = tpu.matmul %107, %109, %cst_102 {dimension_numbers = #tpu.dot_dimension_numbers<[1], [0], [0], [1], [0, 0, 1, 1], [], []>} : vector<64x4xbf16>, vector<4x128xbf16>, vector<64x128xf32> -> vector<64x128xf32>
    %111 = arith.addf %105, %110 : vector<64x128xf32>
    %c0_103 = arith.constant 0 : index
    %c134 = arith.constant 134 : index
    %c0_104 = arith.constant 0 : index
    %112 = vector.load %arg1[%c0_103, %c134, %c0_104] : memref<1x646x4xbf16, #tpu.memory_space<vmem>>, vector<1x64x4xbf16>
    %113 = vector.shape_cast %112 : vector<1x64x4xbf16> to vector<64x4xbf16>
    %c8_105 = arith.constant 8 : index
    %c0_106 = arith.constant 0 : index
    %c0_107 = arith.constant 0 : index
    %114 = vector.load %arg2[%c8_105, %c0_106, %c0_107] : memref<9x4x128xbf16, #tpu.memory_space<vmem>>, vector<1x4x128xbf16>
    %115 = vector.shape_cast %114 : vector<1x4x128xbf16> to vector<4x128xbf16>
    %cst_108 = arith.constant dense<0.000000e+00> : vector<64x128xf32>
    %116 = tpu.matmul %113, %115, %cst_108 {dimension_numbers = #tpu.dot_dimension_numbers<[1], [0], [0], [1], [0, 0, 1, 1], [], []>} : vector<64x4xbf16>, vector<4x128xbf16>, vector<64x128xf32> -> vector<64x128xf32>
    %117 = arith.addf %111, %116 : vector<64x128xf32>
    %c0_109 = arith.constant 0 : index
    %c0_110 = arith.constant 0 : index
    %118 = vector.load %arg3[%c0_109, %c0_110] : memref<1x128xf32, #tpu.memory_space<vmem>>, vector<1x128xf32>
    %119 = vector.broadcast %118 : vector<1x128xf32> to vector<64x128xf32>
    %120 = arith.addf %117, %119 : vector<64x128xf32>
    %cst_111 = arith.constant 0.000000e+00 : f32
    %121 = vector.broadcast %cst_111 : f32 to vector<64x128xf32>
    %122 = arith.maximumf %120, %121 : vector<64x128xf32>
    %c0_112 = arith.constant 0 : index
    %c64_113 = arith.constant 64 : index
    %c0_114 = arith.constant 0 : index
    %123 = vector.load %arg4[%c0_112, %c64_113, %c0_114] : memref<1x576x128xf32, #tpu.memory_space<vmem>>, vector<1x64x128xf32>
    %124 = vector.shape_cast %123 : vector<1x64x128xf32> to vector<64x128xf32>
    %125 = vector.shape_cast %122 : vector<64x128xf32> to vector<1x64x128xf32>
    tpu.vector_store %arg4[%c0_112, %c64_113, %c0_114], %125 {strides = array<i32>} : memref<1x576x128xf32, #tpu.memory_space<vmem>>, vector<1x64x128xf32>,
    %cst_115 = arith.constant 0.000000e+00 : f32
    %126 = vector.broadcast %cst_115 : f32 to vector<64x128xf32>
    %c0_116 = arith.constant 0 : index
    %c128 = arith.constant 128 : index
    %c0_117 = arith.constant 0 : index
    %127 = vector.load %arg1[%c0_116, %c128, %c0_117] : memref<1x646x4xbf16, #tpu.memory_space<vmem>>, vector<1x64x4xbf16>
    %128 = vector.shape_cast %127 : vector<1x64x4xbf16> to vector<64x4xbf16>
    %c0_118 = arith.constant 0 : index
    %c0_119 = arith.constant 0 : index
    %c0_120 = arith.constant 0 : index
    %129 = vector.load %arg2[%c0_118, %c0_119, %c0_120] : memref<9x4x128xbf16, #tpu.memory_space<vmem>>, vector<1x4x128xbf16>
    %130 = vector.shape_cast %129 : vector<1x4x128xbf16> to vector<4x128xbf16>
    %cst_121 = arith.constant dense<0.000000e+00> : vector<64x128xf32>
    %131 = tpu.matmul %128, %130, %cst_121 {dimension_numbers = #tpu.dot_dimension_numbers<[1], [0], [0], [1], [0, 0, 1, 1], [], []>} : vector<64x4xbf16>, vector<4x128xbf16>, vector<64x128xf32> -> vector<64x128xf32>
    %132 = arith.addf %126, %131 : vector<64x128xf32>
    %c0_122 = arith.constant 0 : index
    %c129 = arith.constant 129 : index
    %c0_123 = arith.constant 0 : index
    %133 = vector.load %arg1[%c0_122, %c129, %c0_123] : memref<1x646x4xbf16, #tpu.memory_space<vmem>>, vector<1x64x4xbf16>
    %134 = vector.shape_cast %133 : vector<1x64x4xbf16> to vector<64x4xbf16>
    %c1_124 = arith.constant 1 : index
    %c0_125 = arith.constant 0 : index
    %c0_126 = arith.constant 0 : index
    %135 = vector.load %arg2[%c1_124, %c0_125, %c0_126] : memref<9x4x128xbf16, #tpu.memory_space<vmem>>, vector<1x4x128xbf16>
    %136 = vector.shape_cast %135 : vector<1x4x128xbf16> to vector<4x128xbf16>
    %cst_127 = arith.constant dense<0.000000e+00> : vector<64x128xf32>
    %137 = tpu.matmul %134, %136, %cst_127 {dimension_numbers = #tpu.dot_dimension_numbers<[1], [0], [0], [1], [0, 0, 1, 1], [], []>} : vector<64x4xbf16>, vector<4x128xbf16>, vector<64x128xf32> -> vector<64x128xf32>
    %138 = arith.addf %132, %137 : vector<64x128xf32>
    %c0_128 = arith.constant 0 : index
    %c130 = arith.constant 130 : index
    %c0_129 = arith.constant 0 : index
    %139 = vector.load %arg1[%c0_128, %c130, %c0_129] : memref<1x646x4xbf16, #tpu.memory_space<vmem>>, vector<1x64x4xbf16>
    %140 = vector.shape_cast %139 : vector<1x64x4xbf16> to vector<64x4xbf16>
    %c2_130 = arith.constant 2 : index
    %c0_131 = arith.constant 0 : index
    %c0_132 = arith.constant 0 : index
    %141 = vector.load %arg2[%c2_130, %c0_131, %c0_132] : memref<9x4x128xbf16, #tpu.memory_space<vmem>>, vector<1x4x128xbf16>
    %142 = vector.shape_cast %141 : vector<1x4x128xbf16> to vector<4x128xbf16>
    %cst_133 = arith.constant dense<0.000000e+00> : vector<64x128xf32>
    %143 = tpu.matmul %140, %142, %cst_133 {dimension_numbers = #tpu.dot_dimension_numbers<[1], [0], [0], [1], [0, 0, 1, 1], [], []>} : vector<64x4xbf16>, vector<4x128xbf16>, vector<64x128xf32> -> vector<64x128xf32>
    %144 = arith.addf %138, %143 : vector<64x128xf32>
    %c0_134 = arith.constant 0 : index
    %c162 = arith.constant 162 : index
    %c0_135 = arith.constant 0 : index
    %145 = vector.load %arg1[%c0_134, %c162, %c0_135] : memref<1x646x4xbf16, #tpu.memory_space<vmem>>, vector<1x64x4xbf16>
    %146 = vector.shape_cast %145 : vector<1x64x4xbf16> to vector<64x4xbf16>
    %c3_136 = arith.constant 3 : index
    %c0_137 = arith.constant 0 : index
    %c0_138 = arith.constant 0 : index
    %147 = vector.load %arg2[%c3_136, %c0_137, %c0_138] : memref<9x4x128xbf16, #tpu.memory_space<vmem>>, vector<1x4x128xbf16>
    %148 = vector.shape_cast %147 : vector<1x4x128xbf16> to vector<4x128xbf16>
    %cst_139 = arith.constant dense<0.000000e+00> : vector<64x128xf32>
    %149 = tpu.matmul %146, %148, %cst_139 {dimension_numbers = #tpu.dot_dimension_numbers<[1], [0], [0], [1], [0, 0, 1, 1], [], []>} : vector<64x4xbf16>, vector<4x128xbf16>, vector<64x128xf32> -> vector<64x128xf32>
    %150 = arith.addf %144, %149 : vector<64x128xf32>
    %c0_140 = arith.constant 0 : index
    %c163 = arith.constant 163 : index
    %c0_141 = arith.constant 0 : index
    %151 = vector.load %arg1[%c0_140, %c163, %c0_141] : memref<1x646x4xbf16, #tpu.memory_space<vmem>>, vector<1x64x4xbf16>
    %152 = vector.shape_cast %151 : vector<1x64x4xbf16> to vector<64x4xbf16>
    %c4_142 = arith.constant 4 : index
    %c0_143 = arith.constant 0 : index
    %c0_144 = arith.constant 0 : index
    %153 = vector.load %arg2[%c4_142, %c0_143, %c0_144] : memref<9x4x128xbf16, #tpu.memory_space<vmem>>, vector<1x4x128xbf16>
    %154 = vector.shape_cast %153 : vector<1x4x128xbf16> to vector<4x128xbf16>
    %cst_145 = arith.constant dense<0.000000e+00> : vector<64x128xf32>
    %155 = tpu.matmul %152, %154, %cst_145 {dimension_numbers = #tpu.dot_dimension_numbers<[1], [0], [0], [1], [0, 0, 1, 1], [], []>} : vector<64x4xbf16>, vector<4x128xbf16>, vector<64x128xf32> -> vector<64x128xf32>
    %156 = arith.addf %150, %155 : vector<64x128xf32>
    %c0_146 = arith.constant 0 : index
    %c164 = arith.constant 164 : index
    %c0_147 = arith.constant 0 : index
    %157 = vector.load %arg1[%c0_146, %c164, %c0_147] : memref<1x646x4xbf16, #tpu.memory_space<vmem>>, vector<1x64x4xbf16>
    %158 = vector.shape_cast %157 : vector<1x64x4xbf16> to vector<64x4xbf16>
    %c5_148 = arith.constant 5 : index
    %c0_149 = arith.constant 0 : index
    %c0_150 = arith.constant 0 : index
    %159 = vector.load %arg2[%c5_148, %c0_149, %c0_150] : memref<9x4x128xbf16, #tpu.memory_space<vmem>>, vector<1x4x128xbf16>
    %160 = vector.shape_cast %159 : vector<1x4x128xbf16> to vector<4x128xbf16>
    %cst_151 = arith.constant dense<0.000000e+00> : vector<64x128xf32>
    %161 = tpu.matmul %158, %160, %cst_151 {dimension_numbers = #tpu.dot_dimension_numbers<[1], [0], [0], [1], [0, 0, 1, 1], [], []>} : vector<64x4xbf16>, vector<4x128xbf16>, vector<64x128xf32> -> vector<64x128xf32>
    %162 = arith.addf %156, %161 : vector<64x128xf32>
    %c0_152 = arith.constant 0 : index
    %c196 = arith.constant 196 : index
    %c0_153 = arith.constant 0 : index
    %163 = vector.load %arg1[%c0_152, %c196, %c0_153] : memref<1x646x4xbf16, #tpu.memory_space<vmem>>, vector<1x64x4xbf16>
    %164 = vector.shape_cast %163 : vector<1x64x4xbf16> to vector<64x4xbf16>
    %c6_154 = arith.constant 6 : index
    %c0_155 = arith.constant 0 : index
    %c0_156 = arith.constant 0 : index
    %165 = vector.load %arg2[%c6_154, %c0_155, %c0_156] : memref<9x4x128xbf16, #tpu.memory_space<vmem>>, vector<1x4x128xbf16>
    %166 = vector.shape_cast %165 : vector<1x4x128xbf16> to vector<4x128xbf16>
    %cst_157 = arith.constant dense<0.000000e+00> : vector<64x128xf32>
    %167 = tpu.matmul %164, %166, %cst_157 {dimension_numbers = #tpu.dot_dimension_numbers<[1], [0], [0], [1], [0, 0, 1, 1], [], []>} : vector<64x4xbf16>, vector<4x128xbf16>, vector<64x128xf32> -> vector<64x128xf32>
    %168 = arith.addf %162, %167 : vector<64x128xf32>
    %c0_158 = arith.constant 0 : index
    %c197 = arith.constant 197 : index
    %c0_159 = arith.constant 0 : index
    %169 = vector.load %arg1[%c0_158, %c197, %c0_159] : memref<1x646x4xbf16, #tpu.memory_space<vmem>>, vector<1x64x4xbf16>
    %170 = vector.shape_cast %169 : vector<1x64x4xbf16> to vector<64x4xbf16>
    %c7_160 = arith.constant 7 : index
    %c0_161 = arith.constant 0 : index
    %c0_162 = arith.constant 0 : index
    %171 = vector.load %arg2[%c7_160, %c0_161, %c0_162] : memref<9x4x128xbf16, #tpu.memory_space<vmem>>, vector<1x4x128xbf16>
    %172 = vector.shape_cast %171 : vector<1x4x128xbf16> to vector<4x128xbf16>
    %cst_163 = arith.constant dense<0.000000e+00> : vector<64x128xf32>
    %173 = tpu.matmul %170, %172, %cst_163 {dimension_numbers = #tpu.dot_dimension_numbers<[1], [0], [0], [1], [0, 0, 1, 1], [], []>} : vector<64x4xbf16>, vector<4x128xbf16>, vector<64x128xf32> -> vector<64x128xf32>
    %174 = arith.addf %168, %173 : vector<64x128xf32>
    %c0_164 = arith.constant 0 : index
    %c198 = arith.constant 198 : index
    %c0_165 = arith.constant 0 : index
    %175 = vector.load %arg1[%c0_164, %c198, %c0_165] : memref<1x646x4xbf16, #tpu.memory_space<vmem>>, vector<1x64x4xbf16>
    %176 = vector.shape_cast %175 : vector<1x64x4xbf16> to vector<64x4xbf16>
    %c8_166 = arith.constant 8 : index
    %c0_167 = arith.constant 0 : index
    %c0_168 = arith.constant 0 : index
    %177 = vector.load %arg2[%c8_166, %c0_167, %c0_168] : memref<9x4x128xbf16, #tpu.memory_space<vmem>>, vector<1x4x128xbf16>
    %178 = vector.shape_cast %177 : vector<1x4x128xbf16> to vector<4x128xbf16>
    %cst_169 = arith.constant dense<0.000000e+00> : vector<64x128xf32>
    %179 = tpu.matmul %176, %178, %cst_169 {dimension_numbers = #tpu.dot_dimension_numbers<[1], [0], [0], [1], [0, 0, 1, 1], [], []>} : vector<64x4xbf16>, vector<4x128xbf16>, vector<64x128xf32> -> vector<64x128xf32>
    %180 = arith.addf %174, %179 : vector<64x128xf32>
    %c0_170 = arith.constant 0 : index
    %c0_171 = arith.constant 0 : index
    %181 = vector.load %arg3[%c0_170, %c0_171] : memref<1x128xf32, #tpu.memory_space<vmem>>, vector<1x128xf32>
    %182 = vector.broadcast %181 : vector<1x128xf32> to vector<64x128xf32>
    %183 = arith.addf %180, %182 : vector<64x128xf32>
    %cst_172 = arith.constant 0.000000e+00 : f32
    %184 = vector.broadcast %cst_172 : f32 to vector<64x128xf32>
    %185 = arith.maximumf %183, %184 : vector<64x128xf32>
    %c0_173 = arith.constant 0 : index
    %c128_174 = arith.constant 128 : index
    %c0_175 = arith.constant 0 : index
    %186 = vector.load %arg4[%c0_173, %c128_174, %c0_175] : memref<1x576x128xf32, #tpu.memory_space<vmem>>, vector<1x64x128xf32>
    %187 = vector.shape_cast %186 : vector<1x64x128xf32> to vector<64x128xf32>
    %188 = vector.shape_cast %185 : vector<64x128xf32> to vector<1x64x128xf32>
    tpu.vector_store %arg4[%c0_173, %c128_174, %c0_175], %188 {strides = array<i32>} : memref<1x576x128xf32, #tpu.memory_space<vmem>>, vector<1x64x128xf32>,
    %cst_176 = arith.constant 0.000000e+00 : f32
    %189 = vector.broadcast %cst_176 : f32 to vector<64x128xf32>
    %c0_177 = arith.constant 0 : index
    %c192 = arith.constant 192 : index
    %c0_178 = arith.constant 0 : index
    %190 = vector.load %arg1[%c0_177, %c192, %c0_178] : memref<1x646x4xbf16, #tpu.memory_space<vmem>>, vector<1x64x4xbf16>
    %191 = vector.shape_cast %190 : vector<1x64x4xbf16> to vector<64x4xbf16>
    %c0_179 = arith.constant 0 : index
    %c0_180 = arith.constant 0 : index
    %c0_181 = arith.constant 0 : index
    %192 = vector.load %arg2[%c0_179, %c0_180, %c0_181] : memref<9x4x128xbf16, #tpu.memory_space<vmem>>, vector<1x4x128xbf16>
    %193 = vector.shape_cast %192 : vector<1x4x128xbf16> to vector<4x128xbf16>
    %cst_182 = arith.constant dense<0.000000e+00> : vector<64x128xf32>
    %194 = tpu.matmul %191, %193, %cst_182 {dimension_numbers = #tpu.dot_dimension_numbers<[1], [0], [0], [1], [0, 0, 1, 1], [], []>} : vector<64x4xbf16>, vector<4x128xbf16>, vector<64x128xf32> -> vector<64x128xf32>
    %195 = arith.addf %189, %194 : vector<64x128xf32>
    %c0_183 = arith.constant 0 : index
    %c193 = arith.constant 193 : index
    %c0_184 = arith.constant 0 : index
    %196 = vector.load %arg1[%c0_183, %c193, %c0_184] : memref<1x646x4xbf16, #tpu.memory_space<vmem>>, vector<1x64x4xbf16>
    %197 = vector.shape_cast %196 : vector<1x64x4xbf16> to vector<64x4xbf16>
    %c1_185 = arith.constant 1 : index
    %c0_186 = arith.constant 0 : index
    %c0_187 = arith.constant 0 : index
    %198 = vector.load %arg2[%c1_185, %c0_186, %c0_187] : memref<9x4x128xbf16, #tpu.memory_space<vmem>>, vector<1x4x128xbf16>
    %199 = vector.shape_cast %198 : vector<1x4x128xbf16> to vector<4x128xbf16>
    %cst_188 = arith.constant dense<0.000000e+00> : vector<64x128xf32>
    %200 = tpu.matmul %197, %199, %cst_188 {dimension_numbers = #tpu.dot_dimension_numbers<[1], [0], [0], [1], [0, 0, 1, 1], [], []>} : vector<64x4xbf16>, vector<4x128xbf16>, vector<64x128xf32> -> vector<64x128xf32>
    %201 = arith.addf %195, %200 : vector<64x128xf32>
    %c0_189 = arith.constant 0 : index
    %c194 = arith.constant 194 : index
    %c0_190 = arith.constant 0 : index
    %202 = vector.load %arg1[%c0_189, %c194, %c0_190] : memref<1x646x4xbf16, #tpu.memory_space<vmem>>, vector<1x64x4xbf16>
    %203 = vector.shape_cast %202 : vector<1x64x4xbf16> to vector<64x4xbf16>
    %c2_191 = arith.constant 2 : index
    %c0_192 = arith.constant 0 : index
    %c0_193 = arith.constant 0 : index
    %204 = vector.load %arg2[%c2_191, %c0_192, %c0_193] : memref<9x4x128xbf16, #tpu.memory_space<vmem>>, vector<1x4x128xbf16>
    %205 = vector.shape_cast %204 : vector<1x4x128xbf16> to vector<4x128xbf16>
    %cst_194 = arith.constant dense<0.000000e+00> : vector<64x128xf32>
    %206 = tpu.matmul %203, %205, %cst_194 {dimension_numbers = #tpu.dot_dimension_numbers<[1], [0], [0], [1], [0, 0, 1, 1], [], []>} : vector<64x4xbf16>, vector<4x128xbf16>, vector<64x128xf32> -> vector<64x128xf32>
    %207 = arith.addf %201, %206 : vector<64x128xf32>
    %c0_195 = arith.constant 0 : index
    %c226 = arith.constant 226 : index
    %c0_196 = arith.constant 0 : index
    %208 = vector.load %arg1[%c0_195, %c226, %c0_196] : memref<1x646x4xbf16, #tpu.memory_space<vmem>>, vector<1x64x4xbf16>
    %209 = vector.shape_cast %208 : vector<1x64x4xbf16> to vector<64x4xbf16>
    %c3_197 = arith.constant 3 : index
    %c0_198 = arith.constant 0 : index
    %c0_199 = arith.constant 0 : index
    %210 = vector.load %arg2[%c3_197, %c0_198, %c0_199] : memref<9x4x128xbf16, #tpu.memory_space<vmem>>, vector<1x4x128xbf16>
    %211 = vector.shape_cast %210 : vector<1x4x128xbf16> to vector<4x128xbf16>
    %cst_200 = arith.constant dense<0.000000e+00> : vector<64x128xf32>
    %212 = tpu.matmul %209, %211, %cst_200 {dimension_numbers = #tpu.dot_dimension_numbers<[1], [0], [0], [1], [0, 0, 1, 1], [], []>} : vector<64x4xbf16>, vector<4x128xbf16>, vector<64x128xf32> -> vector<64x128xf32>
    %213 = arith.addf %207, %212 : vector<64x128xf32>
    %c0_201 = arith.constant 0 : index
    %c227 = arith.constant 227 : index
    %c0_202 = arith.constant 0 : index
    %214 = vector.load %arg1[%c0_201, %c227, %c0_202] : memref<1x646x4xbf16, #tpu.memory_space<vmem>>, vector<1x64x4xbf16>
    %215 = vector.shape_cast %214 : vector<1x64x4xbf16> to vector<64x4xbf16>
    %c4_203 = arith.constant 4 : index
    %c0_204 = arith.constant 0 : index
    %c0_205 = arith.constant 0 : index
    %216 = vector.load %arg2[%c4_203, %c0_204, %c0_205] : memref<9x4x128xbf16, #tpu.memory_space<vmem>>, vector<1x4x128xbf16>
    %217 = vector.shape_cast %216 : vector<1x4x128xbf16> to vector<4x128xbf16>
    %cst_206 = arith.constant dense<0.000000e+00> : vector<64x128xf32>
    %218 = tpu.matmul %215, %217, %cst_206 {dimension_numbers = #tpu.dot_dimension_numbers<[1], [0], [0], [1], [0, 0, 1, 1], [], []>} : vector<64x4xbf16>, vector<4x128xbf16>, vector<64x128xf32> -> vector<64x128xf32>
    %219 = arith.addf %213, %218 : vector<64x128xf32>
    %c0_207 = arith.constant 0 : index
    %c228 = arith.constant 228 : index
    %c0_208 = arith.constant 0 : index
    %220 = vector.load %arg1[%c0_207, %c228, %c0_208] : memref<1x646x4xbf16, #tpu.memory_space<vmem>>, vector<1x64x4xbf16>
    %221 = vector.shape_cast %220 : vector<1x64x4xbf16> to vector<64x4xbf16>
    %c5_209 = arith.constant 5 : index
    %c0_210 = arith.constant 0 : index
    %c0_211 = arith.constant 0 : index
    %222 = vector.load %arg2[%c5_209, %c0_210, %c0_211] : memref<9x4x128xbf16, #tpu.memory_space<vmem>>, vector<1x4x128xbf16>
    %223 = vector.shape_cast %222 : vector<1x4x128xbf16> to vector<4x128xbf16>
    %cst_212 = arith.constant dense<0.000000e+00> : vector<64x128xf32>
    %224 = tpu.matmul %221, %223, %cst_212 {dimension_numbers = #tpu.dot_dimension_numbers<[1], [0], [0], [1], [0, 0, 1, 1], [], []>} : vector<64x4xbf16>, vector<4x128xbf16>, vector<64x128xf32> -> vector<64x128xf32>
    %225 = arith.addf %219, %224 : vector<64x128xf32>
    %c0_213 = arith.constant 0 : index
    %c260 = arith.constant 260 : index
    %c0_214 = arith.constant 0 : index
    %226 = vector.load %arg1[%c0_213, %c260, %c0_214] : memref<1x646x4xbf16, #tpu.memory_space<vmem>>, vector<1x64x4xbf16>
    %227 = vector.shape_cast %226 : vector<1x64x4xbf16> to vector<64x4xbf16>
    %c6_215 = arith.constant 6 : index
    %c0_216 = arith.constant 0 : index
    %c0_217 = arith.constant 0 : index
    %228 = vector.load %arg2[%c6_215, %c0_216, %c0_217] : memref<9x4x128xbf16, #tpu.memory_space<vmem>>, vector<1x4x128xbf16>
    %229 = vector.shape_cast %228 : vector<1x4x128xbf16> to vector<4x128xbf16>
    %cst_218 = arith.constant dense<0.000000e+00> : vector<64x128xf32>
    %230 = tpu.matmul %227, %229, %cst_218 {dimension_numbers = #tpu.dot_dimension_numbers<[1], [0], [0], [1], [0, 0, 1, 1], [], []>} : vector<64x4xbf16>, vector<4x128xbf16>, vector<64x128xf32> -> vector<64x128xf32>
    %231 = arith.addf %225, %230 : vector<64x128xf32>
    %c0_219 = arith.constant 0 : index
    %c261 = arith.constant 261 : index
    %c0_220 = arith.constant 0 : index
    %232 = vector.load %arg1[%c0_219, %c261, %c0_220] : memref<1x646x4xbf16, #tpu.memory_space<vmem>>, vector<1x64x4xbf16>
    %233 = vector.shape_cast %232 : vector<1x64x4xbf16> to vector<64x4xbf16>
    %c7_221 = arith.constant 7 : index
    %c0_222 = arith.constant 0 : index
    %c0_223 = arith.constant 0 : index
    %234 = vector.load %arg2[%c7_221, %c0_222, %c0_223] : memref<9x4x128xbf16, #tpu.memory_space<vmem>>, vector<1x4x128xbf16>
    %235 = vector.shape_cast %234 : vector<1x4x128xbf16> to vector<4x128xbf16>
    %cst_224 = arith.constant dense<0.000000e+00> : vector<64x128xf32>
    %236 = tpu.matmul %233, %235, %cst_224 {dimension_numbers = #tpu.dot_dimension_numbers<[1], [0], [0], [1], [0, 0, 1, 1], [], []>} : vector<64x4xbf16>, vector<4x128xbf16>, vector<64x128xf32> -> vector<64x128xf32>
    %237 = arith.addf %231, %236 : vector<64x128xf32>
    %c0_225 = arith.constant 0 : index
    %c262 = arith.constant 262 : index
    %c0_226 = arith.constant 0 : index
    %238 = vector.load %arg1[%c0_225, %c262, %c0_226] : memref<1x646x4xbf16, #tpu.memory_space<vmem>>, vector<1x64x4xbf16>
    %239 = vector.shape_cast %238 : vector<1x64x4xbf16> to vector<64x4xbf16>
    %c8_227 = arith.constant 8 : index
    %c0_228 = arith.constant 0 : index
    %c0_229 = arith.constant 0 : index
    %240 = vector.load %arg2[%c8_227, %c0_228, %c0_229] : memref<9x4x128xbf16, #tpu.memory_space<vmem>>, vector<1x4x128xbf16>
    %241 = vector.shape_cast %240 : vector<1x4x128xbf16> to vector<4x128xbf16>
    %cst_230 = arith.constant dense<0.000000e+00> : vector<64x128xf32>
    %242 = tpu.matmul %239, %241, %cst_230 {dimension_numbers = #tpu.dot_dimension_numbers<[1], [0], [0], [1], [0, 0, 1, 1], [], []>} : vector<64x4xbf16>, vector<4x128xbf16>, vector<64x128xf32> -> vector<64x128xf32>
    %243 = arith.addf %237, %242 : vector<64x128xf32>
    %c0_231 = arith.constant 0 : index
    %c0_232 = arith.constant 0 : index
    %244 = vector.load %arg3[%c0_231, %c0_232] : memref<1x128xf32, #tpu.memory_space<vmem>>, vector<1x128xf32>
    %245 = vector.broadcast %244 : vector<1x128xf32> to vector<64x128xf32>
    %246 = arith.addf %243, %245 : vector<64x128xf32>
    %cst_233 = arith.constant 0.000000e+00 : f32
    %247 = vector.broadcast %cst_233 : f32 to vector<64x128xf32>
    %248 = arith.maximumf %246, %247 : vector<64x128xf32>
    %c0_234 = arith.constant 0 : index
    %c192_235 = arith.constant 192 : index
    %c0_236 = arith.constant 0 : index
    %249 = vector.load %arg4[%c0_234, %c192_235, %c0_236] : memref<1x576x128xf32, #tpu.memory_space<vmem>>, vector<1x64x128xf32>
    %250 = vector.shape_cast %249 : vector<1x64x128xf32> to vector<64x128xf32>
    %251 = vector.shape_cast %248 : vector<64x128xf32> to vector<1x64x128xf32>
    tpu.vector_store %arg4[%c0_234, %c192_235, %c0_236], %251 {strides = array<i32>} : memref<1x576x128xf32, #tpu.memory_space<vmem>>, vector<1x64x128xf32>,
    %cst_237 = arith.constant 0.000000e+00 : f32
    %252 = vector.broadcast %cst_237 : f32 to vector<64x128xf32>
    %c0_238 = arith.constant 0 : index
    %c256 = arith.constant 256 : index
    %c0_239 = arith.constant 0 : index
    %253 = vector.load %arg1[%c0_238, %c256, %c0_239] : memref<1x646x4xbf16, #tpu.memory_space<vmem>>, vector<1x64x4xbf16>
    %254 = vector.shape_cast %253 : vector<1x64x4xbf16> to vector<64x4xbf16>
    %c0_240 = arith.constant 0 : index
    %c0_241 = arith.constant 0 : index
    %c0_242 = arith.constant 0 : index
    %255 = vector.load %arg2[%c0_240, %c0_241, %c0_242] : memref<9x4x128xbf16, #tpu.memory_space<vmem>>, vector<1x4x128xbf16>
    %256 = vector.shape_cast %255 : vector<1x4x128xbf16> to vector<4x128xbf16>
    %cst_243 = arith.constant dense<0.000000e+00> : vector<64x128xf32>
    %257 = tpu.matmul %254, %256, %cst_243 {dimension_numbers = #tpu.dot_dimension_numbers<[1], [0], [0], [1], [0, 0, 1, 1], [], []>} : vector<64x4xbf16>, vector<4x128xbf16>, vector<64x128xf32> -> vector<64x128xf32>
    %258 = arith.addf %252, %257 : vector<64x128xf32>
    %c0_244 = arith.constant 0 : index
    %c257 = arith.constant 257 : index
    %c0_245 = arith.constant 0 : index
    %259 = vector.load %arg1[%c0_244, %c257, %c0_245] : memref<1x646x4xbf16, #tpu.memory_space<vmem>>, vector<1x64x4xbf16>
    %260 = vector.shape_cast %259 : vector<1x64x4xbf16> to vector<64x4xbf16>
    %c1_246 = arith.constant 1 : index
    %c0_247 = arith.constant 0 : index
    %c0_248 = arith.constant 0 : index
    %261 = vector.load %arg2[%c1_246, %c0_247, %c0_248] : memref<9x4x128xbf16, #tpu.memory_space<vmem>>, vector<1x4x128xbf16>
    %262 = vector.shape_cast %261 : vector<1x4x128xbf16> to vector<4x128xbf16>
    %cst_249 = arith.constant dense<0.000000e+00> : vector<64x128xf32>
    %263 = tpu.matmul %260, %262, %cst_249 {dimension_numbers = #tpu.dot_dimension_numbers<[1], [0], [0], [1], [0, 0, 1, 1], [], []>} : vector<64x4xbf16>, vector<4x128xbf16>, vector<64x128xf32> -> vector<64x128xf32>
    %264 = arith.addf %258, %263 : vector<64x128xf32>
    %c0_250 = arith.constant 0 : index
    %c258 = arith.constant 258 : index
    %c0_251 = arith.constant 0 : index
    %265 = vector.load %arg1[%c0_250, %c258, %c0_251] : memref<1x646x4xbf16, #tpu.memory_space<vmem>>, vector<1x64x4xbf16>
    %266 = vector.shape_cast %265 : vector<1x64x4xbf16> to vector<64x4xbf16>
    %c2_252 = arith.constant 2 : index
    %c0_253 = arith.constant 0 : index
    %c0_254 = arith.constant 0 : index
    %267 = vector.load %arg2[%c2_252, %c0_253, %c0_254] : memref<9x4x128xbf16, #tpu.memory_space<vmem>>, vector<1x4x128xbf16>
    %268 = vector.shape_cast %267 : vector<1x4x128xbf16> to vector<4x128xbf16>
    %cst_255 = arith.constant dense<0.000000e+00> : vector<64x128xf32>
    %269 = tpu.matmul %266, %268, %cst_255 {dimension_numbers = #tpu.dot_dimension_numbers<[1], [0], [0], [1], [0, 0, 1, 1], [], []>} : vector<64x4xbf16>, vector<4x128xbf16>, vector<64x128xf32> -> vector<64x128xf32>
    %270 = arith.addf %264, %269 : vector<64x128xf32>
    %c0_256 = arith.constant 0 : index
    %c290 = arith.constant 290 : index
    %c0_257 = arith.constant 0 : index
    %271 = vector.load %arg1[%c0_256, %c290, %c0_257] : memref<1x646x4xbf16, #tpu.memory_space<vmem>>, vector<1x64x4xbf16>
    %272 = vector.shape_cast %271 : vector<1x64x4xbf16> to vector<64x4xbf16>
    %c3_258 = arith.constant 3 : index
    %c0_259 = arith.constant 0 : index
    %c0_260 = arith.constant 0 : index
    %273 = vector.load %arg2[%c3_258, %c0_259, %c0_260] : memref<9x4x128xbf16, #tpu.memory_space<vmem>>, vector<1x4x128xbf16>
    %274 = vector.shape_cast %273 : vector<1x4x128xbf16> to vector<4x128xbf16>
    %cst_261 = arith.constant dense<0.000000e+00> : vector<64x128xf32>
    %275 = tpu.matmul %272, %274, %cst_261 {dimension_numbers = #tpu.dot_dimension_numbers<[1], [0], [0], [1], [0, 0, 1, 1], [], []>} : vector<64x4xbf16>, vector<4x128xbf16>, vector<64x128xf32> -> vector<64x128xf32>
    %276 = arith.addf %270, %275 : vector<64x128xf32>
    %c0_262 = arith.constant 0 : index
    %c291 = arith.constant 291 : index
    %c0_263 = arith.constant 0 : index
    %277 = vector.load %arg1[%c0_262, %c291, %c0_263] : memref<1x646x4xbf16, #tpu.memory_space<vmem>>, vector<1x64x4xbf16>
    %278 = vector.shape_cast %277 : vector<1x64x4xbf16> to vector<64x4xbf16>
    %c4_264 = arith.constant 4 : index
    %c0_265 = arith.constant 0 : index
    %c0_266 = arith.constant 0 : index
    %279 = vector.load %arg2[%c4_264, %c0_265, %c0_266] : memref<9x4x128xbf16, #tpu.memory_space<vmem>>, vector<1x4x128xbf16>
    %280 = vector.shape_cast %279 : vector<1x4x128xbf16> to vector<4x128xbf16>
    %cst_267 = arith.constant dense<0.000000e+00> : vector<64x128xf32>
    %281 = tpu.matmul %278, %280, %cst_267 {dimension_numbers = #tpu.dot_dimension_numbers<[1], [0], [0], [1], [0, 0, 1, 1], [], []>} : vector<64x4xbf16>, vector<4x128xbf16>, vector<64x128xf32> -> vector<64x128xf32>
    %282 = arith.addf %276, %281 : vector<64x128xf32>
    %c0_268 = arith.constant 0 : index
    %c292 = arith.constant 292 : index
    %c0_269 = arith.constant 0 : index
    %283 = vector.load %arg1[%c0_268, %c292, %c0_269] : memref<1x646x4xbf16, #tpu.memory_space<vmem>>, vector<1x64x4xbf16>
    %284 = vector.shape_cast %283 : vector<1x64x4xbf16> to vector<64x4xbf16>
    %c5_270 = arith.constant 5 : index
    %c0_271 = arith.constant 0 : index
    %c0_272 = arith.constant 0 : index
    %285 = vector.load %arg2[%c5_270, %c0_271, %c0_272] : memref<9x4x128xbf16, #tpu.memory_space<vmem>>, vector<1x4x128xbf16>
    %286 = vector.shape_cast %285 : vector<1x4x128xbf16> to vector<4x128xbf16>
    %cst_273 = arith.constant dense<0.000000e+00> : vector<64x128xf32>
    %287 = tpu.matmul %284, %286, %cst_273 {dimension_numbers = #tpu.dot_dimension_numbers<[1], [0], [0], [1], [0, 0, 1, 1], [], []>} : vector<64x4xbf16>, vector<4x128xbf16>, vector<64x128xf32> -> vector<64x128xf32>
    %288 = arith.addf %282, %287 : vector<64x128xf32>
    %c0_274 = arith.constant 0 : index
    %c324 = arith.constant 324 : index
    %c0_275 = arith.constant 0 : index
    %289 = vector.load %arg1[%c0_274, %c324, %c0_275] : memref<1x646x4xbf16, #tpu.memory_space<vmem>>, vector<1x64x4xbf16>
    %290 = vector.shape_cast %289 : vector<1x64x4xbf16> to vector<64x4xbf16>
    %c6_276 = arith.constant 6 : index
    %c0_277 = arith.constant 0 : index
    %c0_278 = arith.constant 0 : index
    %291 = vector.load %arg2[%c6_276, %c0_277, %c0_278] : memref<9x4x128xbf16, #tpu.memory_space<vmem>>, vector<1x4x128xbf16>
    %292 = vector.shape_cast %291 : vector<1x4x128xbf16> to vector<4x128xbf16>
    %cst_279 = arith.constant dense<0.000000e+00> : vector<64x128xf32>
    %293 = tpu.matmul %290, %292, %cst_279 {dimension_numbers = #tpu.dot_dimension_numbers<[1], [0], [0], [1], [0, 0, 1, 1], [], []>} : vector<64x4xbf16>, vector<4x128xbf16>, vector<64x128xf32> -> vector<64x128xf32>
    %294 = arith.addf %288, %293 : vector<64x128xf32>
    %c0_280 = arith.constant 0 : index
    %c325 = arith.constant 325 : index
    %c0_281 = arith.constant 0 : index
    %295 = vector.load %arg1[%c0_280, %c325, %c0_281] : memref<1x646x4xbf16, #tpu.memory_space<vmem>>, vector<1x64x4xbf16>
    %296 = vector.shape_cast %295 : vector<1x64x4xbf16> to vector<64x4xbf16>
    %c7_282 = arith.constant 7 : index
    %c0_283 = arith.constant 0 : index
    %c0_284 = arith.constant 0 : index
    %297 = vector.load %arg2[%c7_282, %c0_283, %c0_284] : memref<9x4x128xbf16, #tpu.memory_space<vmem>>, vector<1x4x128xbf16>
    %298 = vector.shape_cast %297 : vector<1x4x128xbf16> to vector<4x128xbf16>
    %cst_285 = arith.constant dense<0.000000e+00> : vector<64x128xf32>
    %299 = tpu.matmul %296, %298, %cst_285 {dimension_numbers = #tpu.dot_dimension_numbers<[1], [0], [0], [1], [0, 0, 1, 1], [], []>} : vector<64x4xbf16>, vector<4x128xbf16>, vector<64x128xf32> -> vector<64x128xf32>
    %300 = arith.addf %294, %299 : vector<64x128xf32>
    %c0_286 = arith.constant 0 : index
    %c326 = arith.constant 326 : index
    %c0_287 = arith.constant 0 : index
    %301 = vector.load %arg1[%c0_286, %c326, %c0_287] : memref<1x646x4xbf16, #tpu.memory_space<vmem>>, vector<1x64x4xbf16>
    %302 = vector.shape_cast %301 : vector<1x64x4xbf16> to vector<64x4xbf16>
    %c8_288 = arith.constant 8 : index
    %c0_289 = arith.constant 0 : index
    %c0_290 = arith.constant 0 : index
    %303 = vector.load %arg2[%c8_288, %c0_289, %c0_290] : memref<9x4x128xbf16, #tpu.memory_space<vmem>>, vector<1x4x128xbf16>
    %304 = vector.shape_cast %303 : vector<1x4x128xbf16> to vector<4x128xbf16>
    %cst_291 = arith.constant dense<0.000000e+00> : vector<64x128xf32>
    %305 = tpu.matmul %302, %304, %cst_291 {dimension_numbers = #tpu.dot_dimension_numbers<[1], [0], [0], [1], [0, 0, 1, 1], [], []>} : vector<64x4xbf16>, vector<4x128xbf16>, vector<64x128xf32> -> vector<64x128xf32>
    %306 = arith.addf %300, %305 : vector<64x128xf32>
    %c0_292 = arith.constant 0 : index
    %c0_293 = arith.constant 0 : index
    %307 = vector.load %arg3[%c0_292, %c0_293] : memref<1x128xf32, #tpu.memory_space<vmem>>, vector<1x128xf32>
    %308 = vector.broadcast %307 : vector<1x128xf32> to vector<64x128xf32>
    %309 = arith.addf %306, %308 : vector<64x128xf32>
    %cst_294 = arith.constant 0.000000e+00 : f32
    %310 = vector.broadcast %cst_294 : f32 to vector<64x128xf32>
    %311 = arith.maximumf %309, %310 : vector<64x128xf32>
    %c0_295 = arith.constant 0 : index
    %c256_296 = arith.constant 256 : index
    %c0_297 = arith.constant 0 : index
    %312 = vector.load %arg4[%c0_295, %c256_296, %c0_297] : memref<1x576x128xf32, #tpu.memory_space<vmem>>, vector<1x64x128xf32>
    %313 = vector.shape_cast %312 : vector<1x64x128xf32> to vector<64x128xf32>
    %314 = vector.shape_cast %311 : vector<64x128xf32> to vector<1x64x128xf32>
    tpu.vector_store %arg4[%c0_295, %c256_296, %c0_297], %314 {strides = array<i32>} : memref<1x576x128xf32, #tpu.memory_space<vmem>>, vector<1x64x128xf32>,
    %cst_298 = arith.constant 0.000000e+00 : f32
    %315 = vector.broadcast %cst_298 : f32 to vector<64x128xf32>
    %c0_299 = arith.constant 0 : index
    %c320 = arith.constant 320 : index
    %c0_300 = arith.constant 0 : index
    %316 = vector.load %arg1[%c0_299, %c320, %c0_300] : memref<1x646x4xbf16, #tpu.memory_space<vmem>>, vector<1x64x4xbf16>
    %317 = vector.shape_cast %316 : vector<1x64x4xbf16> to vector<64x4xbf16>
    %c0_301 = arith.constant 0 : index
    %c0_302 = arith.constant 0 : index
    %c0_303 = arith.constant 0 : index
    %318 = vector.load %arg2[%c0_301, %c0_302, %c0_303] : memref<9x4x128xbf16, #tpu.memory_space<vmem>>, vector<1x4x128xbf16>
    %319 = vector.shape_cast %318 : vector<1x4x128xbf16> to vector<4x128xbf16>
    %cst_304 = arith.constant dense<0.000000e+00> : vector<64x128xf32>
    %320 = tpu.matmul %317, %319, %cst_304 {dimension_numbers = #tpu.dot_dimension_numbers<[1], [0], [0], [1], [0, 0, 1, 1], [], []>} : vector<64x4xbf16>, vector<4x128xbf16>, vector<64x128xf32> -> vector<64x128xf32>
    %321 = arith.addf %315, %320 : vector<64x128xf32>
    %c0_305 = arith.constant 0 : index
    %c321 = arith.constant 321 : index
    %c0_306 = arith.constant 0 : index
    %322 = vector.load %arg1[%c0_305, %c321, %c0_306] : memref<1x646x4xbf16, #tpu.memory_space<vmem>>, vector<1x64x4xbf16>
    %323 = vector.shape_cast %322 : vector<1x64x4xbf16> to vector<64x4xbf16>
    %c1_307 = arith.constant 1 : index
    %c0_308 = arith.constant 0 : index
    %c0_309 = arith.constant 0 : index
    %324 = vector.load %arg2[%c1_307, %c0_308, %c0_309] : memref<9x4x128xbf16, #tpu.memory_space<vmem>>, vector<1x4x128xbf16>
    %325 = vector.shape_cast %324 : vector<1x4x128xbf16> to vector<4x128xbf16>
    %cst_310 = arith.constant dense<0.000000e+00> : vector<64x128xf32>
    %326 = tpu.matmul %323, %325, %cst_310 {dimension_numbers = #tpu.dot_dimension_numbers<[1], [0], [0], [1], [0, 0, 1, 1], [], []>} : vector<64x4xbf16>, vector<4x128xbf16>, vector<64x128xf32> -> vector<64x128xf32>
    %327 = arith.addf %321, %326 : vector<64x128xf32>
    %c0_311 = arith.constant 0 : index
    %c322 = arith.constant 322 : index
    %c0_312 = arith.constant 0 : index
    %328 = vector.load %arg1[%c0_311, %c322, %c0_312] : memref<1x646x4xbf16, #tpu.memory_space<vmem>>, vector<1x64x4xbf16>
    %329 = vector.shape_cast %328 : vector<1x64x4xbf16> to vector<64x4xbf16>
    %c2_313 = arith.constant 2 : index
    %c0_314 = arith.constant 0 : index
    %c0_315 = arith.constant 0 : index
    %330 = vector.load %arg2[%c2_313, %c0_314, %c0_315] : memref<9x4x128xbf16, #tpu.memory_space<vmem>>, vector<1x4x128xbf16>
    %331 = vector.shape_cast %330 : vector<1x4x128xbf16> to vector<4x128xbf16>
    %cst_316 = arith.constant dense<0.000000e+00> : vector<64x128xf32>
    %332 = tpu.matmul %329, %331, %cst_316 {dimension_numbers = #tpu.dot_dimension_numbers<[1], [0], [0], [1], [0, 0, 1, 1], [], []>} : vector<64x4xbf16>, vector<4x128xbf16>, vector<64x128xf32> -> vector<64x128xf32>
    %333 = arith.addf %327, %332 : vector<64x128xf32>
    %c0_317 = arith.constant 0 : index
    %c354 = arith.constant 354 : index
    %c0_318 = arith.constant 0 : index
    %334 = vector.load %arg1[%c0_317, %c354, %c0_318] : memref<1x646x4xbf16, #tpu.memory_space<vmem>>, vector<1x64x4xbf16>
    %335 = vector.shape_cast %334 : vector<1x64x4xbf16> to vector<64x4xbf16>
    %c3_319 = arith.constant 3 : index
    %c0_320 = arith.constant 0 : index
    %c0_321 = arith.constant 0 : index
    %336 = vector.load %arg2[%c3_319, %c0_320, %c0_321] : memref<9x4x128xbf16, #tpu.memory_space<vmem>>, vector<1x4x128xbf16>
    %337 = vector.shape_cast %336 : vector<1x4x128xbf16> to vector<4x128xbf16>
    %cst_322 = arith.constant dense<0.000000e+00> : vector<64x128xf32>
    %338 = tpu.matmul %335, %337, %cst_322 {dimension_numbers = #tpu.dot_dimension_numbers<[1], [0], [0], [1], [0, 0, 1, 1], [], []>} : vector<64x4xbf16>, vector<4x128xbf16>, vector<64x128xf32> -> vector<64x128xf32>
    %339 = arith.addf %333, %338 : vector<64x128xf32>
    %c0_323 = arith.constant 0 : index
    %c355 = arith.constant 355 : index
    %c0_324 = arith.constant 0 : index
    %340 = vector.load %arg1[%c0_323, %c355, %c0_324] : memref<1x646x4xbf16, #tpu.memory_space<vmem>>, vector<1x64x4xbf16>
    %341 = vector.shape_cast %340 : vector<1x64x4xbf16> to vector<64x4xbf16>
    %c4_325 = arith.constant 4 : index
    %c0_326 = arith.constant 0 : index
    %c0_327 = arith.constant 0 : index
    %342 = vector.load %arg2[%c4_325, %c0_326, %c0_327] : memref<9x4x128xbf16, #tpu.memory_space<vmem>>, vector<1x4x128xbf16>
    %343 = vector.shape_cast %342 : vector<1x4x128xbf16> to vector<4x128xbf16>
    %cst_328 = arith.constant dense<0.000000e+00> : vector<64x128xf32>
    %344 = tpu.matmul %341, %343, %cst_328 {dimension_numbers = #tpu.dot_dimension_numbers<[1], [0], [0], [1], [0, 0, 1, 1], [], []>} : vector<64x4xbf16>, vector<4x128xbf16>, vector<64x128xf32> -> vector<64x128xf32>
    %345 = arith.addf %339, %344 : vector<64x128xf32>
    %c0_329 = arith.constant 0 : index
    %c356 = arith.constant 356 : index
    %c0_330 = arith.constant 0 : index
    %346 = vector.load %arg1[%c0_329, %c356, %c0_330] : memref<1x646x4xbf16, #tpu.memory_space<vmem>>, vector<1x64x4xbf16>
    %347 = vector.shape_cast %346 : vector<1x64x4xbf16> to vector<64x4xbf16>
    %c5_331 = arith.constant 5 : index
    %c0_332 = arith.constant 0 : index
    %c0_333 = arith.constant 0 : index
    %348 = vector.load %arg2[%c5_331, %c0_332, %c0_333] : memref<9x4x128xbf16, #tpu.memory_space<vmem>>, vector<1x4x128xbf16>
    %349 = vector.shape_cast %348 : vector<1x4x128xbf16> to vector<4x128xbf16>
    %cst_334 = arith.constant dense<0.000000e+00> : vector<64x128xf32>
    %350 = tpu.matmul %347, %349, %cst_334 {dimension_numbers = #tpu.dot_dimension_numbers<[1], [0], [0], [1], [0, 0, 1, 1], [], []>} : vector<64x4xbf16>, vector<4x128xbf16>, vector<64x128xf32> -> vector<64x128xf32>
    %351 = arith.addf %345, %350 : vector<64x128xf32>
    %c0_335 = arith.constant 0 : index
    %c388 = arith.constant 388 : index
    %c0_336 = arith.constant 0 : index
    %352 = vector.load %arg1[%c0_335, %c388, %c0_336] : memref<1x646x4xbf16, #tpu.memory_space<vmem>>, vector<1x64x4xbf16>
    %353 = vector.shape_cast %352 : vector<1x64x4xbf16> to vector<64x4xbf16>
    %c6_337 = arith.constant 6 : index
    %c0_338 = arith.constant 0 : index
    %c0_339 = arith.constant 0 : index
    %354 = vector.load %arg2[%c6_337, %c0_338, %c0_339] : memref<9x4x128xbf16, #tpu.memory_space<vmem>>, vector<1x4x128xbf16>
    %355 = vector.shape_cast %354 : vector<1x4x128xbf16> to vector<4x128xbf16>
    %cst_340 = arith.constant dense<0.000000e+00> : vector<64x128xf32>
    %356 = tpu.matmul %353, %355, %cst_340 {dimension_numbers = #tpu.dot_dimension_numbers<[1], [0], [0], [1], [0, 0, 1, 1], [], []>} : vector<64x4xbf16>, vector<4x128xbf16>, vector<64x128xf32> -> vector<64x128xf32>
    %357 = arith.addf %351, %356 : vector<64x128xf32>
    %c0_341 = arith.constant 0 : index
    %c389 = arith.constant 389 : index
    %c0_342 = arith.constant 0 : index
    %358 = vector.load %arg1[%c0_341, %c389, %c0_342] : memref<1x646x4xbf16, #tpu.memory_space<vmem>>, vector<1x64x4xbf16>
    %359 = vector.shape_cast %358 : vector<1x64x4xbf16> to vector<64x4xbf16>
    %c7_343 = arith.constant 7 : index
    %c0_344 = arith.constant 0 : index
    %c0_345 = arith.constant 0 : index
    %360 = vector.load %arg2[%c7_343, %c0_344, %c0_345] : memref<9x4x128xbf16, #tpu.memory_space<vmem>>, vector<1x4x128xbf16>
    %361 = vector.shape_cast %360 : vector<1x4x128xbf16> to vector<4x128xbf16>
    %cst_346 = arith.constant dense<0.000000e+00> : vector<64x128xf32>
    %362 = tpu.matmul %359, %361, %cst_346 {dimension_numbers = #tpu.dot_dimension_numbers<[1], [0], [0], [1], [0, 0, 1, 1], [], []>} : vector<64x4xbf16>, vector<4x128xbf16>, vector<64x128xf32> -> vector<64x128xf32>
    %363 = arith.addf %357, %362 : vector<64x128xf32>
    %c0_347 = arith.constant 0 : index
    %c390 = arith.constant 390 : index
    %c0_348 = arith.constant 0 : index
    %364 = vector.load %arg1[%c0_347, %c390, %c0_348] : memref<1x646x4xbf16, #tpu.memory_space<vmem>>, vector<1x64x4xbf16>
    %365 = vector.shape_cast %364 : vector<1x64x4xbf16> to vector<64x4xbf16>
    %c8_349 = arith.constant 8 : index
    %c0_350 = arith.constant 0 : index
    %c0_351 = arith.constant 0 : index
    %366 = vector.load %arg2[%c8_349, %c0_350, %c0_351] : memref<9x4x128xbf16, #tpu.memory_space<vmem>>, vector<1x4x128xbf16>
    %367 = vector.shape_cast %366 : vector<1x4x128xbf16> to vector<4x128xbf16>
    %cst_352 = arith.constant dense<0.000000e+00> : vector<64x128xf32>
    %368 = tpu.matmul %365, %367, %cst_352 {dimension_numbers = #tpu.dot_dimension_numbers<[1], [0], [0], [1], [0, 0, 1, 1], [], []>} : vector<64x4xbf16>, vector<4x128xbf16>, vector<64x128xf32> -> vector<64x128xf32>
    %369 = arith.addf %363, %368 : vector<64x128xf32>
    %c0_353 = arith.constant 0 : index
    %c0_354 = arith.constant 0 : index
    %370 = vector.load %arg3[%c0_353, %c0_354] : memref<1x128xf32, #tpu.memory_space<vmem>>, vector<1x128xf32>
    %371 = vector.broadcast %370 : vector<1x128xf32> to vector<64x128xf32>
    %372 = arith.addf %369, %371 : vector<64x128xf32>
    %cst_355 = arith.constant 0.000000e+00 : f32
    %373 = vector.broadcast %cst_355 : f32 to vector<64x128xf32>
    %374 = arith.maximumf %372, %373 : vector<64x128xf32>
    %c0_356 = arith.constant 0 : index
    %c320_357 = arith.constant 320 : index
    %c0_358 = arith.constant 0 : index
    %375 = vector.load %arg4[%c0_356, %c320_357, %c0_358] : memref<1x576x128xf32, #tpu.memory_space<vmem>>, vector<1x64x128xf32>
    %376 = vector.shape_cast %375 : vector<1x64x128xf32> to vector<64x128xf32>
    %377 = vector.shape_cast %374 : vector<64x128xf32> to vector<1x64x128xf32>
    tpu.vector_store %arg4[%c0_356, %c320_357, %c0_358], %377 {strides = array<i32>} : memref<1x576x128xf32, #tpu.memory_space<vmem>>, vector<1x64x128xf32>,
    %cst_359 = arith.constant 0.000000e+00 : f32
    %378 = vector.broadcast %cst_359 : f32 to vector<64x128xf32>
    %c0_360 = arith.constant 0 : index
    %c384 = arith.constant 384 : index
    %c0_361 = arith.constant 0 : index
    %379 = vector.load %arg1[%c0_360, %c384, %c0_361] : memref<1x646x4xbf16, #tpu.memory_space<vmem>>, vector<1x64x4xbf16>
    %380 = vector.shape_cast %379 : vector<1x64x4xbf16> to vector<64x4xbf16>
    %c0_362 = arith.constant 0 : index
    %c0_363 = arith.constant 0 : index
    %c0_364 = arith.constant 0 : index
    %381 = vector.load %arg2[%c0_362, %c0_363, %c0_364] : memref<9x4x128xbf16, #tpu.memory_space<vmem>>, vector<1x4x128xbf16>
    %382 = vector.shape_cast %381 : vector<1x4x128xbf16> to vector<4x128xbf16>
    %cst_365 = arith.constant dense<0.000000e+00> : vector<64x128xf32>
    %383 = tpu.matmul %380, %382, %cst_365 {dimension_numbers = #tpu.dot_dimension_numbers<[1], [0], [0], [1], [0, 0, 1, 1], [], []>} : vector<64x4xbf16>, vector<4x128xbf16>, vector<64x128xf32> -> vector<64x128xf32>
    %384 = arith.addf %378, %383 : vector<64x128xf32>
    %c0_366 = arith.constant 0 : index
    %c385 = arith.constant 385 : index
    %c0_367 = arith.constant 0 : index
    %385 = vector.load %arg1[%c0_366, %c385, %c0_367] : memref<1x646x4xbf16, #tpu.memory_space<vmem>>, vector<1x64x4xbf16>
    %386 = vector.shape_cast %385 : vector<1x64x4xbf16> to vector<64x4xbf16>
    %c1_368 = arith.constant 1 : index
    %c0_369 = arith.constant 0 : index
    %c0_370 = arith.constant 0 : index
    %387 = vector.load %arg2[%c1_368, %c0_369, %c0_370] : memref<9x4x128xbf16, #tpu.memory_space<vmem>>, vector<1x4x128xbf16>
    %388 = vector.shape_cast %387 : vector<1x4x128xbf16> to vector<4x128xbf16>
    %cst_371 = arith.constant dense<0.000000e+00> : vector<64x128xf32>
    %389 = tpu.matmul %386, %388, %cst_371 {dimension_numbers = #tpu.dot_dimension_numbers<[1], [0], [0], [1], [0, 0, 1, 1], [], []>} : vector<64x4xbf16>, vector<4x128xbf16>, vector<64x128xf32> -> vector<64x128xf32>
    %390 = arith.addf %384, %389 : vector<64x128xf32>
    %c0_372 = arith.constant 0 : index
    %c386 = arith.constant 386 : index
    %c0_373 = arith.constant 0 : index
    %391 = vector.load %arg1[%c0_372, %c386, %c0_373] : memref<1x646x4xbf16, #tpu.memory_space<vmem>>, vector<1x64x4xbf16>
    %392 = vector.shape_cast %391 : vector<1x64x4xbf16> to vector<64x4xbf16>
    %c2_374 = arith.constant 2 : index
    %c0_375 = arith.constant 0 : index
    %c0_376 = arith.constant 0 : index
    %393 = vector.load %arg2[%c2_374, %c0_375, %c0_376] : memref<9x4x128xbf16, #tpu.memory_space<vmem>>, vector<1x4x128xbf16>
    %394 = vector.shape_cast %393 : vector<1x4x128xbf16> to vector<4x128xbf16>
    %cst_377 = arith.constant dense<0.000000e+00> : vector<64x128xf32>
    %395 = tpu.matmul %392, %394, %cst_377 {dimension_numbers = #tpu.dot_dimension_numbers<[1], [0], [0], [1], [0, 0, 1, 1], [], []>} : vector<64x4xbf16>, vector<4x128xbf16>, vector<64x128xf32> -> vector<64x128xf32>
    %396 = arith.addf %390, %395 : vector<64x128xf32>
    %c0_378 = arith.constant 0 : index
    %c418 = arith.constant 418 : index
    %c0_379 = arith.constant 0 : index
    %397 = vector.load %arg1[%c0_378, %c418, %c0_379] : memref<1x646x4xbf16, #tpu.memory_space<vmem>>, vector<1x64x4xbf16>
    %398 = vector.shape_cast %397 : vector<1x64x4xbf16> to vector<64x4xbf16>
    %c3_380 = arith.constant 3 : index
    %c0_381 = arith.constant 0 : index
    %c0_382 = arith.constant 0 : index
    %399 = vector.load %arg2[%c3_380, %c0_381, %c0_382] : memref<9x4x128xbf16, #tpu.memory_space<vmem>>, vector<1x4x128xbf16>
    %400 = vector.shape_cast %399 : vector<1x4x128xbf16> to vector<4x128xbf16>
    %cst_383 = arith.constant dense<0.000000e+00> : vector<64x128xf32>
    %401 = tpu.matmul %398, %400, %cst_383 {dimension_numbers = #tpu.dot_dimension_numbers<[1], [0], [0], [1], [0, 0, 1, 1], [], []>} : vector<64x4xbf16>, vector<4x128xbf16>, vector<64x128xf32> -> vector<64x128xf32>
    %402 = arith.addf %396, %401 : vector<64x128xf32>
    %c0_384 = arith.constant 0 : index
    %c419 = arith.constant 419 : index
    %c0_385 = arith.constant 0 : index
    %403 = vector.load %arg1[%c0_384, %c419, %c0_385] : memref<1x646x4xbf16, #tpu.memory_space<vmem>>, vector<1x64x4xbf16>
    %404 = vector.shape_cast %403 : vector<1x64x4xbf16> to vector<64x4xbf16>
    %c4_386 = arith.constant 4 : index
    %c0_387 = arith.constant 0 : index
    %c0_388 = arith.constant 0 : index
    %405 = vector.load %arg2[%c4_386, %c0_387, %c0_388] : memref<9x4x128xbf16, #tpu.memory_space<vmem>>, vector<1x4x128xbf16>
    %406 = vector.shape_cast %405 : vector<1x4x128xbf16> to vector<4x128xbf16>
    %cst_389 = arith.constant dense<0.000000e+00> : vector<64x128xf32>
    %407 = tpu.matmul %404, %406, %cst_389 {dimension_numbers = #tpu.dot_dimension_numbers<[1], [0], [0], [1], [0, 0, 1, 1], [], []>} : vector<64x4xbf16>, vector<4x128xbf16>, vector<64x128xf32> -> vector<64x128xf32>
    %408 = arith.addf %402, %407 : vector<64x128xf32>
    %c0_390 = arith.constant 0 : index
    %c420 = arith.constant 420 : index
    %c0_391 = arith.constant 0 : index
    %409 = vector.load %arg1[%c0_390, %c420, %c0_391] : memref<1x646x4xbf16, #tpu.memory_space<vmem>>, vector<1x64x4xbf16>
    %410 = vector.shape_cast %409 : vector<1x64x4xbf16> to vector<64x4xbf16>
    %c5_392 = arith.constant 5 : index
    %c0_393 = arith.constant 0 : index
    %c0_394 = arith.constant 0 : index
    %411 = vector.load %arg2[%c5_392, %c0_393, %c0_394] : memref<9x4x128xbf16, #tpu.memory_space<vmem>>, vector<1x4x128xbf16>
    %412 = vector.shape_cast %411 : vector<1x4x128xbf16> to vector<4x128xbf16>
    %cst_395 = arith.constant dense<0.000000e+00> : vector<64x128xf32>
    %413 = tpu.matmul %410, %412, %cst_395 {dimension_numbers = #tpu.dot_dimension_numbers<[1], [0], [0], [1], [0, 0, 1, 1], [], []>} : vector<64x4xbf16>, vector<4x128xbf16>, vector<64x128xf32> -> vector<64x128xf32>
    %414 = arith.addf %408, %413 : vector<64x128xf32>
    %c0_396 = arith.constant 0 : index
    %c452 = arith.constant 452 : index
    %c0_397 = arith.constant 0 : index
    %415 = vector.load %arg1[%c0_396, %c452, %c0_397] : memref<1x646x4xbf16, #tpu.memory_space<vmem>>, vector<1x64x4xbf16>
    %416 = vector.shape_cast %415 : vector<1x64x4xbf16> to vector<64x4xbf16>
    %c6_398 = arith.constant 6 : index
    %c0_399 = arith.constant 0 : index
    %c0_400 = arith.constant 0 : index
    %417 = vector.load %arg2[%c6_398, %c0_399, %c0_400] : memref<9x4x128xbf16, #tpu.memory_space<vmem>>, vector<1x4x128xbf16>
    %418 = vector.shape_cast %417 : vector<1x4x128xbf16> to vector<4x128xbf16>
    %cst_401 = arith.constant dense<0.000000e+00> : vector<64x128xf32>
    %419 = tpu.matmul %416, %418, %cst_401 {dimension_numbers = #tpu.dot_dimension_numbers<[1], [0], [0], [1], [0, 0, 1, 1], [], []>} : vector<64x4xbf16>, vector<4x128xbf16>, vector<64x128xf32> -> vector<64x128xf32>
    %420 = arith.addf %414, %419 : vector<64x128xf32>
    %c0_402 = arith.constant 0 : index
    %c453 = arith.constant 453 : index
    %c0_403 = arith.constant 0 : index
    %421 = vector.load %arg1[%c0_402, %c453, %c0_403] : memref<1x646x4xbf16, #tpu.memory_space<vmem>>, vector<1x64x4xbf16>
    %422 = vector.shape_cast %421 : vector<1x64x4xbf16> to vector<64x4xbf16>
    %c7_404 = arith.constant 7 : index
    %c0_405 = arith.constant 0 : index
    %c0_406 = arith.constant 0 : index
    %423 = vector.load %arg2[%c7_404, %c0_405, %c0_406] : memref<9x4x128xbf16, #tpu.memory_space<vmem>>, vector<1x4x128xbf16>
    %424 = vector.shape_cast %423 : vector<1x4x128xbf16> to vector<4x128xbf16>
    %cst_407 = arith.constant dense<0.000000e+00> : vector<64x128xf32>
    %425 = tpu.matmul %422, %424, %cst_407 {dimension_numbers = #tpu.dot_dimension_numbers<[1], [0], [0], [1], [0, 0, 1, 1], [], []>} : vector<64x4xbf16>, vector<4x128xbf16>, vector<64x128xf32> -> vector<64x128xf32>
    %426 = arith.addf %420, %425 : vector<64x128xf32>
    %c0_408 = arith.constant 0 : index
    %c454 = arith.constant 454 : index
    %c0_409 = arith.constant 0 : index
    %427 = vector.load %arg1[%c0_408, %c454, %c0_409] : memref<1x646x4xbf16, #tpu.memory_space<vmem>>, vector<1x64x4xbf16>
    %428 = vector.shape_cast %427 : vector<1x64x4xbf16> to vector<64x4xbf16>
    %c8_410 = arith.constant 8 : index
    %c0_411 = arith.constant 0 : index
    %c0_412 = arith.constant 0 : index
    %429 = vector.load %arg2[%c8_410, %c0_411, %c0_412] : memref<9x4x128xbf16, #tpu.memory_space<vmem>>, vector<1x4x128xbf16>
    %430 = vector.shape_cast %429 : vector<1x4x128xbf16> to vector<4x128xbf16>
    %cst_413 = arith.constant dense<0.000000e+00> : vector<64x128xf32>
    %431 = tpu.matmul %428, %430, %cst_413 {dimension_numbers = #tpu.dot_dimension_numbers<[1], [0], [0], [1], [0, 0, 1, 1], [], []>} : vector<64x4xbf16>, vector<4x128xbf16>, vector<64x128xf32> -> vector<64x128xf32>
    %432 = arith.addf %426, %431 : vector<64x128xf32>
    %c0_414 = arith.constant 0 : index
    %c0_415 = arith.constant 0 : index
    %433 = vector.load %arg3[%c0_414, %c0_415] : memref<1x128xf32, #tpu.memory_space<vmem>>, vector<1x128xf32>
    %434 = vector.broadcast %433 : vector<1x128xf32> to vector<64x128xf32>
    %435 = arith.addf %432, %434 : vector<64x128xf32>
    %cst_416 = arith.constant 0.000000e+00 : f32
    %436 = vector.broadcast %cst_416 : f32 to vector<64x128xf32>
    %437 = arith.maximumf %435, %436 : vector<64x128xf32>
    %c0_417 = arith.constant 0 : index
    %c384_418 = arith.constant 384 : index
    %c0_419 = arith.constant 0 : index
    %438 = vector.load %arg4[%c0_417, %c384_418, %c0_419] : memref<1x576x128xf32, #tpu.memory_space<vmem>>, vector<1x64x128xf32>
    %439 = vector.shape_cast %438 : vector<1x64x128xf32> to vector<64x128xf32>
    %440 = vector.shape_cast %437 : vector<64x128xf32> to vector<1x64x128xf32>
    tpu.vector_store %arg4[%c0_417, %c384_418, %c0_419], %440 {strides = array<i32>} : memref<1x576x128xf32, #tpu.memory_space<vmem>>, vector<1x64x128xf32>,
    %cst_420 = arith.constant 0.000000e+00 : f32
    %441 = vector.broadcast %cst_420 : f32 to vector<64x128xf32>
    %c0_421 = arith.constant 0 : index
    %c448 = arith.constant 448 : index
    %c0_422 = arith.constant 0 : index
    %442 = vector.load %arg1[%c0_421, %c448, %c0_422] : memref<1x646x4xbf16, #tpu.memory_space<vmem>>, vector<1x64x4xbf16>
    %443 = vector.shape_cast %442 : vector<1x64x4xbf16> to vector<64x4xbf16>
    %c0_423 = arith.constant 0 : index
    %c0_424 = arith.constant 0 : index
    %c0_425 = arith.constant 0 : index
    %444 = vector.load %arg2[%c0_423, %c0_424, %c0_425] : memref<9x4x128xbf16, #tpu.memory_space<vmem>>, vector<1x4x128xbf16>
    %445 = vector.shape_cast %444 : vector<1x4x128xbf16> to vector<4x128xbf16>
    %cst_426 = arith.constant dense<0.000000e+00> : vector<64x128xf32>
    %446 = tpu.matmul %443, %445, %cst_426 {dimension_numbers = #tpu.dot_dimension_numbers<[1], [0], [0], [1], [0, 0, 1, 1], [], []>} : vector<64x4xbf16>, vector<4x128xbf16>, vector<64x128xf32> -> vector<64x128xf32>
    %447 = arith.addf %441, %446 : vector<64x128xf32>
    %c0_427 = arith.constant 0 : index
    %c449 = arith.constant 449 : index
    %c0_428 = arith.constant 0 : index
    %448 = vector.load %arg1[%c0_427, %c449, %c0_428] : memref<1x646x4xbf16, #tpu.memory_space<vmem>>, vector<1x64x4xbf16>
    %449 = vector.shape_cast %448 : vector<1x64x4xbf16> to vector<64x4xbf16>
    %c1_429 = arith.constant 1 : index
    %c0_430 = arith.constant 0 : index
    %c0_431 = arith.constant 0 : index
    %450 = vector.load %arg2[%c1_429, %c0_430, %c0_431] : memref<9x4x128xbf16, #tpu.memory_space<vmem>>, vector<1x4x128xbf16>
    %451 = vector.shape_cast %450 : vector<1x4x128xbf16> to vector<4x128xbf16>
    %cst_432 = arith.constant dense<0.000000e+00> : vector<64x128xf32>
    %452 = tpu.matmul %449, %451, %cst_432 {dimension_numbers = #tpu.dot_dimension_numbers<[1], [0], [0], [1], [0, 0, 1, 1], [], []>} : vector<64x4xbf16>, vector<4x128xbf16>, vector<64x128xf32> -> vector<64x128xf32>
    %453 = arith.addf %447, %452 : vector<64x128xf32>
    %c0_433 = arith.constant 0 : index
    %c450 = arith.constant 450 : index
    %c0_434 = arith.constant 0 : index
    %454 = vector.load %arg1[%c0_433, %c450, %c0_434] : memref<1x646x4xbf16, #tpu.memory_space<vmem>>, vector<1x64x4xbf16>
    %455 = vector.shape_cast %454 : vector<1x64x4xbf16> to vector<64x4xbf16>
    %c2_435 = arith.constant 2 : index
    %c0_436 = arith.constant 0 : index
    %c0_437 = arith.constant 0 : index
    %456 = vector.load %arg2[%c2_435, %c0_436, %c0_437] : memref<9x4x128xbf16, #tpu.memory_space<vmem>>, vector<1x4x128xbf16>
    %457 = vector.shape_cast %456 : vector<1x4x128xbf16> to vector<4x128xbf16>
    %cst_438 = arith.constant dense<0.000000e+00> : vector<64x128xf32>
    %458 = tpu.matmul %455, %457, %cst_438 {dimension_numbers = #tpu.dot_dimension_numbers<[1], [0], [0], [1], [0, 0, 1, 1], [], []>} : vector<64x4xbf16>, vector<4x128xbf16>, vector<64x128xf32> -> vector<64x128xf32>
    %459 = arith.addf %453, %458 : vector<64x128xf32>
    %c0_439 = arith.constant 0 : index
    %c482 = arith.constant 482 : index
    %c0_440 = arith.constant 0 : index
    %460 = vector.load %arg1[%c0_439, %c482, %c0_440] : memref<1x646x4xbf16, #tpu.memory_space<vmem>>, vector<1x64x4xbf16>
    %461 = vector.shape_cast %460 : vector<1x64x4xbf16> to vector<64x4xbf16>
    %c3_441 = arith.constant 3 : index
    %c0_442 = arith.constant 0 : index
    %c0_443 = arith.constant 0 : index
    %462 = vector.load %arg2[%c3_441, %c0_442, %c0_443] : memref<9x4x128xbf16, #tpu.memory_space<vmem>>, vector<1x4x128xbf16>
    %463 = vector.shape_cast %462 : vector<1x4x128xbf16> to vector<4x128xbf16>
    %cst_444 = arith.constant dense<0.000000e+00> : vector<64x128xf32>
    %464 = tpu.matmul %461, %463, %cst_444 {dimension_numbers = #tpu.dot_dimension_numbers<[1], [0], [0], [1], [0, 0, 1, 1], [], []>} : vector<64x4xbf16>, vector<4x128xbf16>, vector<64x128xf32> -> vector<64x128xf32>
    %465 = arith.addf %459, %464 : vector<64x128xf32>
    %c0_445 = arith.constant 0 : index
    %c483 = arith.constant 483 : index
    %c0_446 = arith.constant 0 : index
    %466 = vector.load %arg1[%c0_445, %c483, %c0_446] : memref<1x646x4xbf16, #tpu.memory_space<vmem>>, vector<1x64x4xbf16>
    %467 = vector.shape_cast %466 : vector<1x64x4xbf16> to vector<64x4xbf16>
    %c4_447 = arith.constant 4 : index
    %c0_448 = arith.constant 0 : index
    %c0_449 = arith.constant 0 : index
    %468 = vector.load %arg2[%c4_447, %c0_448, %c0_449] : memref<9x4x128xbf16, #tpu.memory_space<vmem>>, vector<1x4x128xbf16>
    %469 = vector.shape_cast %468 : vector<1x4x128xbf16> to vector<4x128xbf16>
    %cst_450 = arith.constant dense<0.000000e+00> : vector<64x128xf32>
    %470 = tpu.matmul %467, %469, %cst_450 {dimension_numbers = #tpu.dot_dimension_numbers<[1], [0], [0], [1], [0, 0, 1, 1], [], []>} : vector<64x4xbf16>, vector<4x128xbf16>, vector<64x128xf32> -> vector<64x128xf32>
    %471 = arith.addf %465, %470 : vector<64x128xf32>
    %c0_451 = arith.constant 0 : index
    %c484 = arith.constant 484 : index
    %c0_452 = arith.constant 0 : index
    %472 = vector.load %arg1[%c0_451, %c484, %c0_452] : memref<1x646x4xbf16, #tpu.memory_space<vmem>>, vector<1x64x4xbf16>
    %473 = vector.shape_cast %472 : vector<1x64x4xbf16> to vector<64x4xbf16>
    %c5_453 = arith.constant 5 : index
    %c0_454 = arith.constant 0 : index
    %c0_455 = arith.constant 0 : index
    %474 = vector.load %arg2[%c5_453, %c0_454, %c0_455] : memref<9x4x128xbf16, #tpu.memory_space<vmem>>, vector<1x4x128xbf16>
    %475 = vector.shape_cast %474 : vector<1x4x128xbf16> to vector<4x128xbf16>
    %cst_456 = arith.constant dense<0.000000e+00> : vector<64x128xf32>
    %476 = tpu.matmul %473, %475, %cst_456 {dimension_numbers = #tpu.dot_dimension_numbers<[1], [0], [0], [1], [0, 0, 1, 1], [], []>} : vector<64x4xbf16>, vector<4x128xbf16>, vector<64x128xf32> -> vector<64x128xf32>
    %477 = arith.addf %471, %476 : vector<64x128xf32>
    %c0_457 = arith.constant 0 : index
    %c516 = arith.constant 516 : index
    %c0_458 = arith.constant 0 : index
    %478 = vector.load %arg1[%c0_457, %c516, %c0_458] : memref<1x646x4xbf16, #tpu.memory_space<vmem>>, vector<1x64x4xbf16>
    %479 = vector.shape_cast %478 : vector<1x64x4xbf16> to vector<64x4xbf16>
    %c6_459 = arith.constant 6 : index
    %c0_460 = arith.constant 0 : index
    %c0_461 = arith.constant 0 : index
    %480 = vector.load %arg2[%c6_459, %c0_460, %c0_461] : memref<9x4x128xbf16, #tpu.memory_space<vmem>>, vector<1x4x128xbf16>
    %481 = vector.shape_cast %480 : vector<1x4x128xbf16> to vector<4x128xbf16>
    %cst_462 = arith.constant dense<0.000000e+00> : vector<64x128xf32>
    %482 = tpu.matmul %479, %481, %cst_462 {dimension_numbers = #tpu.dot_dimension_numbers<[1], [0], [0], [1], [0, 0, 1, 1], [], []>} : vector<64x4xbf16>, vector<4x128xbf16>, vector<64x128xf32> -> vector<64x128xf32>
    %483 = arith.addf %477, %482 : vector<64x128xf32>
    %c0_463 = arith.constant 0 : index
    %c517 = arith.constant 517 : index
    %c0_464 = arith.constant 0 : index
    %484 = vector.load %arg1[%c0_463, %c517, %c0_464] : memref<1x646x4xbf16, #tpu.memory_space<vmem>>, vector<1x64x4xbf16>
    %485 = vector.shape_cast %484 : vector<1x64x4xbf16> to vector<64x4xbf16>
    %c7_465 = arith.constant 7 : index
    %c0_466 = arith.constant 0 : index
    %c0_467 = arith.constant 0 : index
    %486 = vector.load %arg2[%c7_465, %c0_466, %c0_467] : memref<9x4x128xbf16, #tpu.memory_space<vmem>>, vector<1x4x128xbf16>
    %487 = vector.shape_cast %486 : vector<1x4x128xbf16> to vector<4x128xbf16>
    %cst_468 = arith.constant dense<0.000000e+00> : vector<64x128xf32>
    %488 = tpu.matmul %485, %487, %cst_468 {dimension_numbers = #tpu.dot_dimension_numbers<[1], [0], [0], [1], [0, 0, 1, 1], [], []>} : vector<64x4xbf16>, vector<4x128xbf16>, vector<64x128xf32> -> vector<64x128xf32>
    %489 = arith.addf %483, %488 : vector<64x128xf32>
    %c0_469 = arith.constant 0 : index
    %c518 = arith.constant 518 : index
    %c0_470 = arith.constant 0 : index
    %490 = vector.load %arg1[%c0_469, %c518, %c0_470] : memref<1x646x4xbf16, #tpu.memory_space<vmem>>, vector<1x64x4xbf16>
    %491 = vector.shape_cast %490 : vector<1x64x4xbf16> to vector<64x4xbf16>
    %c8_471 = arith.constant 8 : index
    %c0_472 = arith.constant 0 : index
    %c0_473 = arith.constant 0 : index
    %492 = vector.load %arg2[%c8_471, %c0_472, %c0_473] : memref<9x4x128xbf16, #tpu.memory_space<vmem>>, vector<1x4x128xbf16>
    %493 = vector.shape_cast %492 : vector<1x4x128xbf16> to vector<4x128xbf16>
    %cst_474 = arith.constant dense<0.000000e+00> : vector<64x128xf32>
    %494 = tpu.matmul %491, %493, %cst_474 {dimension_numbers = #tpu.dot_dimension_numbers<[1], [0], [0], [1], [0, 0, 1, 1], [], []>} : vector<64x4xbf16>, vector<4x128xbf16>, vector<64x128xf32> -> vector<64x128xf32>
    %495 = arith.addf %489, %494 : vector<64x128xf32>
    %c0_475 = arith.constant 0 : index
    %c0_476 = arith.constant 0 : index
    %496 = vector.load %arg3[%c0_475, %c0_476] : memref<1x128xf32, #tpu.memory_space<vmem>>, vector<1x128xf32>
    %497 = vector.broadcast %496 : vector<1x128xf32> to vector<64x128xf32>
    %498 = arith.addf %495, %497 : vector<64x128xf32>
    %cst_477 = arith.constant 0.000000e+00 : f32
    %499 = vector.broadcast %cst_477 : f32 to vector<64x128xf32>
    %500 = arith.maximumf %498, %499 : vector<64x128xf32>
    %c0_478 = arith.constant 0 : index
    %c448_479 = arith.constant 448 : index
    %c0_480 = arith.constant 0 : index
    %501 = vector.load %arg4[%c0_478, %c448_479, %c0_480] : memref<1x576x128xf32, #tpu.memory_space<vmem>>, vector<1x64x128xf32>
    %502 = vector.shape_cast %501 : vector<1x64x128xf32> to vector<64x128xf32>
    %503 = vector.shape_cast %500 : vector<64x128xf32> to vector<1x64x128xf32>
    tpu.vector_store %arg4[%c0_478, %c448_479, %c0_480], %503 {strides = array<i32>} : memref<1x576x128xf32, #tpu.memory_space<vmem>>, vector<1x64x128xf32>,
    %cst_481 = arith.constant 0.000000e+00 : f32
    %504 = vector.broadcast %cst_481 : f32 to vector<64x128xf32>
    %c0_482 = arith.constant 0 : index
    %c512 = arith.constant 512 : index
    %c0_483 = arith.constant 0 : index
    %505 = vector.load %arg1[%c0_482, %c512, %c0_483] : memref<1x646x4xbf16, #tpu.memory_space<vmem>>, vector<1x64x4xbf16>
    %506 = vector.shape_cast %505 : vector<1x64x4xbf16> to vector<64x4xbf16>
    %c0_484 = arith.constant 0 : index
    %c0_485 = arith.constant 0 : index
    %c0_486 = arith.constant 0 : index
    %507 = vector.load %arg2[%c0_484, %c0_485, %c0_486] : memref<9x4x128xbf16, #tpu.memory_space<vmem>>, vector<1x4x128xbf16>
    %508 = vector.shape_cast %507 : vector<1x4x128xbf16> to vector<4x128xbf16>
    %cst_487 = arith.constant dense<0.000000e+00> : vector<64x128xf32>
    %509 = tpu.matmul %506, %508, %cst_487 {dimension_numbers = #tpu.dot_dimension_numbers<[1], [0], [0], [1], [0, 0, 1, 1], [], []>} : vector<64x4xbf16>, vector<4x128xbf16>, vector<64x128xf32> -> vector<64x128xf32>
    %510 = arith.addf %504, %509 : vector<64x128xf32>
    %c0_488 = arith.constant 0 : index
    %c513 = arith.constant 513 : index
    %c0_489 = arith.constant 0 : index
    %511 = vector.load %arg1[%c0_488, %c513, %c0_489] : memref<1x646x4xbf16, #tpu.memory_space<vmem>>, vector<1x64x4xbf16>
    %512 = vector.shape_cast %511 : vector<1x64x4xbf16> to vector<64x4xbf16>
    %c1_490 = arith.constant 1 : index
    %c0_491 = arith.constant 0 : index
    %c0_492 = arith.constant 0 : index
    %513 = vector.load %arg2[%c1_490, %c0_491, %c0_492] : memref<9x4x128xbf16, #tpu.memory_space<vmem>>, vector<1x4x128xbf16>
    %514 = vector.shape_cast %513 : vector<1x4x128xbf16> to vector<4x128xbf16>
    %cst_493 = arith.constant dense<0.000000e+00> : vector<64x128xf32>
    %515 = tpu.matmul %512, %514, %cst_493 {dimension_numbers = #tpu.dot_dimension_numbers<[1], [0], [0], [1], [0, 0, 1, 1], [], []>} : vector<64x4xbf16>, vector<4x128xbf16>, vector<64x128xf32> -> vector<64x128xf32>
    %516 = arith.addf %510, %515 : vector<64x128xf32>
    %c0_494 = arith.constant 0 : index
    %c514 = arith.constant 514 : index
    %c0_495 = arith.constant 0 : index
    %517 = vector.load %arg1[%c0_494, %c514, %c0_495] : memref<1x646x4xbf16, #tpu.memory_space<vmem>>, vector<1x64x4xbf16>
    %518 = vector.shape_cast %517 : vector<1x64x4xbf16> to vector<64x4xbf16>
    %c2_496 = arith.constant 2 : index
    %c0_497 = arith.constant 0 : index
    %c0_498 = arith.constant 0 : index
    %519 = vector.load %arg2[%c2_496, %c0_497, %c0_498] : memref<9x4x128xbf16, #tpu.memory_space<vmem>>, vector<1x4x128xbf16>
    %520 = vector.shape_cast %519 : vector<1x4x128xbf16> to vector<4x128xbf16>
    %cst_499 = arith.constant dense<0.000000e+00> : vector<64x128xf32>
    %521 = tpu.matmul %518, %520, %cst_499 {dimension_numbers = #tpu.dot_dimension_numbers<[1], [0], [0], [1], [0, 0, 1, 1], [], []>} : vector<64x4xbf16>, vector<4x128xbf16>, vector<64x128xf32> -> vector<64x128xf32>
    %522 = arith.addf %516, %521 : vector<64x128xf32>
    %c0_500 = arith.constant 0 : index
    %c546 = arith.constant 546 : index
    %c0_501 = arith.constant 0 : index
    %523 = vector.load %arg1[%c0_500, %c546, %c0_501] : memref<1x646x4xbf16, #tpu.memory_space<vmem>>, vector<1x64x4xbf16>
    %524 = vector.shape_cast %523 : vector<1x64x4xbf16> to vector<64x4xbf16>
    %c3_502 = arith.constant 3 : index
    %c0_503 = arith.constant 0 : index
    %c0_504 = arith.constant 0 : index
    %525 = vector.load %arg2[%c3_502, %c0_503, %c0_504] : memref<9x4x128xbf16, #tpu.memory_space<vmem>>, vector<1x4x128xbf16>
    %526 = vector.shape_cast %525 : vector<1x4x128xbf16> to vector<4x128xbf16>
    %cst_505 = arith.constant dense<0.000000e+00> : vector<64x128xf32>
    %527 = tpu.matmul %524, %526, %cst_505 {dimension_numbers = #tpu.dot_dimension_numbers<[1], [0], [0], [1], [0, 0, 1, 1], [], []>} : vector<64x4xbf16>, vector<4x128xbf16>, vector<64x128xf32> -> vector<64x128xf32>
    %528 = arith.addf %522, %527 : vector<64x128xf32>
    %c0_506 = arith.constant 0 : index
    %c547 = arith.constant 547 : index
    %c0_507 = arith.constant 0 : index
    %529 = vector.load %arg1[%c0_506, %c547, %c0_507] : memref<1x646x4xbf16, #tpu.memory_space<vmem>>, vector<1x64x4xbf16>
    %530 = vector.shape_cast %529 : vector<1x64x4xbf16> to vector<64x4xbf16>
    %c4_508 = arith.constant 4 : index
    %c0_509 = arith.constant 0 : index
    %c0_510 = arith.constant 0 : index
    %531 = vector.load %arg2[%c4_508, %c0_509, %c0_510] : memref<9x4x128xbf16, #tpu.memory_space<vmem>>, vector<1x4x128xbf16>
    %532 = vector.shape_cast %531 : vector<1x4x128xbf16> to vector<4x128xbf16>
    %cst_511 = arith.constant dense<0.000000e+00> : vector<64x128xf32>
    %533 = tpu.matmul %530, %532, %cst_511 {dimension_numbers = #tpu.dot_dimension_numbers<[1], [0], [0], [1], [0, 0, 1, 1], [], []>} : vector<64x4xbf16>, vector<4x128xbf16>, vector<64x128xf32> -> vector<64x128xf32>
    %534 = arith.addf %528, %533 : vector<64x128xf32>
    %c0_512 = arith.constant 0 : index
    %c548 = arith.constant 548 : index
    %c0_513 = arith.constant 0 : index
    %535 = vector.load %arg1[%c0_512, %c548, %c0_513] : memref<1x646x4xbf16, #tpu.memory_space<vmem>>, vector<1x64x4xbf16>
    %536 = vector.shape_cast %535 : vector<1x64x4xbf16> to vector<64x4xbf16>
    %c5_514 = arith.constant 5 : index
    %c0_515 = arith.constant 0 : index
    %c0_516 = arith.constant 0 : index
    %537 = vector.load %arg2[%c5_514, %c0_515, %c0_516] : memref<9x4x128xbf16, #tpu.memory_space<vmem>>, vector<1x4x128xbf16>
    %538 = vector.shape_cast %537 : vector<1x4x128xbf16> to vector<4x128xbf16>
    %cst_517 = arith.constant dense<0.000000e+00> : vector<64x128xf32>
    %539 = tpu.matmul %536, %538, %cst_517 {dimension_numbers = #tpu.dot_dimension_numbers<[1], [0], [0], [1], [0, 0, 1, 1], [], []>} : vector<64x4xbf16>, vector<4x128xbf16>, vector<64x128xf32> -> vector<64x128xf32>
    %540 = arith.addf %534, %539 : vector<64x128xf32>
    %c0_518 = arith.constant 0 : index
    %c580 = arith.constant 580 : index
    %c0_519 = arith.constant 0 : index
    %541 = vector.load %arg1[%c0_518, %c580, %c0_519] : memref<1x646x4xbf16, #tpu.memory_space<vmem>>, vector<1x64x4xbf16>
    %542 = vector.shape_cast %541 : vector<1x64x4xbf16> to vector<64x4xbf16>
    %c6_520 = arith.constant 6 : index
    %c0_521 = arith.constant 0 : index
    %c0_522 = arith.constant 0 : index
    %543 = vector.load %arg2[%c6_520, %c0_521, %c0_522] : memref<9x4x128xbf16, #tpu.memory_space<vmem>>, vector<1x4x128xbf16>
    %544 = vector.shape_cast %543 : vector<1x4x128xbf16> to vector<4x128xbf16>
    %cst_523 = arith.constant dense<0.000000e+00> : vector<64x128xf32>
    %545 = tpu.matmul %542, %544, %cst_523 {dimension_numbers = #tpu.dot_dimension_numbers<[1], [0], [0], [1], [0, 0, 1, 1], [], []>} : vector<64x4xbf16>, vector<4x128xbf16>, vector<64x128xf32> -> vector<64x128xf32>
    %546 = arith.addf %540, %545 : vector<64x128xf32>
    %c0_524 = arith.constant 0 : index
    %c581 = arith.constant 581 : index
    %c0_525 = arith.constant 0 : index
    %547 = vector.load %arg1[%c0_524, %c581, %c0_525] : memref<1x646x4xbf16, #tpu.memory_space<vmem>>, vector<1x64x4xbf16>
    %548 = vector.shape_cast %547 : vector<1x64x4xbf16> to vector<64x4xbf16>
    %c7_526 = arith.constant 7 : index
    %c0_527 = arith.constant 0 : index
    %c0_528 = arith.constant 0 : index
    %549 = vector.load %arg2[%c7_526, %c0_527, %c0_528] : memref<9x4x128xbf16, #tpu.memory_space<vmem>>, vector<1x4x128xbf16>
    %550 = vector.shape_cast %549 : vector<1x4x128xbf16> to vector<4x128xbf16>
    %cst_529 = arith.constant dense<0.000000e+00> : vector<64x128xf32>
    %551 = tpu.matmul %548, %550, %cst_529 {dimension_numbers = #tpu.dot_dimension_numbers<[1], [0], [0], [1], [0, 0, 1, 1], [], []>} : vector<64x4xbf16>, vector<4x128xbf16>, vector<64x128xf32> -> vector<64x128xf32>
    %552 = arith.addf %546, %551 : vector<64x128xf32>
    %c0_530 = arith.constant 0 : index
    %c582 = arith.constant 582 : index
    %c0_531 = arith.constant 0 : index
    %553 = vector.load %arg1[%c0_530, %c582, %c0_531] : memref<1x646x4xbf16, #tpu.memory_space<vmem>>, vector<1x64x4xbf16>
    %554 = vector.shape_cast %553 : vector<1x64x4xbf16> to vector<64x4xbf16>
    %c8_532 = arith.constant 8 : index
    %c0_533 = arith.constant 0 : index
    %c0_534 = arith.constant 0 : index
    %555 = vector.load %arg2[%c8_532, %c0_533, %c0_534] : memref<9x4x128xbf16, #tpu.memory_space<vmem>>, vector<1x4x128xbf16>
    %556 = vector.shape_cast %555 : vector<1x4x128xbf16> to vector<4x128xbf16>
    %cst_535 = arith.constant dense<0.000000e+00> : vector<64x128xf32>
    %557 = tpu.matmul %554, %556, %cst_535 {dimension_numbers = #tpu.dot_dimension_numbers<[1], [0], [0], [1], [0, 0, 1, 1], [], []>} : vector<64x4xbf16>, vector<4x128xbf16>, vector<64x128xf32> -> vector<64x128xf32>
    %558 = arith.addf %552, %557 : vector<64x128xf32>
    %c0_536 = arith.constant 0 : index
    %c0_537 = arith.constant 0 : index
    %559 = vector.load %arg3[%c0_536, %c0_537] : memref<1x128xf32, #tpu.memory_space<vmem>>, vector<1x128xf32>
    %560 = vector.broadcast %559 : vector<1x128xf32> to vector<64x128xf32>
    %561 = arith.addf %558, %560 : vector<64x128xf32>
    %cst_538 = arith.constant 0.000000e+00 : f32
    %562 = vector.broadcast %cst_538 : f32 to vector<64x128xf32>
    %563 = arith.maximumf %561, %562 : vector<64x128xf32>
    %c0_539 = arith.constant 0 : index
    %c512_540 = arith.constant 512 : index
    %c0_541 = arith.constant 0 : index
    %564 = vector.load %arg4[%c0_539, %c512_540, %c0_541] : memref<1x576x128xf32, #tpu.memory_space<vmem>>, vector<1x64x128xf32>
    %565 = vector.shape_cast %564 : vector<1x64x128xf32> to vector<64x128xf32>
    %566 = vector.shape_cast %563 : vector<64x128xf32> to vector<1x64x128xf32>
    tpu.vector_store %arg4[%c0_539, %c512_540, %c0_541], %566 {strides = array<i32>} : memref<1x576x128xf32, #tpu.memory_space<vmem>>, vector<1x64x128xf32>,
    return
  }
  func.func @transform_0(%arg0: i32) -> (i32, i32, i32) {
    %c0_i32 = arith.constant 0 : i32
    %c0_i32_0 = arith.constant 0 : i32
    %c0_i32_1 = arith.constant 0 : i32
    return %arg0, %c0_i32, %c0_i32_0 : i32, i32, i32
  }
  func.func @transform_1(%arg0: i32) -> (i32, i32, i32) {
    %c0_i32 = arith.constant 0 : i32
    %c0_i32_0 = arith.constant 0 : i32
    %c0_i32_1 = arith.constant 0 : i32
    %c0_i32_2 = arith.constant 0 : i32
    return %c0_i32, %c0_i32_0, %c0_i32_1 : i32, i32, i32
  }
  func.func @transform_2(%arg0: i32) -> (i32, i32) {
    %c0_i32 = arith.constant 0 : i32
    %c0_i32_0 = arith.constant 0 : i32
    %c0_i32_1 = arith.constant 0 : i32
    return %c0_i32, %c0_i32_0 : i32, i32
  }
  func.func @transform_3(%arg0: i32) -> (i32, i32, i32) {
    %c0_i32 = arith.constant 0 : i32
    %c0_i32_0 = arith.constant 0 : i32
    %c0_i32_1 = arith.constant 0 : i32
    return %arg0, %c0_i32, %c0_i32_0 : i32, i32, i32
  }
}

</mosaic_0001>

<bundles_post_ra>
// kernel: tpu_custom_call.1
= control target key start
LH: loop header
LB: loop body
LE: loop exit
PB: predicated region body
PF: predicated region fallthrough
CT: control target
= control target key end

     0   :  { %8 = vsyncpa [#allocation3], 0  ;;  %s15344_s0 = inlined_call_operand.vmem [shape: bf16[2,646,4], index: 0, kind: input, shape index: {}]   ;;  %s15345_s1 = inlined_call_operand.vmem [shape: bf16[9,4,128], index: 1, kind: input, shape index: {}]   ;;  %s15346_s2 = inlined_call_operand.vmem [shape: f32[1,128], index: 2, kind: input, shape index: {}]   ;;  %s15347_s3 = inlined_call_operand.hbm [shape: f32[2,576,128], index: 3, kind: output, shape index: {}]  }
   0x1   :  { %10 = vsyncpa [#allocation3 + $0x1], 0  ;;  %s12914_s12 = smov 0   ;;  %s12916_s13 = smov 0  }
   0x2   :  { %s12918_s14 = smov 0   ;;  %s12920_s15 = smov 0  }
   0x3 LB: > { %s12935_s16 = sadd.s32 4294967295, %s12889_s15   ;;  %s10135_s17 = sadd.s32 4294967294, %s12889_s15   ;;  %s12889_s15 = sphi %s12920_s15, %s15353_s15   ;;  %s12885_s14 = sphi %s12918_s14, %s15352_s14   ;;  %s12881_s13 = sphi %s12916_s13, %s15351_s13   ;;  %s12877_s12 = sphi %s12914_s12, %s15350_s12  }
   0x4   : > { %s12939_s18 = sadd.s32 1, %s12889_s15   ;;  %s91_s19 = sadd.s32 1, %s12885_s14 }
   0x5   : > { %s88_s20 = ssub.s32 %s12889_s15, %s12939_s18  ;;  %p101_p0 = scmp.ne.s32.totalorder %s12885_s14, %s12881_s13 }
   0x6   : > { %p89_p1 = scmp.eq.s32.totalorder %s88_s20, 0  ;;  %p102_p2 = scmp.eq.s32.totalorder %s12935_s16, 1 }
   0x7   : > { %p107_p3 = scmp.ne.s32.totalorder %s12881_s13, %s12877_s12  ;;  %p108_p4 = scmp.eq.s32.totalorder %s10135_s17, 1 }
   0x8   : > { %s12950_s21 = scalar_select %p89_p1, %s12885_s14, %s91_s19  }
   0x9   : > { %p12952_p5 = por %p102_p2, %p101_p0  ;;  %p12956_p6 = por %p108_p4, %p107_p3 }
   0xa   : > { %p10138_p7 = scmp.ge.s32.totalorder %s12889_s15, 1  ;;  %p140_p8 = scmp.lt.s32.totalorder %s12889_s15, 3 }
   0xc   : > { %p141_p9 = pnand %p10138_p7, %p140_p8 }
   0xd   : > { %v10140_v0 = vld [vmem:[%s15345_s1 + $0x2] sm:$0x3] (!%p141_p9)  ;;  %vm255_vm0 = vcmask (!%p141_p9), 1041408   ;;  %v12968_v1 = vld [vmem:[%s15345_s1 + $0x8] sm:$0x3] (!%p141_p9)  ;;  %p164_p10 = scmp.lt.s32.totalorder (!%p141_p9), %s12935_s16, 1 }
   0xe   : > { %144 = sbr.rel (%p141_p9) target bundleno = 918 (0x396), region = 32  ;;  %12521 = vmatprep.subr.msk.bf16.mxu1 (!%p141_p9), %vm255_vm0, %v10140_v0  ;;  %12525 = vmatprep.subr.msk.bf16.mxu0 (!%p141_p9), %vm255_vm0, %v12968_v1  ;;  %v257_v2 = vsel (!%p141_p9), %vm255_vm0, %v10140_v0, 0  ;;  %v12977_v3 = vsel (!%p141_p9), %vm255_vm0, %v12968_v1, 0  ;;  %v178_v4 = vld [vmem:[%s15345_s1] sm:$0x3] (!%p141_p9)  ;;  %vm242_vm2 = vcmask (!%p141_p9), 31744  }
   0xf   : > { %11134 = vmatpush3.bf16.msra.mxu1 (!%p141_p9), %v257_v2  ;;  %11174 = vmatpush3.bf16.msra.mxu0 (!%p141_p9), %v12977_v3  ;;  %v12988_v5 = vld [vmem:[%s15345_s1 + $0xa] sm:$0x3] (!%p141_p9)  ;;  %vm205_vm1 = vsmask.f32 (!%p141_p9), 7424  ;;  %vm641_vm3 = vsmask.f32 (!%p141_p9), 6400 }
  0x10   : > { %12522 = vmatprep.subr.msk.bf16.mxu1 (!%p141_p9), %vm255_vm0, %v178_v4  ;;  %12527 = vmatprep.subr.msk.bf16.mxu0 (!%p141_p9), %vm255_vm0, %v12988_v5  ;;  %v333_v11 = vsel (!%p141_p9), %vm255_vm0, %v178_v4, 0  ;;  %v10154_v37 = vld [vmem:[%s15345_s1 + $0x4] sm:$0x3] (!%p141_p9)  ;;  %vm780_vm4 = vcmask (!%p141_p9), 1045504   ;;  %v803_v58 = vsel (!%p141_p9), %vm255_vm0, %v12988_v5, 0  ;;  %vm406_vm5 = vcmask (!%p141_p9), 1046528  }
  0x11   : > { %v10182_v63 = vld [vmem:[%s15345_s1 + $0xc] sm:$0x3] (!%p141_p9)  ;;  %vm1015_vm6 = vsmask.f32 (!%p141_p9), 5376  ;;  %vm1154_vm7 = vcmask (!%p141_p9), 1044480   ;;  %s161_s17 = sand.u32 (!%p141_p9), 1, %s12881_s13  }
  0x12   : > { %s13972_s24 = smul.u32 (!%p141_p9), 576, %s161_s17  ;;  %s15303_s27 = scalar_lea.sflag (!%p141_p9), [#allocation3], %s161_s17 }
  0x13   : > { %s12891_s29 = smov (!%p141_p9), [#allocation2]  }
  0x14   : > { %s14005_s25 = scalar_lea.vmem (!%p141_p9), [#allocation2], %s13972_s24  ;;  %s12831_s30 = sshll.u32 (!%p141_p9), %s12891_s29, 4  ;;  %s12832_s30 = int_to_ptr.vmem [resolvable:$false] %s12831_s30 }
  0x15   : > { %s165_s28 = scalar_select %p164_p10, %s12935_s16, 1 }
  0x16   : > { %s10073_s20 = sshll.u32 %s14005_s25, 4  ;;  %s12833_s4 = scalar_lea.vmem %s12832_s30, 18432  ;;  %s15296_s20 = int_to_ptr.vmem [resolvable:$true] %s10073_s20 }
  0x17   : > { %s12604_s6 = smul.u32 324, %s165_s28  ;;  %s12827_s28 = scalar_lea.vmem %s15296_s20, 9216 }
  0x18   : > { %p12828_p11 = scmp.ne.s32.totalorder %s15296_s20, %s12827_s28  ;;  %p12834_p0 = scmp.lt.s32.totalorder %s15296_s20, %s12832_s30 }
  0x19   : > { %s12995_s9 = scalar_lea.vmem %s15344_s0, %s12604_s6  ;;  %p12835_p1 = scmp.lt.s32.totalorder %s12833_s4, %s12827_s28 }
  0x1a   : > { %v170_v6 = vld [vmem:[%s12995_s9] sm:$0xf]  ;;  %v12999_v7 = vld [vmem:[%s12995_s9 + $0x4] sm:$0xf]  ;;  %v13005_v9 = vld [vmem:[%s12995_s9 + $0x8] sm:$0xff]   ;;  %p12829_p12 = pnand %p12828_p11, %p12952_p5 }
  0x1b   : > { %v13002_v8 = vcombine.low %v170_v6, %v12999_v7  ;;  %v504_v10 = vld [vmem:[%s12995_s9 + $0x10] sm:$0xe]  ;;  %v505_v12 = vld [vmem:[%s12995_s9 + $0x14] sm:$0xf]  ;;  %v214_v15 = vshll.u32 %v13005_v9, 16  ;;  %v218_v16 = vshrl.u32 %v13005_v9, 16  ;;  %p12836_p2 = por %p12835_p1, %p12834_p0 }
  0x1c   : > { %v13015_v17 = vld [vmem:[%s12995_s9 + $0x18] sm:$0xff]   ;;  %v13018_v18 = vld [vmem:[%s12995_s9 + $0x10] sm:$0xff]   ;;  %v13020_v19 = vcombine.low %v504_v10, %v505_v12  ;;  %v13028_v27 = vld [vmem:[%s12995_s9 + $0x20] sm:$0xff]   ;;  %p12830_p13 = pneg %p12829_p12 }
  0x1d   : > { %v207_v13 = vshrl.u32 %v13002_v8, 16  ;;  %v209_v14 = vshll.u32 %v13002_v8, 16  ;;  %v216_v21 = vrot.slane %v214_v15, 1  ;;  %v651_v22 = vshrl.u32 %v13015_v17, 16  ;;  %v13031_v32 = vld [vmem:[%s12995_s9 + $0x18] sm:$0xff]   ;;  %v13071_v4 = vld [vmem:[%s12995_s9 + $0x28] sm:$0xff]  }
  0x1e   : > { %v654_v23 = vshll.u32 %v13015_v17, 16  ;;  %v643_v24 = vshrl.u32 %v13020_v19, 16  ;;  %v646_v25 = vshll.u32 %v13020_v19, 16  ;;  %v222_v26 = vshll.u32 %v13018_v18, 16  ;;  %v774_v47 = vld [vmem:[%s12995_s9 + $0x10] sm:$0xc]  ;;  %p12837_p3 = pnand %p12836_p2, %p12830_p13 }
  0x1f   : > { %v211_v20 = vrot.slane %v209_v14, 1  ;;  %v220_v29 = vor.u32 %v218_v16, %v216_v21  ;;  %v653_v30 = vrot.slane %v651_v22, 1  ;;  %v660_v36 = vshrl.u32 %v13028_v27, 16  ;;  %v13041_v42 = vld [vmem:[%s12995_s9 + $0x20] ss:$0 sps:$4 sm:$0x11]  }
  0x20   : > { %v656_v31 = vrot.slane %v654_v23, 2  ;;  %v645_v33 = vrot.slane %v643_v24, 1  ;;  %v648_v34 = vrot.slane %v646_v25, 2  ;;  %v224_v35 = vrot.slane %v222_v26, 1  ;;  %v400_v10 = vld [vmem:[%s12995_s9] sm:$0xe] }
  0x21   : > { %v212_v28 = vor.u32 %v211_v20, %v207_v13  ;;  %v663_v40 = vshll.u32 %v13028_v27, 16  ;;  %v226_v41 = vshrl.u32 %v13018_v18, 16  ;;  %v662_v45 = vrot.slane %v660_v36, 1  ;;  %v13086_v15 = vld [vmem:[%s12995_s9 + $0x30] ss:$0 sps:$4 sm:$0x33]  }
  0x22   : > { %v657_v39 = vor.u32 %v656_v31, %v653_v30  ;;  %v649_v43 = vor.u32 %v648_v34, %v645_v33  ;;  %v225_v44 = vsel %vm205_vm1, %v220_v29, %v224_v35  ;;  %v230_v46 = vshll.u32 %v13031_v32, 16  ;;  %v13093_v22 = vld [vmem:[%s12995_s9 + $0x28] sm:$0xff]   ;;  %v13114_v31 = vld [vmem:[%s12995_s9 + $0x30] sm:$0xff]   ;;  %v13118_v34 = vld [vmem:[%s12995_s9 + $0x38] sm:$0xff]  }
  0x23   : > { %v217_v38 = vsel %vm205_vm1, %v212_v28, %v216_v21  ;;  %v665_v48 = vrot.slane %v663_v40, 2  ;;  %v228_v49 = vor.u32 %v226_v41, %v224_v35  ;;  %v234_v50 = vshrl.u32 %v13031_v32, 16  ;;  %v10192_v23 = vld [vmem:[%s15345_s1 + $0xe] sm:$0x3] }
  0x24   : > { %11135 = vmatprep.mubr.msk.bf16.mxu1 %vm242_vm2, %v217_v38  ;;  %v238_v51 = vshll.u32 %v13041_v42, 16  ;;  %v658_v52 = vsel %vm641_vm3, %v649_v43, %v657_v39  ;;  %v232_v53 = vrot.slane %v230_v46, 1  ;;  %v10177_v54 = vcombine.low %v774_v47, %v505_v12  ;;  %v13081_v12 = vld [vmem:[%s12995_s9 + $0x24] sm:$0xf] }
  0x25   : > { %11136 = vmatmul.mubr.msk.bf16.vlgmr.msra.gmra.mrb[0].mxu1 %vm242_vm2, %v225_v44  ;;  %v782_v55 = vrot.slane %v13015_v17, 2  ;;  %11175 = vmatprep.mubr.msk.bf16.mxu0 %vm242_vm2, %v658_v52  ;;  %v13053_v56 = vor.u32 %v665_v48, %v662_v45  ;;  %v784_v5 = vrot.slane %v13028_v27, 2  ;;  %v786_v6 = vrot.slane %v13071_v4, 2  ;;  %v12663_v45 = vld [vmem:[%s12995_s9 + $0x40] ss:$0 sps:$4 sm:$0x33]  }
  0x26   : > { %11144 = vmatpush3.bf16.msra.mxu1 %v333_v11  ;;  %v240_v57 = vrot.slane %v238_v51, 1  ;;  %v233_v59 = vsel %vm205_vm1, %v228_v49, %v232_v53  ;;  %v236_v60 = vor.u32 %v234_v50, %v232_v53  ;;  %v781_v61 = vrot.slane %v10177_v54, 2  ;;  %v878_v11 = vld [vmem:[%s12995_s9 + $0x20] sm:$0xc] }
  0x27   : > { %12523 = vmatprep.subr.msk.bf16.mxu1 %vm255_vm0, %v10154_v37  ;;  %v667_v62 = vsel %vm641_vm3, %v657_v39, %v13053_v56  ;;  %11139 = vmatprep.mubr.msk.bf16.mxu1 %vm242_vm2, %v233_v59  ;;  %v785_v13 = vsel %vm780_vm4, %v782_v55, %v784_v5  ;;  %v429_v14 = vsel %vm255_vm0, %v10154_v37, 0  ;;  %v10155_v16 = vcombine.low %v400_v10, %v12999_v7  ;;  %v10160_v7 = vld [vmem:[%s15345_s1 + $0x6] sm:$0x3] }
  0x28   : > { %11176 = vmatmul.mubr.msk.bf16.vlgmr.msra.gmra.mrb[0].mxu0 %vm242_vm2, %v667_v62  ;;  %v241_v0 = vsel %vm205_vm1, %v236_v60, %v240_v57  ;;  %v783_v2 = vsel %vm780_vm4, %v781_v61, %v782_v55  ;;  %v934_v20 = vsel %vm255_vm0, %v10182_v63, 0  ;;  %v10183_v21 = vcombine.low %v878_v11, %v13081_v12 }
  0x29   : > { %11184 = vmatpush3.bf16.msra.mxu0 %v803_v58  ;;  %11185 = vmatprep.mubr.msk.bf16.mxu0 %vm242_vm2, %v783_v2  ;;  %v788_v24 = vrot.slane %v13086_v15, 2  ;;  %v407_v25 = vrot.slane %v10155_v16, 1  ;;  %v408_v26 = vrot.slane %v13005_v9, 1  ;;  %v913_v29 = vrot.slane %v13093_v22, 2 }
  0x2a   : > { %12528 = vmatprep.subr.msk.bf16.mxu0 %vm255_vm0, %v10182_v63  ;;  %v912_v28 = vrot.slane %v10183_v21, 2  ;;  %v410_v35 = vrot.slane %v13018_v18, 1  ;;  %v915_v36 = vrot.slane %v13114_v31, 2  ;;  %v917_v37 = vrot.slane %v13118_v34, 2 }
  0x2b   : > { %v789_v30 = vsel %vm780_vm4, %v786_v6, %v788_v24  ;;  %v409_v33 = vsel %vm406_vm5, %v407_v25, %v408_v26  ;;  %v1017_v38 = vshrl.u32 %v10183_v21, 16  ;;  %v1020_v39 = vshll.u32 %v10183_v21, 16  ;;  %v13158_v2 = vld [vmem:[%s12995_s9 + $0x40] ss:$0 sps:$4 sm:$0x77]  }
  0x2c   : > { %v1025_v40 = vshrl.u32 %v13093_v22, 16  ;;  %v1028_v41 = vshll.u32 %v13093_v22, 16  ;;  %v412_v43 = vrot.slane %v13031_v32, 1  ;;  %v411_v44 = vsel %vm406_vm5, %v408_v26, %v410_v35 }
  0x2d   : > { %11140 = vmatmul.mubr.msk.bf16.gmra.mrb[4].mxu1 %vm242_vm2, %v241_v0  ;;  %v916_v46 = vsel %vm780_vm4, %v913_v29, %v915_v36  ;;  %v560_v47 = vsel %vm255_vm0, %v10160_v7, 0  ;;  %v918_v48 = vsel %vm780_vm4, %v915_v36, %v917_v37  ;;  %v1019_v49 = vrot.slane %v1017_v38, 2  ;;  %v13182_v38 = vld [vmem:[%s12995_s9 + $0x24] sm:$0xf] }
  0x2e   : > { %11145 = vmatprep.mubr.msk.bf16.mxu1 %vm242_vm2, %v13002_v8  ;;  %v787_v8 = vsel %vm780_vm4, %v784_v5, %v786_v6  ;;  %v1022_v50 = vrot.slane %v1020_v39, 3  ;;  %v1027_v51 = vrot.slane %v1025_v40, 2  ;;  %v1030_v52 = vrot.slane %v1028_v41, 3  ;;  %v10270_v39 = vld [vmem:[%s15345_s1 + $0x2] sm:$0x3] }
  0x2f   : > { %v413_v53 = vsel %vm406_vm5, %v410_v35, %v412_v43  ;;  %v919_v54 = vrot.slane %v12663_v45, 2  ;;  %v414_v55 = vrot.slane %v13041_v42, 1  ;;  %v1034_v57 = vshrl.u32 %v13114_v31, 16 }
  0x30   : > { %v1037_v58 = vshll.u32 %v13114_v31, 16  ;;  %v538_v59 = vrot.slane %v13020_v19, 1  ;;  %v539_v60 = vrot.slane %v13015_v17, 1  ;;  %v1023_v61 = vor.u32 %v1022_v50, %v1019_v49 }
  0x31   : > { %v1031_v62 = vor.u32 %v1030_v52, %v1027_v51  ;;  %v1043_v42 = vshrl.u32 %v13118_v34, 16  ;;  %v1046_v63 = vshll.u32 %v13118_v34, 16  ;;  %v415_v0 = vsel %vm406_vm5, %v412_v43, %v414_v55 }
  0x32   : > { %v920_v17 = vsel %vm780_vm4, %v917_v37, %v919_v54  ;;  %v1036_v19 = vrot.slane %v1034_v57, 2  ;;  %v1039_v5 = vrot.slane %v1037_v58, 3  ;;  %v540_v6 = vsel %vm406_vm5, %v538_v59, %v539_v60  ;;  %v1283_v37 = vld [vmem:[%s12995_s9 + $0x20] sm:$0xf]  ;;  %v13228_v59 = vld [vmem:[%s12995_s9 + $0x48] sm:$0xff]  }
  0x33   : > { %v1032_v10 = vsel %vm1015_vm6, %v1023_v61, %v1031_v62  ;;  %v1045_v11 = vrot.slane %v1043_v42, 2  ;;  %v1055_v16 = vshll.u32 %v13158_v2, 16  ;;  %v672_v21 = vshll.u32 %v13071_v4, 16 }
  0x34   : > { %11186 = vmatmul.mubr.msk.bf16.vlgmr.msra.gmra.mrb[0].mxu0 %vm242_vm2, %v785_v13  ;;  %v1048_v13 = vrot.slane %v1046_v63, 3  ;;  %v543_v25 = vrot.slane %v13071_v4, 1  ;;  %v681_v49 = vshll.u32 %v13086_v15, 16  ;;  %v13236_v63 = vld [vmem:[%s12995_s9 + $0x38] sm:$0xff]  }
  0x35   : > { %11146 = vmatmul.mubr.msk.bf16.vlgmr.msra.gmra.mrb[0].mxu1 %vm242_vm2, %v13005_v9  ;;  %11194 = vmatpush3.bf16.msra.mxu0 %v934_v20  ;;  %v914_v9 = vsel %vm780_vm4, %v912_v28, %v913_v29  ;;  %v1040_v20 = vor.u32 %v1039_v5, %v1036_v19  ;;  %v12665_v28 = vld [vmem:[%s12995_s9 + $0x30] ss:$0 sps:$4 sm:$0x11]   ;;  %v2388_v5 = vld [vmem:[%s15345_s1] sm:$0x3] }
  0x36   : > { %11154 = vmatpush3.bf16.msra.mxu1 %v429_v14  ;;  %11189 = vmatprep.mubr.msk.bf16.mxu0 %vm242_vm2, %v787_v8  ;;  %v1052_v14 = vshrl.u32 %v13158_v2, 16  ;;  %v669_v8 = vshrl.u32 %v13071_v4, 16  ;;  %v545_v40 = vrot.slane %v12665_v28, 1  ;;  %v683_v54 = vrot.slane %v681_v49, 2 }
  0x37   : > { %11149 = vmatprep.mubr.msk.bf16.mxu1 %vm242_vm2, %v13018_v18  ;;  %12529 = vmatprep.subr.msk.bf16.mxu0 %vm255_vm0, %v10192_v23  ;;  %v1073_v18 = vsel %vm255_vm0, %v10192_v23, 0  ;;  %v1049_v23 = vor.u32 %v1048_v13, %v1045_v11  ;;  %v1041_v29 = vsel %vm1015_vm6, %v1031_v62, %v1040_v20  ;;  %v13233_v62 = vld [vmem:[%s12995_s9 + $0x30] sm:$0xff]   ;;  %v2422_v11 = vshll.u32 %v13228_v59, 16 }
  0x38   : > { %12524 = vmatprep.subr.msk.bf16.mxu1 %vm255_vm0, %v10160_v7  ;;  %v1148_v7 = vld [vmem:[%s12995_s9 + $0x20] sm:$0x8]  ;;  %v1054_v26 = vrot.slane %v1052_v14, 2  ;;  %v1333_v13 = vshll.u32 %v13233_v62, 16  ;;  %v1162_v14 = vrot.slane %v13158_v2, 3  ;;  %v1341_v2 = vshll.u32 %v13236_v63, 16 }
  0x39   : > { %v1050_v35 = vsel %vm1015_vm6, %v1040_v20, %v1049_v23  ;;  %v10199_v36 = vcombine.low %v1148_v7, %v13081_v12  ;;  %v10205_v12 = vld [vmem:[%s15345_s1 + $0x2] sm:$0x3]  ;;  %v1337_v7 = vshrl.u32 %v13233_v62, 16 }
  0x3b   : > { %v1155_v45 = vrot.slane %v10199_v36, 3  ;;  %v1343_v36 = vrot.slane %v1341_v2, 1  ;;  %v1517_v2 = vrot.slane %v13233_v62, 1 }
  0x3c   : > { %11190 = vmatmul.mubr.msk.bf16.gmra.mrb[4].mxu0 %vm242_vm2, %v789_v30  ;;  %v1057_v30 = vrot.slane %v1055_v16, 3  ;;  %v1366_v16 = vsel %vm255_vm0, %v10205_v12, 0 }
  0x3d   : > { %11150 = vmatmul.mubr.msk.bf16.gmra.mrb[4].mxu1 %vm242_vm2, %v13031_v32  ;;  %11195 = vmatprep.mubr.msk.bf16.mxu0 %vm242_vm2, %v914_v9  ;;  %v10198_v32 = vld [vmem:[%s15345_s1 + $0x10] sm:$0x3]  ;;  %v674_v9 = vrot.slane %v672_v21, 2 }
  0x3e   : > { %11155 = vmatprep.mubr.msk.bf16.mxu1 %vm242_vm2, %v409_v33  ;;  %v1177_v24 = vsel %vm255_vm0, %v10198_v32, 0  ;;  %v671_v33 = vrot.slane %v669_v8, 1  ;;  %v1058_v41 = vor.u32 %v1057_v30, %v1054_v26  ;;  %v1291_v8 = vld [vmem:[%s15345_s1] sm:$0x3]  ;;  %v13256_v21 = vld [vmem:[%s12995_s9 + $0x50] sm:$0xff]   ;;  %v1335_v26 = vrot.slane %v1333_v13, 1 }
  0x3f   : > { %v13270_v30 = vld [vmem:[%s12995_s9 + $0x40] ss:$0 sps:$4 sm:$0x11]   ;;  %v13337_v13 = vld [vmem:[%s12995_s9 + $0x58] sm:$0xff]  }
  0x40   : > { %v675_v43 = vor.u32 %v674_v9, %v671_v33  ;;  %v1059_v50 = vsel %vm1015_vm6, %v1049_v23, %v1058_v41  ;;  %v2426_v9 = vshrl.u32 %v13228_v59, 16  ;;  %v1345_v41 = vshrl.u32 %v13236_v63, 16 }
  0x42   : > { %v676_v51 = vsel %vm641_vm3, %v13053_v56, %v675_v43  ;;  %v1158_v56 = vrot.slane %v13114_v31, 3  ;;  %v2463_v31 = vsel %vm255_vm0, %v10270_v39, 0 }
  0x44   : > { %11196 = vmatmul.mubr.msk.bf16.vlgmr.msra.gmra.mrb[0].mxu0 %vm242_vm2, %v916_v46  ;;  %v2380_v46 = vld [vmem:[%s12995_s9 + $0x40] sm:$0xf] }
  0x45   : > { %11156 = vmatmul.mubr.msk.bf16.vlgmr.msra.gmra.mrb[0].mxu1 %vm242_vm2, %v411_v44  ;;  %11204 = vmatpush3.bf16.msra.mxu0 %v1073_v18  ;;  %v13196_v44 = vcombine.low %v1283_v37, %v13182_v38  ;;  %v13204_v18 = vld [vmem:[%s12995_s9 + $0x44] sm:$0xf] }
  0x46   : > { %11164 = vmatpush3.bf16.msra.mxu1 %v560_v47  ;;  %11199 = vmatprep.mubr.msk.bf16.mxu0 %vm242_vm2, %v918_v48  ;;  %v546_v47 = vsel %vm406_vm5, %v543_v25, %v545_v40  ;;  %v678_v48 = vshrl.u32 %v13086_v15, 16 }
  0x47   : > { %11159 = vmatprep.mubr.msk.bf16.mxu1 %vm242_vm2, %v413_v53  ;;  %12530 = vmatprep.subr.msk.bf16.mxu0 %vm255_vm0, %v10198_v32  ;;  %v1320_v52 = vshll.u32 %v13196_v44, 16  ;;  %v13218_v32 = vcombine.low %v2380_v46, %v13204_v18  ;;  %v1318_v55 = vshrl.u32 %v13196_v44, 16 }
  0x48   : > { %12526 = vmatprep.subr.msk.bf16.mxu1 %vm255_vm0, %v12968_v1  ;;  %v541_v1 = vrot.slane %v13028_v27, 1  ;;  %v680_v15 = vrot.slane %v678_v48, 1 }
  0x49   : > { %v1322_v57 = vrot.slane %v1320_v52, 1  ;;  %v2417_v61 = vshll.u32 %v13218_v32, 16 }
  0x4a   : > { %v542_v27 = vsel %vm406_vm5, %v539_v60, %v541_v1  ;;  %v544_v4 = vsel %vm406_vm5, %v541_v1, %v543_v25  ;;  %v1160_v60 = vrot.slane %v13118_v34, 3  ;;  %v684_v42 = vor.u32 %v683_v54, %v680_v15 }
  0x4b   : > { %v2424_v25 = vrot.slane %v2422_v11, 1 }
  0x4c   : > { %11200 = vmatmul.mubr.msk.bf16.gmra.mrb[4].mxu0 %vm242_vm2, %v920_v17  ;;  %v1323_v17 = vor.u32 %v1322_v57, %v1318_v55  ;;  %v1161_v34 = vsel %vm1154_vm7, %v1158_v56, %v1160_v60  ;;  %v685_v1 = vsel %vm641_vm3, %v675_v43, %v684_v42  ;;  %v1163_v33 = vsel %vm1154_vm7, %v1160_v60, %v1162_v14  ;;  %v10284_v57 = vld [vmem:[%s15345_s1 + $0x4] sm:$0x3]  ;;  %v2708_v14 = vld [vmem:[%s12995_s9 + $0x50] sm:$0xe] }
  0x4d   : > { %11160 = vmatmul.mubr.msk.bf16.gmra.mrb[4].mxu1 %vm242_vm2, %v415_v0  ;;  %11205 = vmatprep.mubr.msk.bf16.mxu0 %vm242_vm2, %v1032_v10  ;;  %v2419_v10 = vrot.slane %v2417_v61, 1  ;;  %v1349_v43 = vshll.u32 %v13270_v30, 16 }
  0x4e   : > { %11165 = vmatprep.mubr.msk.bf16.mxu1 %vm242_vm2, %v540_v6  ;;  %v2415_v6 = vshrl.u32 %v13218_v32, 16 }
  0x4f   : > { %v1351_v52 = vrot.slane %v1349_v43, 1 }
  0x54   : > { %11206 = vmatmul.mubr.msk.bf16.vlgmr.msra.gmra.mrb[0].mxu0 %vm242_vm2, %v1041_v29  ;;  %v2430_v29 = vshll.u32 %v13256_v21, 16 }
  0x55   : > { %11166 = vmatmul.mubr.msk.bf16.vlgmr.msra.gmra.mrb[0].mxu1 %vm242_vm2, %v542_v27  ;;  %11214 = vmatpush3.bf16.msra.mxu0 %v1177_v24  ;;  %v2420_v24 = vor.u32 %v2419_v10, %v2415_v6  ;;  %v13264_v27 = vld [vmem:[%s12995_s9 + $0x58] sm:$0xff]  }
  0x56   : > { %11944 = vmatpush3.bf16.msra.mxu1 %v12977_v3  ;;  %11209 = vmatprep.mubr.msk.bf16.mxu0 %vm242_vm2, %v1050_v35  ;;  %v1156_v3 = vrot.slane %v13093_v22, 3  ;;  %v13213_v22 = vld [vmem:[%s12995_s9 + $0x28] sm:$0xff]   ;;  %v1339_v35 = vor.u32 %v1337_v7, %v1335_v26  ;;  %v2442_v15 = vshrl.u32 %v13264_v27, 16  ;;  %v13331_v6 = vld [vmem:[%s12995_s9 + $0x38] sm:$0xff]  }
  0x57   : > { %11169 = vmatprep.mubr.msk.bf16.mxu1 %vm242_vm2, %v544_v4  ;;  %12540 = vmatprep.subr.msk.bf16.mxu0 %vm255_vm0, %v10270_v39  ;;  %v1325_v58 = vshll.u32 %v13213_v22, 16  ;;  %v1329_v20 = vshrl.u32 %v13213_v22, 16  ;;  %v2425_v37 = vsel %vm205_vm1, %v2420_v24, %v2424_v25  ;;  %v2434_v4 = vshrl.u32 %v13256_v21, 16 }
  0x58   : > { %12531 = vmatprep.subr.msk.bf16.mxu1 %vm255_vm0, %v10205_v12  ;;  %v1157_v53 = vsel %vm1154_vm7, %v1155_v45, %v1156_v3  ;;  %v1159_v0 = vsel %vm1154_vm7, %v1156_v3, %v1158_v56  ;;  %v2438_v39 = vshll.u32 %v13264_v27, 16  ;;  %v2432_v12 = vrot.slane %v2430_v29, 1 }
  0x59   : > { %v1327_v19 = vrot.slane %v1325_v58, 1  ;;  %v2428_v45 = vor.u32 %v2426_v9, %v2424_v25  ;;  %v1442_v3 = vsel %vm255_vm0, %v1291_v8, 0  ;;  %v1344_v46 = vsel %vm205_vm1, %v1339_v35, %v1343_v36 }
  0x5a   : > { %v2436_v48 = vor.u32 %v2434_v4, %v2432_v12  ;;  %v2440_v49 = vrot.slane %v2438_v39, 1  ;;  %v2539_v56 = vsel %vm255_vm0, %v2388_v5, 0  ;;  %v1515_v11 = vrot.slane %v13213_v22, 1 }
  0x5b   : > { %v1328_v23 = vsel %vm205_vm1, %v1323_v17, %v1327_v19  ;;  %v1331_v28 = vor.u32 %v1329_v20, %v1327_v19  ;;  %v2606_v17 = vld [vmem:[%s12995_s9 + $0x40] sm:$0xe]  ;;  %v2614_v25 = vrot.slane %v13256_v21, 1  ;;  %v1519_v29 = vrot.slane %v13236_v63, 1 }
  0x5c   : > { %11210 = vmatmul.mubr.msk.bf16.gmra.mrb[4].mxu0 %vm242_vm2, %v1059_v50  ;;  %v10219_v50 = vld [vmem:[%s15345_s1 + $0x4] sm:$0x3]  ;;  %v2441_v55 = vsel %vm205_vm1, %v2436_v48, %v2440_v49  ;;  %v2444_v60 = vor.u32 %v2442_v15, %v2440_v49  ;;  %v1521_v9 = vrot.slane %v13270_v30, 1  ;;  %v1645_v35 = vrot.slane %v13331_v6, 1 }
  0x5d   : > { %11170 = vmatmul.mubr.msk.bf16.gmra.mrb[4].mxu1 %vm242_vm2, %v546_v47  ;;  %11215 = vmatprep.mubr.msk.bf16.mxu0 %vm242_vm2, %v1157_v53  ;;  %v1336_v40 = vsel %vm205_vm1, %v1331_v28, %v1335_v26  ;;  %v13286_v47 = vld [vmem:[%s12995_s9 + $0x60] ss:$0 sps:$4 sm:$0x11]   ;;  %v2433_v53 = vsel %vm205_vm1, %v2428_v45, %v2432_v12  ;;  %v1536_v19 = vsel %vm255_vm0, %v10219_v50, 0  ;;  %v2742_v39 = vrot.slane %v13337_v13, 1 }
  0x5e   : > { %11179 = vmatprep.mubr.msk.bf16.mxu1 %vm242_vm2, %v676_v51  ;;  %v1347_v51 = vor.u32 %v1345_v41, %v1343_v36  ;;  %v2446_v54 = vshll.u32 %v13286_v47, 16  ;;  %v13353_v20 = vld [vmem:[%s12995_s9 + $0x60] sm:$0xff]   ;;  %v13378_v36 = vld [vmem:[%s12995_s9 + $0x48] sm:$0xff]   ;;  %v13398_v41 = vld [vmem:[%s12995_s9 + $0x50] ss:$0 sps:$4 sm:$0x11]  }
  0x5f   : > { %v2744_v12 = vrot.slane %v13353_v20, 1  ;;  %v13403_v45 = vld [vmem:[%s12995_s9 + $0x70] ss:$0 sps:$4 sm:$0x11]   ;;  %v1758_v48 = vshll.u32 %v13331_v6, 16 }
  0x60   : > { %v1352_v58 = vsel %vm205_vm1, %v1347_v51, %v1351_v52  ;;  %v2448_v61 = vrot.slane %v2446_v54, 1  ;;  %v1518_v51 = vsel %vm406_vm5, %v1515_v11, %v1517_v2  ;;  %v1520_v52 = vsel %vm406_vm5, %v1517_v2, %v1519_v29 }
  0x61   : > { %v1651_v54 = vrot.slane %v13398_v41, 1 }
  0x62   : > { %v2449_v42 = vsel %vm205_vm1, %v2444_v60, %v2448_v61  ;;  %v1760_v60 = vrot.slane %v1758_v48, 2 }
  0x64   : > { %11216 = vmatmul.mubr.msk.bf16.vlgmr.msra.gmra.mrb[0].mxu0 %vm242_vm2, %v1159_v0  ;;  %v1509_v0 = vld [vmem:[%s12995_s9 + $0x20] sm:$0xe] }
  0x65   : > { %11314 = vmatpush3.bf16.msra.mxu0 %v2463_v31  ;;  %11219 = vmatprep.mubr.msk.bf16.mxu0 %vm242_vm2, %v1161_v34  ;;  %v10220_v31 = vcombine.low %v1509_v0, %v13182_v38  ;;  %v10285_v38 = vcombine.low %v2606_v17, %v13204_v18  ;;  %v10290_v34 = vld [vmem:[%s15345_s1 + $0x6] sm:$0x3]  ;;  %v13346_v18 = vld [vmem:[%s15345_s1 + $0x8] sm:$0x3] }
  0x66   : > { %12541 = vmatprep.subr.msk.bf16.mxu0 %vm255_vm0, %v2388_v5  ;;  %v1611_v5 = vld [vmem:[%s12995_s9 + $0x30] sm:$0xe]  ;;  %v2763_v28 = vsel %vm255_vm0, %v10290_v34, 0 }
  0x67   : > { %v1514_v10 = vrot.slane %v10220_v31, 1  ;;  %v2611_v7 = vrot.slane %v10285_v38, 1  ;;  %v2861_v38 = vshrl.u32 %v13353_v20, 16 }
  0x69   : > { %11180 = vmatmul.mubr.msk.bf16.vlgmr.msra.gmra.mrb[4].mxu1 %vm242_vm2, %v685_v1  ;;  %v13340_v1 = vld [vmem:[%s12995_s9 + $0x40] sm:$0xff]   ;;  %v1516_v26 = vsel %vm406_vm5, %v1514_v10, %v1515_v11  ;;  %v10241_v11 = vld [vmem:[%s15345_s1 + $0xa] sm:$0x3] }
  0x6a   : > { %11224 = vmatpush3.bf16.msra.mxu1 %v1366_v16  ;;  %11225 = vmatprep.mubr.msk.bf16.mxu1 %vm242_vm2, %v1328_v23  ;;  %v13350_v16 = vld [vmem:[%s12995_s9 + $0x54] sm:$0xf]  ;;  %v1647_v30 = vrot.slane %v13340_v1, 1  ;;  %v1764_v31 = vshrl.u32 %v13340_v1, 16  ;;  %v1767_v17 = vshll.u32 %v13340_v1, 16 }
  0x6b   : > { %12532 = vmatprep.subr.msk.bf16.mxu1 %vm255_vm0, %v1291_v8  ;;  %v2633_v8 = vsel %vm255_vm0, %v10284_v57, 0 }
  0x6c   : > { %11220 = vmatmul.mubr.msk.bf16.gmra.mrb[4].mxu0 %vm242_vm2, %v1163_v33  ;;  %v13369_v33 = vcombine.low %v2708_v14, %v13350_v16 }
  0x6d   : > { %11315 = vmatprep.mubr.msk.bf16.mxu0 %vm242_vm2, %v2425_v37  ;;  %v13381_v37 = vld [vmem:[%s12995_s9 + $0x68] sm:$0xff]  }
  0x6e   : > { %v2741_v43 = vrot.slane %v13369_v33, 1  ;;  %v2746_v15 = vrot.slane %v13381_v37, 1  ;;  %v2847_v61 = vshll.u32 %v13369_v33, 16 }
  0x70   : > { %v2743_v14 = vsel %vm406_vm5, %v2741_v43, %v2742_v39  ;;  %v2747_v41 = vsel %vm406_vm5, %v2744_v12, %v2746_v15 }
  0x71   : > { %11226 = vmatmul.mubr.msk.bf16.vlgmr.msra.gmra.mrb[8].mxu1 %vm242_vm2, %v1336_v40  ;;  %v13392_v40 = vsel %vm255_vm0, %v13346_v18, 0 }
  0x72   : > { %11234 = vmatpush3.bf16.msra.mxu1 %v1442_v3  ;;  %11229 = vmatprep.mubr.msk.bf16.mxu1 %vm242_vm2, %v1344_v46 }
  0x73   : > { %12533 = vmatprep.subr.msk.bf16.mxu1 %vm255_vm0, %v10219_v50  ;;  %v2844_v50 = vshrl.u32 %v13369_v33, 16 }
  0x74   : > { %11316 = vmatmul.mubr.msk.bf16.vlgmr.msra.gmra.mrb[8].mxu0 %vm242_vm2, %v2433_v53  ;;  %v1649_v53 = vrot.slane %v13378_v36, 1 }
  0x75   : > { %11324 = vmatpush3.bf16.msra.mxu0 %v2539_v56  ;;  %11319 = vmatprep.mubr.msk.bf16.mxu0 %vm242_vm2, %v2441_v55  ;;  %v2748_v56 = vrot.slane %v13403_v45, 1  ;;  %v13429_v0 = vrot.slane %v2844_v50, 1  ;;  %v13500_v50 = vld [vmem:[%s12995_s9 + $0x70] ss:$0 sps:$4 sm:$0x33]  }
  0x76   : > { %12542 = vmatprep.subr.msk.bf16.mxu0 %vm255_vm0, %v10284_v57 }
  0x79   : > { %11230 = vmatmul.mubr.msk.bf16.gmra.mrb[12].mxu1 %vm242_vm2, %v1352_v58 }
  0x7a   : > { %11235 = vmatprep.mubr.msk.bf16.mxu1 %vm242_vm2, %v13196_v44  ;;  %v10225_v44 = vld [vmem:[%s15345_s1 + $0x6] sm:$0x3] }
  0x7b   : > { %v1666_v24 = vsel %vm255_vm0, %v10225_v44, 0 }
  0x7c   : > { %11320 = vmatmul.mubr.msk.bf16.gmra.mrb[12].mxu0 %vm242_vm2, %v2449_v42  ;;  %v2852_v42 = vshrl.u32 %v13337_v13, 16 }
  0x7d   : > { %11325 = vmatprep.mubr.msk.bf16.mxu0 %vm242_vm2, %v13218_v32  ;;  %v13328_v32 = vld [vmem:[%s12995_s9 + $0x34] sm:$0xf] }
  0x7e   : > { %v13358_v23 = vcombine.low %v1611_v5, %v13328_v32  ;;  %v1522_v5 = vsel %vm406_vm5, %v1519_v29, %v1521_v9  ;;  %v1773_v29 = vshrl.u32 %v13378_v36, 16  ;;  %v2870_v9 = vshrl.u32 %v13381_v37, 16 }
  0x80   : > { %v1644_v4 = vrot.slane %v13358_v23, 1  ;;  %v1747_v3 = vshrl.u32 %v13358_v23, 16  ;;  %v1750_v46 = vshll.u32 %v13358_v23, 16  ;;  %v2849_v23 = vrot.slane %v2847_v61, 2 }
  0x81   : > { %11236 = vmatmul.mubr.msk.bf16.vlgmr.msra.gmra.mrb[8].mxu1 %vm242_vm2, %v13213_v22  ;;  %v2612_v22 = vrot.slane %v13228_v59, 1  ;;  %v1775_v43 = vrot.slane %v1773_v29, 1 }
  0x82   : > { %11244 = vmatpush3.bf16.msra.mxu1 %v1536_v19  ;;  %11239 = vmatprep.mubr.msk.bf16.mxu1 %vm242_vm2, %v13233_v62  ;;  %v2616_v62 = vrot.slane %v13264_v27, 1  ;;  %v13422_v55 = vrot.slane %v1747_v3, 1  ;;  %v13424_v57 = vrot.slane %v1750_v46, 2  ;;  %v1646_v10 = vsel %vm406_vm5, %v1644_v4, %v1645_v35 }
  0x83   : > { %12534 = vmatprep.subr.msk.bf16.mxu1 %vm255_vm0, %v10225_v44  ;;  %v2615_v19 = vsel %vm406_vm5, %v2612_v22, %v2614_v25  ;;  %v2745_v4 = vsel %vm406_vm5, %v2742_v39, %v2744_v12  ;;  %v1652_v39 = vsel %vm406_vm5, %v1649_v53, %v1651_v54  ;;  %v2872_v12 = vrot.slane %v2870_v9, 1  ;;  %v13558_v9 = vld [vmem:[%s12995_s9 + $0x48] sm:$0xff]  }
  0x84   : > { %11326 = vmatmul.mubr.msk.bf16.vlgmr.msra.gmra.mrb[8].mxu0 %vm242_vm2, %v13228_v59  ;;  %v2618_v59 = vrot.slane %v13286_v47, 1  ;;  %v1755_v47 = vshrl.u32 %v13331_v6, 16  ;;  %v2617_v44 = vsel %vm406_vm5, %v2614_v25, %v2616_v62  ;;  %v1766_v25 = vrot.slane %v1764_v31, 1  ;;  %v10247_v31 = vld [vmem:[%s15345_s1 + $0xc] sm:$0x3] }
  0x85   : > { %11334 = vmatpush3.bf16.msra.mxu0 %v2633_v8  ;;  %11329 = vmatprep.mubr.msk.bf16.mxu0 %vm242_vm2, %v13256_v21  ;;  %v10300_v21 = vld [vmem:[%s15345_s1 + $0x8] sm:$0x3]  ;;  %v1648_v8 = vsel %vm406_vm5, %v1645_v35, %v1647_v30  ;;  %v13471_v35 = vld [vmem:[%s12995_s9 + $0x50] ss:$0 sps:$4 sm:$0x33]   ;;  %v2749_v54 = vsel %vm406_vm5, %v2746_v15, %v2748_v56  ;;  %v2035_v29 = vsel %vm255_vm0, %v10247_v31, 0 }
  0x86   : > { %12543 = vmatprep.subr.msk.bf16.mxu0 %vm255_vm0, %v10290_v34  ;;  %v13411_v49 = vsel %vm255_vm0, %v10300_v21, 0  ;;  %v1757_v58 = vrot.slane %v1755_v47, 1  ;;  %v2864_v34 = vshll.u32 %v13353_v20, 16  ;;  %v2850_v47 = vor.u32 %v2849_v23, %v13429_v0 }
  0x88   : > { %v2866_v33 = vrot.slane %v2864_v34, 2 }
  0x89   : > { %11240 = vmatmul.mubr.msk.bf16.gmra.mrb[12].mxu1 %vm242_vm2, %v13236_v63  ;;  %v2613_v63 = vsel %vm406_vm5, %v2611_v7, %v2612_v22  ;;  %v1650_v22 = vsel %vm406_vm5, %v1647_v30, %v1649_v53  ;;  %v2854_v7 = vrot.slane %v2852_v42, 1  ;;  %v1761_v30 = vor.u32 %v1760_v60, %v1757_v58  ;;  %v1878_v53 = vld [vmem:[%s12995_s9 + $0x30] sm:$0xc] }
  0x8a   : > { %11245 = vmatprep.mubr.msk.bf16.mxu1 %vm242_vm2, %v1516_v26  ;;  %v1769_v26 = vrot.slane %v1767_v17, 2  ;;  %v2879_v42 = vshrl.u32 %v13500_v50, 16  ;;  %v10242_v15 = vcombine.low %v1878_v53, %v13328_v32  ;;  %v2975_v17 = vld [vmem:[%s12995_s9 + $0x50] sm:$0xc] }
  0x8b   : > { %v13601_v53 = vld [vmem:[%s12995_s9 + $0x70] sm:$0xff]  }
  0x8c   : > { %11330 = vmatmul.mubr.msk.bf16.gmra.mrb[12].mxu0 %vm242_vm2, %v13264_v27  ;;  %v2855_v27 = vshll.u32 %v13337_v13, 16 }
  0x8d   : > { %11335 = vmatprep.mubr.msk.bf16.mxu0 %vm242_vm2, %v2613_v63  ;;  %v1782_v63 = vshrl.u32 %v13471_v35, 16 }
  0x8e   : > { %v2857_v2 = vrot.slane %v2855_v27, 2  ;;  %v2882_v27 = vshll.u32 %v13500_v50, 16 }
  0x8f   : > { %v1784_v60 = vrot.slane %v1782_v63, 1 }
  0x90   : > { %v2858_v48 = vor.u32 %v2857_v2, %v2854_v7  ;;  %v2884_v32 = vrot.slane %v2882_v27, 2  ;;  %v2981_v7 = vrot.slane %v13337_v13, 2  ;;  %v1980_v2 = vld [vmem:[%s12995_s9 + $0x40] sm:$0xc]  ;;  %v3113_v27 = vrot.slane %v13601_v53, 2 }
  0x91   : > { %11246 = vmatmul.mubr.msk.bf16.vlgmr.msra.gmra.mrb[8].mxu1 %vm242_vm2, %v1518_v51 }
  0x92   : > { %11254 = vmatpush3.bf16.msra.mxu1 %v1666_v24  ;;  %11249 = vmatprep.mubr.msk.bf16.mxu1 %vm242_vm2, %v1520_v52  ;;  %v1905_v24 = vsel %vm255_vm0, %v10241_v11, 0  ;;  %v1785_v52 = vshll.u32 %v13471_v35, 16 }
  0x93   : > { %12535 = vmatprep.subr.msk.bf16.mxu1 %vm255_vm0, %v13346_v18  ;;  %v2619_v18 = vsel %vm406_vm5, %v2616_v62, %v2618_v59  ;;  %v1776_v62 = vshll.u32 %v13378_v36, 16  ;;  %v2873_v59 = vshll.u32 %v13381_v37, 16 }
  0x94   : > { %11336 = vmatmul.mubr.msk.bf16.vlgmr.msra.gmra.mrb[8].mxu0 %vm242_vm2, %v2615_v19  ;;  %v1787_v61 = vrot.slane %v1785_v52, 2 }
  0x95   : > { %11344 = vmatpush3.bf16.msra.mxu0 %v2763_v28  ;;  %11339 = vmatprep.mubr.msk.bf16.mxu0 %vm242_vm2, %v2617_v44  ;;  %v2863_v28 = vrot.slane %v2861_v38, 1  ;;  %v1778_v3 = vrot.slane %v1776_v62, 2  ;;  %v2875_v51 = vrot.slane %v2873_v59, 2  ;;  %v1884_v38 = vrot.slane %v13331_v6, 2  ;;  %v10257_v59 = vld [vmem:[%s15345_s1 + $0xe] sm:$0x3] }
  0x96   : > { %12544 = vmatprep.subr.msk.bf16.mxu0 %vm255_vm0, %v10300_v21  ;;  %v1753_v21 = vor.u32 %v13424_v57, %v13422_v55  ;;  %v2859_v57 = vsel %vm641_vm3, %v2850_v47, %v2858_v48  ;;  %v1788_v44 = vor.u32 %v1787_v61, %v1784_v60  ;;  %v2987_v47 = vrot.slane %v13500_v50, 2 }
  0x97   : > { %v1779_v55 = vor.u32 %v1778_v3, %v1775_v43  ;;  %v2867_v0 = vor.u32 %v2866_v33, %v2863_v28  ;;  %v2876_v56 = vor.u32 %v2875_v51, %v2872_v12  ;;  %v13578_v3 = vld [vmem:[%s12995_s9 + $0x68] sm:$0xff]   ;;  %v13590_v12 = vld [vmem:[%s12995_s9 + $0x58] sm:$0xff]   ;;  %v2124_v60 = vshrl.u32 %v13558_v9, 16 }
  0x98   : > { %v1762_v46 = vsel %vm641_vm3, %v1753_v21, %v1761_v30  ;;  %v13567_v21 = vld [vmem:[%s12995_s9 + $0x64] sm:$0xf]  ;;  %v3111_v52 = vrot.slane %v13578_v3, 2  ;;  %v2127_v61 = vshll.u32 %v13558_v9, 16 }
  0x99   : > { %11250 = vmatmul.mubr.msk.bf16.gmra.mrb[12].mxu1 %vm242_vm2, %v1522_v5  ;;  %v2881_v5 = vrot.slane %v2879_v42, 1  ;;  %v2868_v34 = vsel %vm641_vm3, %v2858_v48, %v2867_v0  ;;  %v1789_v6 = vsel %vm641_vm3, %v1779_v55, %v1788_v44  ;;  %v13587_v48 = vld [vmem:[%s12995_s9 + $0x50] sm:$0xff]   ;;  %v2126_v44 = vrot.slane %v2124_v60, 2 }
  0x9a   : > { %11255 = vmatprep.mubr.msk.bf16.mxu1 %vm242_vm2, %v1646_v10  ;;  %v1883_v10 = vrot.slane %v10242_v15, 2  ;;  %v2016_v50 = vrot.slane %v13587_v48, 2 }
  0x9c   : > { %11340 = vmatmul.mubr.msk.bf16.gmra.mrb[12].mxu0 %vm242_vm2, %v2619_v18  ;;  %v2877_v18 = vsel %vm641_vm3, %v2867_v0, %v2876_v56  ;;  %v2172_v0 = vsel %vm255_vm0, %v10257_v59, 0 }
  0x9d   : > { %11345 = vmatprep.mubr.msk.bf16.mxu0 %vm242_vm2, %v2743_v14  ;;  %v10307_v14 = vcombine.low %v2975_v17, %v13350_v16  ;;  %v1886_v16 = vrot.slane %v13340_v1, 2  ;;  %v2983_v1 = vrot.slane %v13353_v20, 2  ;;  %v1890_v20 = vrot.slane %v13471_v35, 2 }
  0x9f   : > { %v2980_v23 = vrot.slane %v10307_v14, 2  ;;  %v1887_v28 = vsel %vm780_vm4, %v1884_v38, %v1886_v16  ;;  %v2136_v14 = vshll.u32 %v13587_v48, 16 }
  0xa1   : > { %11256 = vmatmul.mubr.msk.bf16.vlgmr.msra.gmra.mrb[8].mxu1 %vm242_vm2, %v1648_v8  ;;  %v2885_v8 = vor.u32 %v2884_v32, %v2881_v5  ;;  %v2982_v13 = vsel %vm780_vm4, %v2980_v23, %v2981_v7  ;;  %v2129_v5 = vrot.slane %v2127_v61, 3 }
  0xa2   : > { %11264 = vmatpush3.bf16.msra.mxu1 %v13392_v40  ;;  %11259 = vmatprep.mubr.msk.bf16.mxu1 %vm242_vm2, %v1650_v22  ;;  %v10306_v40 = vld [vmem:[%s15345_s1 + $0xa] sm:$0x3]  ;;  %v1885_v22 = vsel %vm780_vm4, %v1883_v10, %v1884_v38  ;;  %v10263_v38 = vld [vmem:[%s15345_s1 + $0x10] sm:$0x3]  ;;  %v3221_v10 = vshrl.u32 %v13578_v3, 16 }
  0xa3   : > { %12536 = vmatprep.subr.msk.bf16.mxu1 %vm255_vm0, %v10241_v11  ;;  %v3002_v19 = vsel %vm255_vm0, %v10306_v40, 0  ;;  %v10312_v11 = vld [vmem:[%s15345_s1 + $0xc] sm:$0x3] }
  0xa4   : > { %11346 = vmatmul.mubr.msk.bf16.vlgmr.msra.gmra.mrb[8].mxu0 %vm242_vm2, %v2745_v4  ;;  %v3077_v4 = vld [vmem:[%s12995_s9 + $0x60] sm:$0xc] }
  0xa5   : > { %11354 = vmatpush3.bf16.msra.mxu0 %v13411_v49  ;;  %11349 = vmatprep.mubr.msk.bf16.mxu0 %vm242_vm2, %v2747_v41  ;;  %v1770_v49 = vor.u32 %v1769_v26, %v1766_v25  ;;  %v2886_v25 = vsel %vm641_vm3, %v2876_v56, %v2885_v8  ;;  %v1888_v26 = vrot.slane %v13378_v36, 2  ;;  %v2985_v36 = vrot.slane %v13381_v37, 2 }
  0xa6   : > { %12545 = vmatprep.subr.msk.bf16.mxu0 %vm255_vm0, %v10306_v40  ;;  %v2014_v37 = vrot.slane %v13558_v9, 2  ;;  %v3132_v41 = vsel %vm255_vm0, %v10312_v11, 0  ;;  %v10313_v43 = vcombine.low %v3077_v4, %v13567_v21  ;;  %v3230_v4 = vshrl.u32 %v13601_v53, 16 }
  0xa7   : > { %v1771_v58 = vsel %vm641_vm3, %v1761_v30, %v1770_v49  ;;  %v1780_v45 = vsel %vm641_vm3, %v1770_v49, %v1779_v55  ;;  %v1889_v33 = vsel %vm780_vm4, %v1886_v16, %v1888_v26  ;;  %v2984_v30 = vsel %vm780_vm4, %v2981_v7, %v2983_v1  ;;  %v13605_v55 = vld [vmem:[%s12995_s9 + $0x78] sm:$0xff]   ;;  %v12702_v7 = vld [vmem:[%s12995_s9 + $0x80] ss:$0 sps:$4 sm:$0x33]  }
  0xa8   : > { %v1891_v35 = vsel %vm780_vm4, %v1888_v26, %v1890_v20  ;;  %v3110_v51 = vrot.slane %v10313_v43, 2  ;;  %v2988_v49 = vsel %vm780_vm4, %v2985_v36, %v2987_v47  ;;  %v3115_v56 = vrot.slane %v13605_v55, 2 }
  0xa9   : > { %11260 = vmatmul.mubr.msk.bf16.gmra.mrb[12].mxu1 %vm242_vm2, %v1652_v39  ;;  %v2986_v39 = vsel %vm780_vm4, %v2983_v1, %v2985_v36  ;;  %v3216_v32 = vshll.u32 %v10313_v43, 16  ;;  %v2145_v26 = vshll.u32 %v13590_v12, 16  ;;  %v2138_v36 = vrot.slane %v2136_v14, 3 }
  0xaa   : > { %11265 = vmatprep.mubr.msk.bf16.mxu1 %vm242_vm2, %v1762_v46  ;;  %v10322_v46 = vld [vmem:[%s15345_s1 + $0xe] sm:$0x3]  ;;  %v3112_v42 = vsel %vm780_vm4, %v3110_v51, %v3111_v52  ;;  %v3233_v20 = vshll.u32 %v13601_v53, 16  ;;  %v3242_v47 = vshll.u32 %v13605_v55, 16  ;;  %v3232_v51 = vrot.slane %v3230_v4, 2 }
  0xab   : > { %v3269_v8 = vsel %vm255_vm0, %v10322_v46, 0 }
  0xac   : > { %11350 = vmatmul.mubr.msk.bf16.gmra.mrb[12].mxu0 %vm242_vm2, %v2749_v54  ;;  %v2018_v54 = vrot.slane %v13590_v12, 2 }
  0xad   : > { %11355 = vmatprep.mubr.msk.bf16.mxu0 %vm242_vm2, %v2859_v57 }
  0xae   : > { %v2019_v15 = vsel %vm780_vm4, %v2016_v50, %v2018_v54 }
  0xb1   : > { %11266 = vmatmul.mubr.msk.bf16.vlgmr.msra.gmra.mrb[8].mxu1 %vm242_vm2, %v1771_v58 }
  0xb2   : > { %11274 = vmatpush3.bf16.msra.mxu1 %v1905_v24  ;;  %11269 = vmatprep.mubr.msk.bf16.mxu1 %vm242_vm2, %v1780_v45  ;;  %v13545_v24 = vld [vmem:[%s12995_s9 + $0x44] sm:$0xf]  ;;  %v2017_v45 = vsel %vm780_vm4, %v2014_v37, %v2016_v50 }
  0xb3   : > { %12537 = vmatprep.subr.msk.bf16.mxu1 %vm255_vm0, %v10247_v31  ;;  %v10248_v62 = vcombine.low %v1980_v2, %v13545_v24  ;;  %v12701_v31 = vld [vmem:[%s12995_s9 + $0x60] ss:$0 sps:$4 sm:$0x33]   ;;  %v2130_v2 = vor.u32 %v2129_v5, %v2126_v44 }
  0xb4   : > { %11356 = vmatmul.mubr.msk.bf16.vlgmr.msra.gmra.mrb[8].mxu0 %vm242_vm2, %v2868_v34  ;;  %v3213_v34 = vshrl.u32 %v10313_v43, 16  ;;  %v2020_v23 = vrot.slane %v12701_v31, 2 }
  0xb5   : > { %11364 = vmatpush3.bf16.msra.mxu0 %v3002_v19  ;;  %11359 = vmatprep.mubr.msk.bf16.mxu0 %vm242_vm2, %v2877_v18  ;;  %v2013_v40 = vrot.slane %v10248_v62, 2  ;;  %v2116_v57 = vshrl.u32 %v10248_v62, 16  ;;  %v2119_v58 = vshll.u32 %v10248_v62, 16  ;;  %v2133_v18 = vshrl.u32 %v13587_v48, 16 }
  0xb6   : > { %12546 = vmatprep.subr.msk.bf16.mxu0 %vm255_vm0, %v10312_v11  ;;  %v3224_v11 = vshll.u32 %v13578_v3, 16 }
  0xb7   : > { %v2015_v63 = vsel %vm780_vm4, %v2013_v40, %v2014_v37  ;;  %v2118_v17 = vrot.slane %v2116_v57, 2  ;;  %v2121_v19 = vrot.slane %v2119_v58, 3  ;;  %v2135_v62 = vrot.slane %v2133_v18, 2  ;;  %v13655_v58 = vld [vmem:[%s12995_s9 + $0x80] ss:$0 sps:$4 sm:$0x77]  }
  0xb8   : > { %v3226_v1 = vrot.slane %v3224_v11, 3  ;;  %v3117_v40 = vrot.slane %v12702_v7, 2  ;;  %v3251_v44 = vshll.u32 %v13655_v58, 16  ;;  %v3477_v7 = vld [vmem:[%s12995_s9 + $0x60] sm:$0xf] }
  0xb9   : > { %11270 = vmatmul.mubr.msk.bf16.gmra.mrb[12].mxu1 %vm242_vm2, %v1789_v6  ;;  %v3114_v6 = vsel %vm780_vm4, %v3111_v52, %v3113_v27  ;;  %v2122_v16 = vor.u32 %v2121_v19, %v2118_v17  ;;  %v3235_v52 = vrot.slane %v3233_v20, 3  ;;  %v3248_v19 = vshrl.u32 %v13655_v58, 16 }
  0xba   : > { %11275 = vmatprep.mubr.msk.bf16.mxu1 %vm242_vm2, %v1885_v22  ;;  %v3116_v22 = vsel %vm780_vm4, %v3113_v27, %v3115_v56  ;;  %v3253_v14 = vrot.slane %v3251_v44, 3 }
  0xbb   : > { %v2131_v37 = vsel %vm1015_vm6, %v2122_v16, %v2130_v2  ;;  %v3250_v18 = vrot.slane %v3248_v19, 2  ;;  %v13681_v16 = vld [vmem:[%s12995_s9 + $0x64] sm:$0xf] }
  0xbc   : > { %11360 = vmatmul.mubr.msk.bf16.gmra.mrb[12].mxu0 %vm242_vm2, %v2886_v25  ;;  %v2142_v25 = vshrl.u32 %v13590_v12, 16 }
  0xbd   : > { %11365 = vmatprep.mubr.msk.bf16.mxu0 %vm242_vm2, %v2982_v13  ;;  %v3215_v13 = vrot.slane %v3213_v34, 2 }
  0xc1   : > { %11276 = vmatmul.mubr.msk.bf16.vlgmr.msra.gmra.mrb[8].mxu1 %vm242_vm2, %v1887_v28  ;;  %v3218_v28 = vrot.slane %v3216_v32, 3  ;;  %v3344_v32 = vld [vmem:[%s12995_s9 + $0x60] sm:$0x8] }
  0xc2   : > { %11284 = vmatpush3.bf16.msra.mxu1 %v2035_v29  ;;  %11279 = vmatprep.mubr.msk.bf16.mxu1 %vm242_vm2, %v1889_v33  ;;  %v3223_v29 = vrot.slane %v3221_v10, 2  ;;  %v10328_v33 = vld [vmem:[%s15345_s1 + $0x10] sm:$0x3] }
  0xc3   : > { %12538 = vmatprep.subr.msk.bf16.mxu1 %vm255_vm0, %v10257_v59  ;;  %v2021_v59 = vsel %vm780_vm4, %v2018_v54, %v2020_v23  ;;  %v3219_v43 = vor.u32 %v3218_v28, %v3215_v13  ;;  %v3118_v54 = vsel %vm780_vm4, %v3115_v56, %v3117_v40  ;;  %v10329_v23 = vcombine.low %v3344_v32, %v13567_v21 }
  0xc4   : > { %11366 = vmatmul.mubr.msk.bf16.vlgmr.msra.gmra.mrb[8].mxu0 %vm242_vm2, %v2984_v30  ;;  %v13642_v30 = vld [vmem:[%s12995_s9 + $0x60] ss:$0 sps:$4 sm:$0x77]   ;;  %v13691_v21 = vcombine.low %v3477_v7, %v13681_v16  ;;  %v3350_v28 = vrot.slane %v13578_v3, 3 }
  0xc5   : > { %11374 = vmatpush3.bf16.msra.mxu0 %v3132_v41  ;;  %11369 = vmatprep.mubr.msk.bf16.mxu0 %vm242_vm2, %v2986_v39  ;;  %v2144_v41 = vrot.slane %v2142_v25, 2  ;;  %v2147_v39 = vrot.slane %v2145_v26, 3  ;;  %v2154_v50 = vshll.u32 %v13642_v30, 16  ;;  %v3254_v25 = vor.u32 %v3253_v14, %v3250_v18 }
  0xc6   : > { %12547 = vmatprep.subr.msk.bf16.mxu0 %vm255_vm0, %v10322_v46  ;;  %v3227_v46 = vor.u32 %v3226_v1, %v3223_v29  ;;  %v3349_v13 = vrot.slane %v10329_v23, 3  ;;  %v4574_v29 = vld [vmem:[%s12995_s9 + $0x80] sm:$0xf]  ;;  %v13698_v1 = vld [vmem:[%s12995_s9 + $0x84] sm:$0xf]  ;;  %v3514_v3 = vshll.u32 %v13691_v21, 16 }
  0xc7   : > { %v2148_v57 = vor.u32 %v2147_v39, %v2144_v41  ;;  %v2156_v17 = vrot.slane %v2154_v50, 3  ;;  %v13710_v20 = vcombine.low %v4574_v29, %v13698_v1  ;;  %v3512_v41 = vshrl.u32 %v13691_v21, 16 }
  0xc8   : > { %v3228_v60 = vsel %vm1015_vm6, %v3219_v43, %v3227_v46  ;;  %v3351_v4 = vsel %vm1154_vm7, %v3349_v13, %v3350_v28  ;;  %v3516_v39 = vrot.slane %v3514_v3, 1 }
  0xc9   : > { %11280 = vmatmul.mubr.msk.bf16.gmra.mrb[12].mxu1 %vm242_vm2, %v1891_v35  ;;  %v3239_v35 = vshrl.u32 %v13605_v55, 16 }
  0xca   : > { %11285 = vmatprep.mubr.msk.bf16.mxu1 %vm242_vm2, %v2015_v63  ;;  %v2139_v63 = vor.u32 %v2138_v36, %v2135_v62  ;;  %v2257_v36 = vrot.slane %v13590_v12, 3 }
  0xcb   : > { %v3241_v61 = vrot.slane %v3239_v35, 2  ;;  %v3485_v35 = vld [vmem:[%s15345_s1] sm:$0x3] }
  0xcc   : > { %11370 = vmatmul.mubr.msk.bf16.gmra.mrb[12].mxu0 %vm242_vm2, %v2988_v49  ;;  %v2151_v49 = vshrl.u32 %v13642_v30, 16  ;;  %v2140_v27 = vsel %vm1015_vm6, %v2130_v2, %v2139_v63  ;;  %v2149_v56 = vsel %vm1015_vm6, %v2139_v63, %v2148_v57  ;;  %v10400_v2 = vld [vmem:[%s15345_s1 + $0x2] sm:$0x3]  ;;  %v13730_v63 = vld [vmem:[%s12995_s9 + $0x70] sm:$0xff]  }
  0xcd   : > { %11375 = vmatprep.mubr.msk.bf16.mxu0 %vm242_vm2, %v3112_v42  ;;  %v3244_v42 = vrot.slane %v3242_v47, 3  ;;  %v13725_v47 = vld [vmem:[%s12995_s9 + $0x88] sm:$0xff]  }
  0xce   : > { %v2153_v31 = vrot.slane %v2151_v49, 2  ;;  %v3517_v49 = vor.u32 %v3516_v39, %v3512_v41  ;;  %v4620_v18 = vshrl.u32 %v13725_v47, 16  ;;  %v10414_v41 = vld [vmem:[%s15345_s1 + $0x4] sm:$0x3] }
  0xcf   : > { %v3245_v34 = vor.u32 %v3244_v42, %v3241_v61  ;;  %v4616_v42 = vshll.u32 %v13725_v47, 16 }
  0xd0   : > { %v2157_v11 = vor.u32 %v2156_v17, %v2153_v31  ;;  %v3356_v31 = vrot.slane %v13655_v58, 3 }
  0xd1   : > { %11286 = vmatmul.mubr.msk.bf16.vlgmr.msra.gmra.mrb[8].mxu1 %vm242_vm2, %v2017_v45  ;;  %v2274_v45 = vsel %vm255_vm0, %v10263_v38, 0  ;;  %v3255_v62 = vsel %vm1015_vm6, %v3245_v34, %v3254_v25 }
  0xd2   : > { %11294 = vmatpush3.bf16.msra.mxu1 %v2172_v0  ;;  %11289 = vmatprep.mubr.msk.bf16.mxu1 %vm242_vm2, %v2019_v15  ;;  %v2247_v0 = vld [vmem:[%s12995_s9 + $0x40] sm:$0x8]  ;;  %v3236_v15 = vor.u32 %v3235_v52, %v3232_v51  ;;  %v2259_v51 = vrot.slane %v13642_v30, 3  ;;  %v4657_v52 = vsel %vm255_vm0, %v10400_v2, 0  ;;  %v4582_v30 = vld [vmem:[%s15345_s1] sm:$0x3] }
  0xd3   : > { %12539 = vmatprep.subr.msk.bf16.mxu1 %vm255_vm0, %v10263_v38  ;;  %v10264_v5 = vcombine.low %v2247_v0, %v13545_v24  ;;  %v10335_v38 = vld [vmem:[%s15345_s1 + $0x2] sm:$0x3]  ;;  %v2253_v24 = vrot.slane %v13558_v9, 3  ;;  %v2158_v9 = vsel %vm1015_vm6, %v2148_v57, %v2157_v11  ;;  %v3527_v0 = vshll.u32 %v13730_v63, 16 }
  0xd4   : > { %11376 = vmatmul.mubr.msk.bf16.vlgmr.msra.gmra.mrb[8].mxu0 %vm242_vm2, %v3114_v6  ;;  %v3237_v10 = vsel %vm1015_vm6, %v3227_v46, %v3236_v15  ;;  %v3354_v46 = vrot.slane %v13605_v55, 3 }
  0xd5   : > { %11384 = vmatpush3.bf16.msra.mxu0 %v3269_v8  ;;  %11379 = vmatprep.mubr.msk.bf16.mxu0 %vm242_vm2, %v3116_v22  ;;  %v2252_v6 = vrot.slane %v10264_v5, 3  ;;  %v3371_v8 = vsel %vm255_vm0, %v10328_v33, 0  ;;  %v3246_v22 = vsel %vm1015_vm6, %v3236_v15, %v3245_v34  ;;  %v13751_v15 = vld [vmem:[%s12995_s9 + $0x90] sm:$0xff]   ;;  %v4618_v5 = vrot.slane %v4616_v42, 1  ;;  %v13760_v34 = vld [vmem:[%s12995_s9 + $0x98] sm:$0xff]  }
  0xd6   : > { %12548 = vmatprep.subr.msk.bf16.mxu0 %vm255_vm0, %v10328_v33  ;;  %v2255_v33 = vrot.slane %v13587_v48, 3  ;;  %v3352_v48 = vrot.slane %v13601_v53, 3  ;;  %v4611_v53 = vshll.u32 %v13710_v20, 16  ;;  %v4624_v58 = vshll.u32 %v13751_v15, 16 }
  0xd7   : > { %v2254_v26 = vsel %vm1154_vm7, %v2252_v6, %v2253_v24  ;;  %v3357_v11 = vsel %vm1154_vm7, %v3354_v46, %v3356_v31  ;;  %v4622_v25 = vor.u32 %v4620_v18, %v4618_v5 }
  0xd8   : > { %v2256_v40 = vsel %vm1154_vm7, %v2253_v24, %v2255_v33  ;;  %v2258_v12 = vsel %vm1154_vm7, %v2255_v33, %v2257_v36  ;;  %v3353_v55 = vsel %vm1154_vm7, %v3350_v28, %v3352_v48  ;;  %v3355_v57 = vsel %vm1154_vm7, %v3352_v48, %v3354_v46  ;;  %v13781_v28 = vld [vmem:[%s12995_s9 + $0xa0] ss:$0 sps:$4 sm:$0x11]  }
  0xd9   : > { %11290 = vmatmul.mubr.msk.bf16.gmra.mrb[12].mxu1 %vm242_vm2, %v2021_v59  ;;  %v13705_v59 = vld [vmem:[%s12995_s9 + $0x68] sm:$0xff]   ;;  %v4613_v61 = vrot.slane %v4611_v53, 1  ;;  %v4626_v7 = vrot.slane %v4624_v58, 1  ;;  %v4640_v48 = vshll.u32 %v13781_v28, 16  ;;  %v3703_v53 = vld [vmem:[%s12995_s9 + $0x60] sm:$0xe] }
  0xda   : > { %11295 = vmatprep.mubr.msk.bf16.mxu1 %vm242_vm2, %v2131_v37  ;;  %v3560_v37 = vsel %vm255_vm0, %v10335_v38, 0  ;;  %v3519_v43 = vshll.u32 %v13705_v59, 16 }
  0xdb   : > { %v4642_v46 = vrot.slane %v4640_v48, 1 }
  0xdc   : > { %11380 = vmatmul.mubr.msk.bf16.gmra.mrb[12].mxu0 %vm242_vm2, %v3118_v54  ;;  %v3521_v50 = vrot.slane %v3519_v43, 1  ;;  %v13738_v54 = vld [vmem:[%s12995_s9 + $0x78] sm:$0xff]  }
  0xdd   : > { %11385 = vmatprep.mubr.msk.bf16.mxu0 %vm242_vm2, %v3228_v60  ;;  %v4609_v60 = vshrl.u32 %v13710_v20, 16  ;;  %v3535_v19 = vshll.u32 %v13738_v54, 16  ;;  %v3713_v42 = vrot.slane %v13738_v54, 1 }
  0xde   : > { %v3522_v17 = vsel %vm205_vm1, %v3517_v49, %v3521_v50 }
  0xdf   : > { %v4614_v44 = vor.u32 %v4613_v61, %v4609_v60  ;;  %v3537_v6 = vrot.slane %v3535_v19, 1  ;;  %v4806_v61 = vrot.slane %v13725_v47, 1  ;;  %v10365_v19 = vld [vmem:[%s15345_s1 + $0x8] sm:$0x3] }
  0xe1   : > { %11296 = vmatmul.mubr.msk.bf16.vlgmr.msra.gmra.mrb[8].mxu1 %vm242_vm2, %v2140_v27  ;;  %v3523_v27 = vshrl.u32 %v13705_v59, 16  ;;  %v4619_v24 = vsel %vm205_vm1, %v4614_v44, %v4618_v5  ;;  %v4902_v44 = vld [vmem:[%s12995_s9 + $0x90] sm:$0xe]  ;;  %v13861_v5 = vld [vmem:[%s12995_s9 + $0x94] sm:$0xf] }
  0xe2   : > { %11304 = vmatpush3.bf16.msra.mxu1 %v2274_v45  ;;  %11299 = vmatprep.mubr.msk.bf16.mxu1 %vm242_vm2, %v2149_v56  ;;  %v2260_v45 = vsel %vm1154_vm7, %v2257_v36, %v2259_v51  ;;  %v3531_v56 = vshrl.u32 %v13730_v63, 16  ;;  %v10421_v18 = vcombine.low %v4902_v44, %v13861_v5 }
  0xe3   : > { %12549 = vmatprep.subr.msk.bf16.mxu1 %vm255_vm0, %v10335_v38  ;;  %v3529_v38 = vrot.slane %v3527_v0, 1  ;;  %v3525_v32 = vor.u32 %v3523_v27, %v3521_v50  ;;  %v3709_v50 = vrot.slane %v13705_v59, 1  ;;  %v3805_v0 = vld [vmem:[%s12995_s9 + $0x70] sm:$0xe] }
  0xe4   : > { %11386 = vmatmul.mubr.msk.bf16.vlgmr.msra.gmra.mrb[8].mxu0 %vm242_vm2, %v3237_v10  ;;  %v13766_v10 = vld [vmem:[%s12995_s9 + $0x80] ss:$0 sps:$4 sm:$0x11]  }
  0xe5   : > { %11394 = vmatpush3.bf16.msra.mxu0 %v3371_v8  ;;  %11389 = vmatprep.mubr.msk.bf16.mxu0 %vm242_vm2, %v3246_v22  ;;  %v3533_v14 = vor.u32 %v3531_v56, %v3529_v38  ;;  %v4628_v8 = vshrl.u32 %v13751_v15, 16  ;;  %v4632_v22 = vshll.u32 %v13760_v34, 16  ;;  %v3530_v23 = vsel %vm205_vm1, %v3525_v32, %v3529_v38 }
  0xe6   : > { %12558 = vmatprep.subr.msk.bf16.mxu0 %vm255_vm0, %v10400_v2  ;;  %v3539_v2 = vshrl.u32 %v13738_v54, 16  ;;  %v4810_v56 = vrot.slane %v13760_v34, 1 }
  0xe7   : > { %v3538_v13 = vsel %vm205_vm1, %v3533_v14, %v3537_v6  ;;  %v4630_v29 = vor.u32 %v4628_v8, %v4626_v7  ;;  %v4634_v33 = vrot.slane %v4632_v22, 1  ;;  %v13872_v14 = vld [vmem:[%s12995_s9 + $0x98] sm:$0xff]   ;;  %v4812_v8 = vrot.slane %v13781_v28, 1 }
  0xe8   : > { %v3541_v36 = vor.u32 %v3539_v2, %v3537_v6  ;;  %v13875_v6 = vld [vmem:[%s12995_s9 + $0x80] sm:$0xff]   ;;  %v4935_v2 = vrot.slane %v10421_v18, 1 }
  0xe9   : > { %11300 = vmatmul.mubr.msk.bf16.gmra.mrb[12].mxu1 %vm242_vm2, %v2158_v9  ;;  %v3543_v9 = vshll.u32 %v13766_v10, 16 }
  0xea   : > { %11305 = vmatprep.mubr.msk.bf16.mxu1 %vm242_vm2, %v2254_v26  ;;  %v3636_v26 = vsel %vm255_vm0, %v3485_v35, 0 }
  0xeb   : > { %v3545_v3 = vrot.slane %v3543_v9, 1  ;;  %v4936_v9 = vrot.slane %v13872_v14, 1 }
  0xec   : > { %11390 = vmatmul.mubr.msk.bf16.gmra.mrb[12].mxu0 %vm242_vm2, %v3255_v62  ;;  %v10349_v62 = vld [vmem:[%s15345_s1 + $0x4] sm:$0x3] }
  0xed   : > { %11395 = vmatprep.mubr.msk.bf16.mxu0 %vm242_vm2, %v3351_v4  ;;  %v4627_v4 = vsel %vm205_vm1, %v4622_v25, %v4626_v7  ;;  %v3546_v39 = vsel %vm205_vm1, %v3541_v36, %v3545_v3  ;;  %v3730_v51 = vsel %vm255_vm0, %v10349_v62, 0  ;;  %v3841_v25 = vrot.slane %v13875_v6, 1 }
  0xee   : > { %v4813_v3 = vsel %vm406_vm5, %v4810_v56, %v4812_v8  ;;  %v4937_v48 = vsel %vm406_vm5, %v4935_v2, %v4936_v9 }
  0xf1   : > { %11306 = vmatmul.mubr.msk.bf16.vlgmr.msra.gmra.mrb[8].mxu1 %vm242_vm2, %v2256_v40  ;;  %v4636_v40 = vshrl.u32 %v13760_v34, 16 }
  0xf2   : > { %11404 = vmatpush3.bf16.msra.mxu1 %v3560_v37  ;;  %11309 = vmatprep.mubr.msk.bf16.mxu1 %vm242_vm2, %v2258_v12  ;;  %v4733_v37 = vsel %vm255_vm0, %v4582_v30, 0  ;;  %v4635_v12 = vsel %vm205_vm1, %v4630_v29, %v4634_v33 }
  0xf3   : > { %12550 = vmatprep.subr.msk.bf16.mxu1 %vm255_vm0, %v3485_v35  ;;  %v4638_v43 = vor.u32 %v4636_v40, %v4634_v33 }
  0xf4   : > { %11396 = vmatmul.mubr.msk.bf16.vlgmr.msra.gmra.mrb[8].mxu0 %vm242_vm2, %v3353_v55  ;;  %v10350_v55 = vcombine.low %v3703_v53, %v13681_v16  ;;  %v4827_v16 = vsel %vm255_vm0, %v10414_v41, 0  ;;  %v5049_v53 = vshll.u32 %v13872_v14, 16 }
  0xf5   : > { %11494 = vmatpush3.bf16.msra.mxu0 %v4657_v52  ;;  %11399 = vmatprep.mubr.msk.bf16.mxu0 %vm242_vm2, %v3355_v57  ;;  %v4643_v35 = vsel %vm205_vm1, %v4638_v43, %v4642_v46  ;;  %v10355_v52 = vld [vmem:[%s15345_s1 + $0x6] sm:$0x3]  ;;  %v5038_v43 = vshrl.u32 %v10421_v18, 16  ;;  %v5041_v46 = vshll.u32 %v10421_v18, 16 }
  0xf6   : > { %12559 = vmatprep.subr.msk.bf16.mxu0 %vm255_vm0, %v4582_v30  ;;  %v3708_v49 = vrot.slane %v10350_v55, 1  ;;  %v10420_v57 = vld [vmem:[%s15345_s1 + $0x6] sm:$0x3]  ;;  %v3860_v27 = vsel %vm255_vm0, %v10355_v52, 0 }
  0xf7   : > { %v4957_v58 = vsel %vm255_vm0, %v10420_v57, 0 }
  0xf9   : > { %11310 = vmatmul.mubr.msk.bf16.gmra.mrb[12].mxu1 %vm242_vm2, %v2260_v45  ;;  %v13841_v45 = vld [vmem:[%s12995_s9 + $0x74] sm:$0xf] }
  0xfa   : > { %11405 = vmatprep.mubr.msk.bf16.mxu1 %vm242_vm2, %v3522_v17  ;;  %v13852_v17 = vld [vmem:[%s12995_s9 + $0x78] sm:$0xff]  }
  0xfb   : > { %v3952_v36 = vshll.u32 %v13852_v17, 16 }
  0xfc   : > { %11400 = vmatmul.mubr.msk.bf16.gmra.mrb[12].mxu0 %vm242_vm2, %v3357_v11 }
  0xfd   : > { %11495 = vmatprep.mubr.msk.bf16.mxu0 %vm242_vm2, %v4619_v24 }
 0x101   : > { %11406 = vmatmul.mubr.msk.bf16.vlgmr.msra.gmra.mrb[16].mxu1 %vm242_vm2, %v3530_v23  ;;  %v13888_v23 = vld [vmem:[%s12995_s9 + $0x88] sm:$0xff]  }
 0x102   : > { %11414 = vmatpush3.bf16.msra.mxu1 %v3636_v26  ;;  %11409 = vmatprep.mubr.msk.bf16.mxu1 %vm242_vm2, %v3538_v13  ;;  %v13897_v26 = vld [vmem:[%s12995_s9 + $0xa0] sm:$0xff]   ;;  %v3843_v40 = vrot.slane %v13888_v23, 1  ;;  %v3967_v44 = vshrl.u32 %v13888_v23, 16 }
 0x103   : > { %12551 = vmatprep.subr.msk.bf16.mxu1 %vm255_vm0, %v10349_v62  ;;  %v3949_v62 = vshrl.u32 %v13852_v17, 16 }
 0x104   : > { %11496 = vmatmul.mubr.msk.bf16.vlgmr.msra.gmra.mrb[16].mxu0 %vm242_vm2, %v4627_v4 }
 0x105   : > { %11504 = vmatpush3.bf16.msra.mxu0 %v4733_v37  ;;  %11499 = vmatprep.mubr.msk.bf16.mxu0 %vm242_vm2, %v4635_v12  ;;  %v4938_v12 = vrot.slane %v13897_v26, 1 }
 0x106   : > { %12560 = vmatprep.subr.msk.bf16.mxu0 %vm255_vm0, %v10414_v41  ;;  %v13915_v41 = vld [vmem:[%s12995_s9 + $0xa8] sm:$0xff]  }
 0x109   : > { %11410 = vmatmul.mubr.msk.bf16.gmra.mrb[20].mxu1 %vm242_vm2, %v3546_v39  ;;  %v12727_v39 = vld [vmem:[%s12995_s9 + $0x90] ss:$0 sps:$4 sm:$0x11]  }
 0x10a   : > { %11415 = vmatprep.mubr.msk.bf16.mxu1 %vm242_vm2, %v13691_v21  ;;  %v4800_v21 = vld [vmem:[%s12995_s9 + $0x80] sm:$0xe] }
 0x10c   : > { %11500 = vmatmul.mubr.msk.bf16.gmra.mrb[20].mxu0 %vm242_vm2, %v4643_v35  ;;  %v5046_v35 = vshrl.u32 %v13872_v14, 16 }
 0x10d   : > { %11505 = vmatprep.mubr.msk.bf16.mxu0 %vm242_vm2, %v13710_v20  ;;  %v10415_v20 = vcombine.low %v4800_v21, %v13698_v1  ;;  %v3711_v1 = vrot.slane %v13730_v63, 1  ;;  %v3954_v21 = vrot.slane %v3952_v36, 2  ;;  %v5067_v36 = vshll.u32 %v13915_v41, 16 }
 0x10f   : > { %v4805_v60 = vrot.slane %v10415_v20, 1  ;;  %v3714_v31 = vsel %vm406_vm5, %v3711_v1, %v3713_v42  ;;  %v3958_v20 = vshrl.u32 %v13875_v6, 16 }
 0x111   : > { %11416 = vmatmul.mubr.msk.bf16.vlgmr.msra.gmra.mrb[16].mxu1 %vm242_vm2, %v13705_v59  ;;  %v3710_v59 = vsel %vm406_vm5, %v3708_v49, %v3709_v50  ;;  %v4807_v30 = vsel %vm406_vm5, %v4805_v60, %v4806_v61  ;;  %v3997_v49 = vsel %vm255_vm0, %v10365_v19, 0  ;;  %v4940_v60 = vrot.slane %v13915_v41, 1 }
 0x112   : > { %11424 = vmatpush3.bf16.msra.mxu1 %v3730_v51  ;;  %11419 = vmatprep.mubr.msk.bf16.mxu1 %vm242_vm2, %v13730_v63  ;;  %v4808_v63 = vrot.slane %v13751_v15, 1 }
 0x113   : > { %12552 = vmatprep.subr.msk.bf16.mxu1 %vm255_vm0, %v10355_v52  ;;  %v3951_v52 = vrot.slane %v3949_v62, 1  ;;  %v13964_v62 = vld [vmem:[%s15346_s2] ss:$0 sm:$0xff] }
 0x114   : > { %11506 = vmatmul.mubr.msk.bf16.vlgmr.msra.gmra.mrb[16].mxu0 %vm242_vm2, %v13725_v47  ;;  %v3712_v47 = vsel %vm406_vm5, %v3709_v50, %v3711_v1  ;;  %v4809_v38 = vsel %vm406_vm5, %v4806_v61, %v4808_v63  ;;  %v4811_v11 = vsel %vm406_vm5, %v4808_v63, %v4810_v56  ;;  %v3844_v50 = vsel %vm406_vm5, %v3841_v25, %v3843_v40  ;;  %v13932_v1 = vld [vmem:[%s15345_s1 + $0xa] sm:$0x3] }
 0x115   : > { %11514 = vmatpush3.bf16.msra.mxu0 %v4827_v16  ;;  %11509 = vmatprep.mubr.msk.bf16.mxu0 %vm242_vm2, %v13751_v15  ;;  %v3715_v15 = vrot.slane %v13766_v10, 1  ;;  %v13880_v10 = vld [vmem:[%s15345_s1 + $0x8] sm:$0x3]  ;;  %v12728_v16 = vld [vmem:[%s12995_s9 + $0xb0] ss:$0 sps:$4 sm:$0x11]   ;;  %v3955_v63 = vor.u32 %v3954_v21, %v3951_v52 }
 0x116   : > { %12561 = vmatprep.subr.msk.bf16.mxu0 %vm255_vm0, %v10420_v57  ;;  %v3961_v57 = vshll.u32 %v13875_v6, 16  ;;  %v3845_v61 = vrot.slane %v12727_v39, 1  ;;  %v3960_v56 = vrot.slane %v3958_v20, 1  ;;  %v5069_v20 = vrot.slane %v5067_v36, 2 }
 0x117   : > { %v3716_v24 = vsel %vm406_vm5, %v3713_v42, %v3715_v15  ;;  %v5040_v42 = vrot.slane %v5038_v43, 1  ;;  %v3970_v15 = vshll.u32 %v13888_v23, 16  ;;  %v4078_v36 = vrot.slane %v13852_v17, 2 }
 0x119   : > { %11420 = vmatmul.mubr.msk.bf16.gmra.mrb[20].mxu1 %vm242_vm2, %v13738_v54  ;;  %v10356_v54 = vcombine.low %v3805_v0, %v13841_v45  ;;  %v5048_v0 = vrot.slane %v5046_v35, 1 }
 0x11a   : > { %11425 = vmatprep.mubr.msk.bf16.mxu1 %vm242_vm2, %v3710_v59  ;;  %v4939_v59 = vsel %vm406_vm5, %v4936_v9, %v4938_v12 }
 0x11b   : > { %v3838_v32 = vrot.slane %v10356_v54, 1  ;;  %v3941_v29 = vshrl.u32 %v10356_v54, 16  ;;  %v3944_v33 = vshll.u32 %v10356_v54, 16  ;;  %v5058_v54 = vshll.u32 %v13897_v26, 16 }
 0x11c   : > { %11510 = vmatmul.mubr.msk.bf16.gmra.mrb[20].mxu0 %vm242_vm2, %v13760_v34  ;;  %v3839_v34 = vrot.slane %v13852_v17, 1 }
 0x11d   : > { %11515 = vmatprep.mubr.msk.bf16.mxu0 %vm242_vm2, %v4807_v30  ;;  %v3943_v51 = vrot.slane %v3941_v29, 1  ;;  %v3946_v55 = vrot.slane %v3944_v33, 2  ;;  %v5043_v30 = vrot.slane %v5041_v46, 2  ;;  %v5060_v2 = vrot.slane %v5058_v54, 2 }
 0x11e   : > { %v3840_v22 = vsel %vm406_vm5, %v3838_v32, %v3839_v34  ;;  %v3842_v37 = vsel %vm406_vm5, %v3839_v34, %v3841_v25  ;;  %v4941_v32 = vsel %vm406_vm5, %v4938_v12, %v4940_v60  ;;  %v13946_v34 = vld [vmem:[%s12995_s9 + $0x90] ss:$0 sps:$4 sm:$0x33]   ;;  %v3969_v25 = vrot.slane %v3967_v44, 1 }
 0x11f   : > { %v5044_v18 = vor.u32 %v5043_v30, %v5040_v42  ;;  %v3972_v29 = vrot.slane %v3970_v15, 2  ;;  %v5064_v33 = vshrl.u32 %v13915_v41, 16  ;;  %v10377_v15 = vld [vmem:[%s15345_s1 + $0xc] sm:$0x3] }
 0x121   : > { %11426 = vmatmul.mubr.msk.bf16.vlgmr.msra.gmra.mrb[16].mxu1 %vm242_vm2, %v3712_v47  ;;  %v5051_v47 = vrot.slane %v5049_v53, 2  ;;  %v13986_v52 = vor.u32 %v3972_v29, %v3969_v25  ;;  %v5066_v21 = vrot.slane %v5064_v33, 1 }
 0x122   : > { %11434 = vmatpush3.bf16.msra.mxu1 %v3860_v27  ;;  %11429 = vmatprep.mubr.msk.bf16.mxu1 %vm242_vm2, %v3714_v31  ;;  %v3947_v27 = vor.u32 %v3946_v55, %v3943_v51  ;;  %v5055_v31 = vshrl.u32 %v13897_v26, 16 }
 0x123   : > { %12553 = vmatprep.subr.msk.bf16.mxu1 %vm255_vm0, %v10365_v19  ;;  %v3963_v19 = vrot.slane %v3961_v57, 2  ;;  %v5070_v44 = vor.u32 %v5069_v20, %v5066_v21  ;;  %v4174_v20 = vld [vmem:[%s12995_s9 + $0x80] sm:$0xc] }
 0x124   : > { %11516 = vmatmul.mubr.msk.bf16.vlgmr.msra.gmra.mrb[16].mxu0 %vm242_vm2, %v4809_v38  ;;  %v5094_v38 = vsel %vm255_vm0, %v13880_v10, 0  ;;  %v3956_v8 = vsel %vm641_vm3, %v3947_v27, %v3955_v63  ;;  %v4099_v27 = vsel %vm255_vm0, %v13932_v1, 0 }
 0x125   : > { %11524 = vmatpush3.bf16.msra.mxu0 %v4957_v58  ;;  %11519 = vmatprep.mubr.msk.bf16.mxu0 %vm242_vm2, %v4811_v11  ;;  %v3846_v58 = vsel %vm406_vm5, %v3843_v40, %v3845_v61  ;;  %v4942_v11 = vrot.slane %v12728_v16, 1  ;;  %v3964_v9 = vor.u32 %v3963_v19, %v3960_v56 }
 0x126   : > { %12562 = vmatprep.subr.msk.bf16.mxu0 %vm255_vm0, %v13880_v10  ;;  %v13957_v10 = vor.u32 %v5051_v47, %v5048_v0 }
 0x127   : > { %v4943_v43 = vsel %vm406_vm5, %v4940_v60, %v4942_v11  ;;  %v3965_v55 = vsel %vm641_vm3, %v3955_v63, %v3964_v9  ;;  %v3974_v56 = vsel %vm641_vm3, %v3964_v9, %v13986_v52 }
 0x128   : > { %v13890_v7 = vpop.f32.mrb[0].mxu1  ;;  %v5053_v46 = vsel %vm641_vm3, %v5044_v18, %v13957_v10 }
 0x129   : > { %v13899_v13 = vpop.f32.mrb[1].mxu1  ;;  %11430 = vmatmul.mubr.msk.bf16.gmra.mrb[20].mxu1 %vm242_vm2, %v3716_v24  ;;  %v13952_v24 = vld [vmem:[%s15345_s1 + $0xa] sm:$0x3] }
 0x12a   : > { %v13902_v28 = vpop.f32.mrb[2].mxu1  ;;  %11435 = vmatprep.mubr.msk.bf16.mxu1 %vm242_vm2, %v3840_v22  ;;  %v5057_v22 = vrot.slane %v5055_v31, 1 }
 0x12b   : > { %v13908_v4 = vpop.f32.mrb[3].mxu1 }
 0x12c   : > { %11520 = vmatmul.mubr.msk.bf16.gmra.mrb[20].mxu0 %vm242_vm2, %v4813_v3  ;;  %v3976_v3 = vshrl.u32 %v13946_v34, 16  ;;  %v5061_v35 = vor.u32 %v5060_v2, %v5057_v22 }
 0x12d   : > { %11525 = vmatprep.mubr.msk.bf16.mxu0 %vm242_vm2, %v4937_v48  ;;  %v3979_v48 = vshll.u32 %v13946_v34, 16 }
 0x12e   : > { %v3978_v57 = vrot.slane %v3976_v3, 1 }
 0x12f   : > { %v3981_v42 = vrot.slane %v3979_v48, 2 }
 0x131   : > { %11436 = vmatmul.mubr.msk.bf16.vlgmr.msra.gmra.mrb[16].mxu1 %vm242_vm2, %v3842_v37  ;;  %v13977_v37 = vld [vmem:[%s12995_s9 + $0xb0] ss:$0 sps:$4 sm:$0x33]   ;;  %v3982_v22 = vor.u32 %v3981_v42, %v3978_v57  ;;  %v14051_v57 = vld [vmem:[%s12995_s9 + $0x84] sm:$0xf]  ;;  %v5179_v42 = vrot.slane %v13915_v41, 2 }
 0x132   : > { %11444 = vmatpush3.bf16.msra.mxu1 %v3997_v49  ;;  %11439 = vmatprep.mubr.msk.bf16.mxu1 %vm242_vm2, %v3844_v50  ;;  %v5073_v30 = vshrl.u32 %v13977_v37, 16  ;;  %v5076_v63 = vshll.u32 %v13977_v37, 16 }
 0x133   : > { %12554 = vmatprep.subr.msk.bf16.mxu1 %vm255_vm0, %v13932_v1 }
 0x134   : > { %11526 = vmatmul.mubr.msk.bf16.vlgmr.msra.gmra.mrb[16].mxu0 %vm242_vm2, %v4939_v59  ;;  %v4072_v59 = vld [vmem:[%s12995_s9 + $0x70] sm:$0xc]  ;;  %v5075_v2 = vrot.slane %v5073_v30, 1  ;;  %v5078_v29 = vrot.slane %v5076_v63, 2  ;;  %v10387_v30 = vld [vmem:[%s15345_s1 + $0xe] sm:$0x3] }
 0x135   : > { %11534 = vmatpush3.bf16.msra.mxu0 %v5094_v38  ;;  %11529 = vmatprep.mubr.msk.bf16.mxu0 %vm242_vm2, %v4941_v32  ;;  %v10372_v19 = vcombine.low %v4072_v59, %v13841_v45  ;;  %v5062_v45 = vsel %vm641_vm3, %v13957_v10, %v5061_v35 }
 0x136   : > { %12563 = vmatprep.subr.msk.bf16.mxu0 %vm255_vm0, %v13952_v24 }
 0x137   : > { %v11217_v40 = vpop.f32.mrb[0].mxu0  ;;  %v4077_v33 = vrot.slane %v10372_v19, 2  ;;  %v5181_v19 = vrot.slane %v13977_v37, 2 }
 0x138   : > { %v11945_v12 = vadd.f32 %v11217_v40, %v13890_v7  ;;  %v1213_v39 = vpop.f32.mrb[1].mxu0 }
 0x139   : > { %11440 = vmatmul.mubr.msk.bf16.gmra.mrb[20].mxu1 %vm242_vm2, %v3846_v58  ;;  %v11946_v53 = vadd.f32 %v1213_v39, %v13899_v13  ;;  %v11218_v51 = vpop.f32.mrb[2].mxu0  ;;  %v5169_v58 = vld [vmem:[%s12995_s9 + $0x90] sm:$0xc]  ;;  %v5182_v37 = vsel %vm780_vm4, %v5179_v42, %v5181_v19 }
 0x13a   : > { %11445 = vmatprep.mubr.msk.bf16.mxu1 %vm242_vm2, %v3956_v8  ;;  %v1261_v7 = vadd.f32 %v11945_v12, %v13964_v62  ;;  %v11947_v49 = vadd.f32 %v11218_v51, %v13902_v28  ;;  %v1216_v50 = vpop.f32.mrb[3].mxu0  ;;  %v5196_v8 = vsel %vm255_vm0, %v13952_v24, 0  ;;  %v5071_v24 = vsel %vm641_vm3, %v5061_v35, %v5070_v44 }
 0x13b   : > { %v1259_v60 = vadd.f32 %v11946_v53, %v13964_v62  ;;  %v11948_v61 = vadd.f32 %v1216_v50, %v13908_v4  ;;  %v10437_v48 = vcombine.low %v5169_v58, %v13861_v5  ;;  %v3983_v53 = vsel %vm641_vm3, %v13986_v52, %v3982_v22 }
 0x13c   : > { %v11181_v16 = vpop.f32.mrb[4].mxu1  ;;  %v1269_v0 = vmax.f32 %v1261_v7, 0.0  ;;  %v1262_v47 = vadd.f32 %v11947_v49, %v13964_v62  ;;  %11530 = vmatmul.mubr.msk.bf16.gmra.mrb[20].mxu0 %vm242_vm2, %v4943_v43  ;;  %v10442_v43 = vld [vmem:[%s15345_s1 + $0xc] sm:$0x3]  ;;  %v5079_v51 = vor.u32 %v5078_v29, %v5075_v2  ;;  %v5175_v49 = vrot.slane %v13872_v14, 2 }
 0x13d   : > { %v751_v13 = vpop.f32.mrb[5].mxu1  ;;  %v1267_v31 = vmax.f32 %v1259_v60, 0.0  ;;  %v1260_v4 = vadd.f32 %v11948_v61, %v13964_v62  ;;  %11535 = vmatprep.mubr.msk.bf16.mxu0 %vm242_vm2, %v5053_v46  ;;  %v5174_v7 = vrot.slane %v10437_v48, 2  ;;  %v5177_v60 = vrot.slane %v13897_v26, 2 }
 0x13e   : > { %v11182_v28 = vpop.f32.mrb[6].mxu1  ;;  %1277 = vst [vmem:[%s14005_s25 + $0x10] sm:$0xff] %v1269_v0  ;;  %v1270_v1 = vmax.f32 %v1262_v47, 0.0  ;;  %v5080_v50 = vsel %vm641_vm3, %v5070_v44, %v5079_v51  ;;  %v5271_v0 = vld [vmem:[%s12995_s9 + $0xa0] sm:$0xc]  ;;  %v4084_v26 = vrot.slane %v13946_v34, 2 }
 0x13f   : > { %v754_v54 = vpop.f32.mrb[7].mxu1  ;;  %1275 = vst [vmem:[%s14005_s25] sm:$0xff] %v1267_v31  ;;  %v1268_v38 = vmax.f32 %v1260_v4, 0.0  ;;  %v11221_v32 = vpop.f32.mrb[4].mxu0  ;;  %v5176_v14 = vsel %vm780_vm4, %v5174_v7, %v5175_v49  ;;  %v14070_v47 = vld [vmem:[%s12995_s9 + $0xa4] sm:$0xf]  ;;  %v5326_v63 = vsel %vm255_vm0, %v10442_v43, 0  ;;  %v5180_v31 = vsel %vm780_vm4, %v5177_v60, %v5179_v42 }
 0x140   : > { %1278 = vst [vmem:[%s14005_s25 + $0x18] sm:$0xff] %v1270_v1  ;;  %v11949_v11 = vadd.f32 %v11221_v32, %v11181_v16  ;;  %v1229_v18 = vpop.f32.mrb[5].mxu0  ;;  %v4082_v16 = vrot.slane %v13888_v23, 2  ;;  %v10378_v23 = vcombine.low %v4174_v20, %v14051_v57  ;;  %v10443_v4 = vcombine.low %v5271_v0, %v14070_v47  ;;  %v10452_v34 = vld [vmem:[%s15345_s1 + $0xe] sm:$0x3]  ;;  %v14090_v1 = vld [vmem:[%s12995_s9 + $0x90] sm:$0xff]  }
 0x141   : > { %11446 = vmatmul.mubr.msk.bf16.vlgmr.msra.gmra.mrb[16].mxu1 %vm242_vm2, %v3965_v55  ;;  %1276 = vst [vmem:[%s14005_s25 + $0x8] sm:$0xff] %v1268_v38  ;;  %v11950_v9 = vadd.f32 %v1229_v18, %v751_v13  ;;  %v11222_v25 = vpop.f32.mrb[6].mxu0  ;;  %v4079_v55 = vsel %vm780_vm4, %v4077_v33, %v4078_v36  ;;  %v14061_v13 = vld [vmem:[%s12995_s9 + $0x88] sm:$0xff]   ;;  %v14093_v44 = vld [vmem:[%s12995_s9 + $0x98] sm:$0xff]   ;;  %v4210_v58 = vrot.slane %v14090_v1, 2  ;;  %v5463_v51 = vsel %vm255_vm0, %v10452_v34, 0 }
 0x142   : > { %11454 = vmatpush3.bf16.msra.mxu1 %v4099_v27  ;;  %11449 = vmatprep.mubr.msk.bf16.mxu1 %vm242_vm2, %v3974_v56  ;;  %v1265_v10 = vadd.f32 %v11949_v11, %v13964_v62  ;;  %v11951_v3 = vadd.f32 %v11222_v25, %v11182_v28  ;;  %v1232_v40 = vpop.f32.mrb[7].mxu0  ;;  %v5178_v28 = vsel %vm780_vm4, %v5175_v49, %v5177_v60  ;;  %v4207_v27 = vrot.slane %v10378_v23, 2  ;;  %v14108_v18 = vld [vmem:[%s12995_s9 + $0xb8] sm:$0xff]  }
 0x143   : > { %12555 = vmatprep.subr.msk.bf16.mxu1 %vm255_vm0, %v10377_v15  ;;  %v1263_v12 = vadd.f32 %v11950_v9, %v13964_v62  ;;  %v11952_v39 = vadd.f32 %v1232_v40, %v754_v54  ;;  %v4208_v41 = vrot.slane %v14061_v13, 2  ;;  %v14081_v54 = vld [vmem:[%s12995_s9 + $0xa8] sm:$0xff]   ;;  %v4085_v56 = vsel %vm780_vm4, %v4082_v16, %v4084_v26  ;;  %v12741_v40 = vld [vmem:[%s12995_s9 + $0xa0] ss:$0 sps:$4 sm:$0x33]  }
 0x144   : > { %v1273_v17 = vmax.f32 %v1265_v10, 0.0  ;;  %v1266_v46 = vadd.f32 %v11951_v3, %v13964_v62  ;;  %11536 = vmatmul.mubr.msk.bf16.vlgmr.msra.gmra.mrb[16].mxu0 %vm242_vm2, %v5062_v45  ;;  %v5304_v38 = vrot.slane %v10443_v4, 2  ;;  %v5305_v32 = vrot.slane %v14081_v54, 2  ;;  %v14101_v45 = vld [vmem:[%s12995_s9 + $0xb0] sm:$0xff]  }
 0x145   : > { %v1271_v35 = vmax.f32 %v1263_v12, 0.0  ;;  %v1264_v5 = vadd.f32 %v11952_v39, %v13964_v62  ;;  %11544 = vmatpush3.bf16.msra.mxu0 %v5196_v8  ;;  %11539 = vmatprep.mubr.msk.bf16.mxu0 %vm242_vm2, %v5071_v24  ;;  %v4080_v62 = vrot.slane %v13875_v6, 2  ;;  %v4229_v6 = vsel %vm255_vm0, %v10377_v15, 0 }
 0x146   : > { %1281 = vst [vmem:[%s14005_s25 + $0x30] sm:$0xff] %v1273_v17  ;;  %v1274_v21 = vmax.f32 %v1266_v46, 0.0  ;;  %12564 = vmatprep.subr.msk.bf16.mxu0 %vm255_vm0, %v10442_v43  ;;  %v4209_v15 = vsel %vm780_vm4, %v4207_v27, %v4208_v41  ;;  %v4212_v11 = vrot.slane %v14093_v44, 2  ;;  %v4310_v8 = vshrl.u32 %v10378_v23, 16  ;;  %v10393_v43 = vld [vmem:[%s15345_s1 + $0x10] sm:$0x3] }
 0x147   : > { %1279 = vst [vmem:[%s14005_s25 + $0x20] sm:$0xff] %v1271_v35  ;;  %v1272_v52 = vmax.f32 %v1264_v5, 0.0  ;;  %v4081_v59 = vsel %vm780_vm4, %v4078_v36, %v4080_v62  ;;  %v4083_v61 = vsel %vm780_vm4, %v4080_v62, %v4082_v16  ;;  %v4313_v22 = vshll.u32 %v10378_v23, 16 }
 0x148   : > { %1282 = vst [vmem:[%s14005_s25 + $0x38] sm:$0xff] %v1274_v21  ;;  %v4318_v2 = vshrl.u32 %v14061_v13, 16  ;;  %v4321_v9 = vshll.u32 %v14061_v13, 16  ;;  %v5306_v25 = vsel %vm780_vm4, %v5304_v38, %v5305_v32  ;;  %v5307_v29 = vrot.slane %v14101_v45, 2 }
 0x149   : > { %11450 = vmatmul.mubr.msk.bf16.gmra.mrb[20].mxu1 %vm242_vm2, %v3983_v53  ;;  %1280 = vst [vmem:[%s14005_s25 + $0x28] sm:$0xff] %v1272_v52  ;;  %v4211_v33 = vsel %vm780_vm4, %v4208_v41, %v4210_v58  ;;  %v4366_v36 = vsel %vm255_vm0, %v10387_v30, 0  ;;  %v4213_v10 = vsel %vm780_vm4, %v4210_v58, %v4212_v11  ;;  %v5309_v3 = vrot.slane %v14108_v18, 2  ;;  %v12742_v52 = vld [vmem:[%s12995_s9 + $0xc0] ss:$0 sps:$4 sm:$0x33]  }
 0x14a   : > { %11455 = vmatprep.mubr.msk.bf16.mxu1 %vm242_vm2, %v4079_v55  ;;  %v4312_v24 = vrot.slane %v4310_v8, 2  ;;  %v4315_v48 = vrot.slane %v4313_v22, 3  ;;  %v4320_v12 = vrot.slane %v4318_v2, 2  ;;  %v4323_v39 = vrot.slane %v4321_v9, 3 }
 0x14b   : > { %v5407_v17 = vshrl.u32 %v10443_v4, 16  ;;  %v5410_v46 = vshll.u32 %v10443_v4, 16  ;;  %v5415_v53 = vshrl.u32 %v14081_v54, 16  ;;  %v5418_v35 = vshll.u32 %v14081_v54, 16 }
 0x14c   : > { %11540 = vmatmul.mubr.msk.bf16.gmra.mrb[20].mxu0 %vm242_vm2, %v5080_v50  ;;  %v5308_v5 = vsel %vm780_vm4, %v5305_v32, %v5307_v29  ;;  %v5310_v55 = vsel %vm780_vm4, %v5307_v29, %v5309_v3  ;;  %v4214_v21 = vrot.slane %v12741_v40, 2  ;;  %v4327_v7 = vshrl.u32 %v14090_v1, 16  ;;  %v14158_v22 = vld [vmem:[%s12995_s9 + $0xc0] ss:$0 sps:$4 sm:$0x77]  }
 0x14d   : > { %11545 = vmatprep.mubr.msk.bf16.mxu0 %vm242_vm2, %v5176_v14  ;;  %v4330_v49 = vshll.u32 %v14090_v1, 16  ;;  %v4316_v62 = vor.u32 %v4315_v48, %v4312_v24  ;;  %v4324_v50 = vor.u32 %v4323_v39, %v4320_v12  ;;  %v4336_v16 = vshrl.u32 %v14093_v44, 16  ;;  %v4441_v29 = vld [vmem:[%s12995_s9 + $0x80] sm:$0x8] }
 0x14e   : > { %v4339_v14 = vshll.u32 %v14093_v44, 16  ;;  %v5409_v20 = vrot.slane %v5407_v17, 2  ;;  %v5420_v60 = vrot.slane %v5418_v35, 3  ;;  %v5424_v23 = vshrl.u32 %v14101_v45, 16 }
 0x14f   : > { %v4215_v42 = vsel %vm780_vm4, %v4212_v11, %v4214_v21  ;;  %v4332_v0 = vrot.slane %v4330_v49, 3  ;;  %v5427_v26 = vshll.u32 %v14101_v45, 16  ;;  %v5311_v27 = vrot.slane %v12742_v52, 2  ;;  %v5671_v52 = vld [vmem:[%s12995_s9 + $0xa0] sm:$0xf] }
 0x150   : > { %v4325_v41 = vsel %vm1015_vm6, %v4316_v62, %v4324_v50  ;;  %v5436_v19 = vshll.u32 %v14108_v18, 16  ;;  %v5442_v48 = vshrl.u32 %v14158_v22, 16  ;;  %v5445_v12 = vshll.u32 %v14158_v22, 16  ;;  %v14184_v62 = vld [vmem:[%s12995_s9 + $0xa4] sm:$0xf] }
 0x151   : > { %11456 = vmatmul.mubr.msk.bf16.vlgmr.msra.gmra.mrb[16].mxu1 %vm242_vm2, %v4081_v59  ;;  %v5412_v59 = vrot.slane %v5410_v46, 3  ;;  %v5429_v32 = vrot.slane %v5427_v26, 3  ;;  %v5312_v11 = vsel %vm780_vm4, %v5309_v3, %v5311_v27  ;;  %v10394_v39 = vcombine.low %v4441_v29, %v14051_v57  ;;  %v5538_v46 = vld [vmem:[%s12995_s9 + $0xa0] sm:$0x8] }
 0x152   : > { %11464 = vmatpush3.bf16.msra.mxu1 %v4229_v6  ;;  %11459 = vmatprep.mubr.msk.bf16.mxu1 %vm242_vm2, %v4083_v61  ;;  %v5417_v6 = vrot.slane %v5415_v53, 2  ;;  %v10458_v61 = vld [vmem:[%s15345_s1 + $0x10] sm:$0x3]  ;;  %v4447_v57 = vrot.slane %v14061_v13, 3  ;;  %v10459_v49 = vcombine.low %v5538_v46, %v14070_v47  ;;  %v14194_v47 = vcombine.low %v5671_v52, %v14184_v62 }
 0x153   : > { %12556 = vmatprep.subr.msk.bf16.mxu1 %vm255_vm0, %v10387_v30  ;;  %v4329_v30 = vrot.slane %v4327_v7, 2  ;;  %v5413_v4 = vor.u32 %v5412_v59, %v5409_v20  ;;  %v5565_v21 = vsel %vm255_vm0, %v10458_v61, 0  ;;  %v5544_v59 = vrot.slane %v14081_v54, 3 }
 0x154   : > { %11546 = vmatmul.mubr.msk.bf16.vlgmr.msra.gmra.mrb[16].mxu0 %vm242_vm2, %v5178_v28  ;;  %v14145_v28 = vld [vmem:[%s12995_s9 + $0xa0] ss:$0 sps:$4 sm:$0x77]   ;;  %v5543_v20 = vrot.slane %v10459_v49, 3  ;;  %v5708_v54 = vshll.u32 %v14194_v47, 16 }
 0x155   : > { %11554 = vmatpush3.bf16.msra.mxu0 %v5326_v63  ;;  %11549 = vmatprep.mubr.msk.bf16.mxu0 %vm242_vm2, %v5180_v31  ;;  %v4338_v63 = vrot.slane %v4336_v16, 2  ;;  %v4341_v31 = vrot.slane %v4339_v14, 3  ;;  %v4333_v38 = vor.u32 %v4332_v0, %v4329_v30  ;;  %v4348_v58 = vshll.u32 %v14145_v28, 16  ;;  %v14208_v30 = vld [vmem:[%s12995_s9 + $0xa8] sm:$0xff]  }
 0x156   : > { %12565 = vmatprep.subr.msk.bf16.mxu0 %vm255_vm0, %v10452_v34  ;;  %v5421_v34 = vor.u32 %v5420_v60, %v5417_v6  ;;  %v6768_v6 = vld [vmem:[%s12995_s9 + $0xc0] sm:$0xf]  ;;  %v14201_v60 = vld [vmem:[%s12995_s9 + $0xc4] sm:$0xf]  ;;  %v5545_v0 = vsel %vm1154_vm7, %v5543_v20, %v5544_v59 }
 0x157   : > { %v4342_v8 = vor.u32 %v4341_v31, %v4338_v63  ;;  %v4350_v24 = vrot.slane %v4348_v58, 3  ;;  %v14213_v26 = vcombine.low %v6768_v6, %v14201_v60  ;;  %v5706_v63 = vshrl.u32 %v14194_v47, 16 }
 0x158   : > { %v5422_v2 = vsel %vm1015_vm6, %v5413_v4, %v5421_v34  ;;  %v5710_v31 = vrot.slane %v5708_v54, 1  ;;  %v5713_v4 = vshll.u32 %v14208_v30, 16 }
 0x159   : > { %11460 = vmatmul.mubr.msk.bf16.gmra.mrb[20].mxu1 %vm242_vm2, %v4085_v56  ;;  %v5433_v56 = vshrl.u32 %v14108_v18, 16  ;;  %v4343_v3 = vsel %vm1015_vm6, %v4333_v38, %v4342_v8 }
 0x15a   : > { %11465 = vmatprep.mubr.msk.bf16.mxu1 %vm242_vm2, %v4209_v15  ;;  %v5426_v15 = vrot.slane %v5424_v23, 2  ;;  %v5715_v58 = vrot.slane %v5713_v4, 1 }
 0x15b   : > { %v5435_v9 = vrot.slane %v5433_v56, 2  ;;  %v5679_v56 = vld [vmem:[%s15345_s1] sm:$0x3] }
 0x15c   : > { %11550 = vmatmul.mubr.msk.bf16.gmra.mrb[20].mxu0 %vm242_vm2, %v5182_v37  ;;  %v4345_v37 = vshrl.u32 %v14145_v28, 16 }
 0x15d   : > { %11555 = vmatprep.mubr.msk.bf16.mxu0 %vm242_vm2, %v5306_v25  ;;  %v5438_v25 = vrot.slane %v5436_v19, 3  ;;  %v14228_v19 = vld [vmem:[%s12995_s9 + $0xc8] sm:$0xff]  }
 0x15e   : > { %v4347_v40 = vrot.slane %v4345_v37, 2  ;;  %v5711_v37 = vor.u32 %v5710_v31, %v5706_v63  ;;  %v10544_v63 = vld [vmem:[%s15345_s1 + $0x4] sm:$0x3] }
 0x15f   : > { %v5439_v17 = vor.u32 %v5438_v25, %v5435_v9  ;;  %v6810_v25 = vshll.u32 %v14228_v19, 16 }
 0x160   : > { %v4351_v35 = vor.u32 %v4350_v24, %v4347_v40  ;;  %v5550_v40 = vrot.slane %v14158_v22, 3  ;;  %v5716_v24 = vsel %vm205_vm1, %v5711_v37, %v5715_v58 }
 0x161   : > { %11466 = vmatmul.mubr.msk.bf16.vlgmr.msra.gmra.mrb[16].mxu1 %vm242_vm2, %v4211_v33  ;;  %v4468_v33 = vsel %vm255_vm0, %v10393_v43, 0 }
 0x162   : > { %11474 = vmatpush3.bf16.msra.mxu1 %v4366_v36  ;;  %11469 = vmatprep.mubr.msk.bf16.mxu1 %vm242_vm2, %v4213_v10  ;;  %v4334_v36 = vsel %vm1015_vm6, %v4324_v50, %v4333_v38  ;;  %v5430_v10 = vor.u32 %v5429_v32, %v5426_v15  ;;  %v10530_v50 = vld [vmem:[%s15345_s1 + $0x2] sm:$0x3]  ;;  %v4352_v13 = vsel %vm1015_vm6, %v4342_v8, %v4351_v35  ;;  %v14233_v15 = vld [vmem:[%s12995_s9 + $0xb0] sm:$0xff]   ;;  %v4453_v38 = vrot.slane %v14145_v28, 3  ;;  %v6776_v28 = vld [vmem:[%s15345_s1] sm:$0x3] }
 0x163   : > { %12557 = vmatprep.subr.msk.bf16.mxu1 %vm255_vm0, %v10393_v43  ;;  %v10465_v43 = vld [vmem:[%s15345_s1 + $0x2] sm:$0x3]  ;;  %v6851_v32 = vsel %vm255_vm0, %v10530_v50, 0  ;;  %v5721_v29 = vshll.u32 %v14233_v15, 16 }
 0x164   : > { %11556 = vmatmul.mubr.msk.bf16.vlgmr.msra.gmra.mrb[16].mxu0 %vm242_vm2, %v5308_v5  ;;  %v5431_v53 = vsel %vm1015_vm6, %v5421_v34, %v5430_v10  ;;  %v5444_v5 = vrot.slane %v5442_v48, 2  ;;  %v5440_v7 = vsel %vm1015_vm6, %v5430_v10, %v5439_v17  ;;  %v5548_v34 = vrot.slane %v14108_v18, 3  ;;  %v14254_v10 = vld [vmem:[%s12995_s9 + $0xd0] sm:$0xff]  }
 0x165   : > { %11564 = vmatpush3.bf16.msra.mxu0 %v5463_v51  ;;  %11559 = vmatprep.mubr.msk.bf16.mxu0 %vm242_vm2, %v5310_v55  ;;  %v5447_v51 = vrot.slane %v5445_v12, 3  ;;  %v4446_v55 = vrot.slane %v10394_v39, 3  ;;  %v6812_v39 = vrot.slane %v6810_v25, 1  ;;  %v6818_v22 = vshll.u32 %v14254_v10, 16 }
 0x166   : > { %12566 = vmatprep.subr.msk.bf16.mxu0 %vm255_vm0, %v10458_v61  ;;  %v4449_v61 = vrot.slane %v14090_v1, 3  ;;  %v5546_v1 = vrot.slane %v14101_v45, 3  ;;  %v6805_v45 = vshll.u32 %v14213_v26, 16  ;;  %v5551_v35 = vsel %vm1154_vm7, %v5548_v34, %v5550_v40 }
 0x167   : > { %v5448_v16 = vor.u32 %v5447_v51, %v5444_v5  ;;  %v4448_v14 = vsel %vm1154_vm7, %v4446_v55, %v4447_v57  ;;  %v6814_v5 = vshrl.u32 %v14228_v19, 16  ;;  %v6820_v52 = vrot.slane %v6818_v22, 1 }
 0x168   : > { %v4450_v27 = vsel %vm1154_vm7, %v4447_v57, %v4449_v61  ;;  %v5547_v18 = vsel %vm1154_vm7, %v5544_v59, %v5546_v1  ;;  %v5549_v8 = vsel %vm1154_vm7, %v5546_v1, %v5548_v34  ;;  %v6807_v9 = vrot.slane %v6805_v45, 1  ;;  %v14284_v59 = vld [vmem:[%s12995_s9 + $0xe0] ss:$0 sps:$4 sm:$0x11]   ;;  %v5897_v45 = vld [vmem:[%s12995_s9 + $0xa0] sm:$0xe] }
 0x169   : > { %11470 = vmatmul.mubr.msk.bf16.gmra.mrb[20].mxu1 %vm242_vm2, %v4215_v42  ;;  %v5449_v23 = vsel %vm1015_vm6, %v5439_v17, %v5448_v16  ;;  %v4451_v42 = vrot.slane %v14093_v44, 3  ;;  %v14263_v17 = vld [vmem:[%s12995_s9 + $0xd8] sm:$0xff]   ;;  %v6816_v16 = vor.u32 %v6814_v5, %v6812_v39  ;;  %v6834_v1 = vshll.u32 %v14284_v59, 16 }
 0x16a   : > { %11475 = vmatprep.mubr.msk.bf16.mxu1 %vm242_vm2, %v4325_v41  ;;  %v5754_v41 = vsel %vm255_vm0, %v10465_v43, 0 }
 0x16b   : > { %v4452_v44 = vsel %vm1154_vm7, %v4449_v61, %v4451_v42  ;;  %v6836_v34 = vrot.slane %v6834_v1, 1 }
 0x16c   : > { %11560 = vmatmul.mubr.msk.bf16.gmra.mrb[20].mxu0 %vm242_vm2, %v5312_v11  ;;  %v14241_v11 = vld [vmem:[%s12995_s9 + $0xb8] sm:$0xff]  }
 0x16d   : > { %11565 = vmatprep.mubr.msk.bf16.mxu0 %vm242_vm2, %v5422_v2  ;;  %v6803_v2 = vshrl.u32 %v14213_v26, 16  ;;  %v5729_v48 = vshll.u32 %v14241_v11, 16  ;;  %v5907_v25 = vrot.slane %v14241_v11, 1 }
 0x16f   : > { %v6808_v12 = vor.u32 %v6807_v9, %v6803_v2  ;;  %v5731_v55 = vrot.slane %v5729_v48, 1  ;;  %v7000_v9 = vrot.slane %v14228_v19, 1  ;;  %v10495_v48 = vld [vmem:[%s15345_s1 + $0x8] sm:$0x3] }
 0x171   : > { %11476 = vmatmul.mubr.msk.bf16.vlgmr.msra.gmra.mrb[16].mxu1 %vm242_vm2, %v4334_v36  ;;  %v5717_v36 = vshrl.u32 %v14208_v30, 16  ;;  %v6813_v57 = vsel %vm205_vm1, %v6808_v12, %v6812_v39  ;;  %v7096_v12 = vld [vmem:[%s12995_s9 + $0xd0] sm:$0xe]  ;;  %v14364_v39 = vld [vmem:[%s12995_s9 + $0xd4] sm:$0xf] }
 0x172   : > { %11484 = vmatpush3.bf16.msra.mxu1 %v4468_v33  ;;  %11479 = vmatprep.mubr.msk.bf16.mxu1 %vm242_vm2, %v4343_v3  ;;  %v4454_v33 = vsel %vm1154_vm7, %v4451_v42, %v4453_v38  ;;  %v5725_v3 = vshrl.u32 %v14233_v15, 16  ;;  %v10551_v5 = vcombine.low %v7096_v12, %v14364_v39 }
 0x173   : > { %12567 = vmatprep.subr.msk.bf16.mxu1 %vm255_vm0, %v10465_v43  ;;  %v5723_v43 = vrot.slane %v5721_v29, 1  ;;  %v5719_v46 = vor.u32 %v5717_v36, %v5715_v58  ;;  %v5903_v58 = vrot.slane %v14208_v30, 1  ;;  %v5999_v29 = vld [vmem:[%s12995_s9 + $0xb0] sm:$0xe] }
 0x174   : > { %11566 = vmatmul.mubr.msk.bf16.vlgmr.msra.gmra.mrb[16].mxu0 %vm242_vm2, %v5431_v53  ;;  %v14269_v53 = vld [vmem:[%s12995_s9 + $0xc0] ss:$0 sps:$4 sm:$0x11]  }
 0x175   : > { %11574 = vmatpush3.bf16.msra.mxu0 %v5565_v21  ;;  %11569 = vmatprep.mubr.msk.bf16.mxu0 %vm242_vm2, %v5440_v7  ;;  %v5727_v51 = vor.u32 %v5725_v3, %v5723_v43  ;;  %v6822_v21 = vshrl.u32 %v14254_v10, 16  ;;  %v6826_v7 = vshll.u32 %v14263_v17, 16  ;;  %v5724_v49 = vsel %vm205_vm1, %v5719_v46, %v5723_v43 }
 0x176   : > { %12576 = vmatprep.subr.msk.bf16.mxu0 %vm255_vm0, %v10530_v50  ;;  %v5733_v50 = vshrl.u32 %v14241_v11, 16  ;;  %v7004_v3 = vrot.slane %v14263_v17, 1 }
 0x177   : > { %v5732_v20 = vsel %vm205_vm1, %v5727_v51, %v5731_v55  ;;  %v6824_v6 = vor.u32 %v6822_v21, %v6820_v52  ;;  %v6828_v61 = vrot.slane %v6826_v7, 1  ;;  %v14375_v51 = vld [vmem:[%s12995_s9 + $0xd8] sm:$0xff]   ;;  %v7006_v21 = vrot.slane %v14284_v59, 1 }
 0x178   : > { %v5735_v42 = vor.u32 %v5733_v50, %v5731_v55  ;;  %v7130_v50 = vrot.slane %v14375_v51, 1 }
 0x179   : > { %11480 = vmatmul.mubr.msk.bf16.gmra.mrb[20].mxu1 %vm242_vm2, %v4352_v13  ;;  %v5737_v13 = vshll.u32 %v14269_v53, 16 }
 0x17a   : > { %11485 = vmatprep.mubr.msk.bf16.mxu1 %vm242_vm2, %v4448_v14  ;;  %v5830_v14 = vsel %vm255_vm0, %v5679_v56, 0 }
 0x17b   : > { %v5739_v54 = vrot.slane %v5737_v13, 1 }
 0x17c   : > { %11570 = vmatmul.mubr.msk.bf16.gmra.mrb[20].mxu0 %vm242_vm2, %v5449_v23  ;;  %v10479_v23 = vld [vmem:[%s15345_s1 + $0x4] sm:$0x3] }
 0x17d   : > { %11575 = vmatprep.mubr.msk.bf16.mxu0 %vm242_vm2, %v5545_v0  ;;  %v6821_v0 = vsel %vm205_vm1, %v6816_v16, %v6820_v52  ;;  %v5740_v31 = vsel %vm205_vm1, %v5735_v42, %v5739_v54  ;;  %v5924_v38 = vsel %vm255_vm0, %v10479_v23, 0  ;;  %v7129_v52 = vrot.slane %v10551_v5, 1  ;;  %v12767_v54 = vld [vmem:[%s12995_s9 + $0xd0] ss:$0 sps:$4 sm:$0x11]  }
 0x17f   : > { %v7131_v1 = vsel %vm406_vm5, %v7129_v52, %v7130_v50 }
 0x181   : > { %11486 = vmatmul.mubr.msk.bf16.vlgmr.msra.gmra.mrb[16].mxu1 %vm242_vm2, %v4450_v27  ;;  %v6830_v27 = vshrl.u32 %v14263_v17, 16 }
 0x182   : > { %11584 = vmatpush3.bf16.msra.mxu1 %v5754_v41  ;;  %11489 = vmatprep.mubr.msk.bf16.mxu1 %vm242_vm2, %v4452_v44  ;;  %v6927_v41 = vsel %vm255_vm0, %v6776_v28, 0  ;;  %v6829_v44 = vsel %vm205_vm1, %v6824_v6, %v6828_v61  ;;  %v14399_v6 = vld [vmem:[%s12995_s9 + $0xe0] sm:$0xff]  }
 0x183   : > { %12568 = vmatprep.subr.msk.bf16.mxu1 %vm255_vm0, %v5679_v56  ;;  %v6832_v4 = vor.u32 %v6830_v27, %v6828_v61  ;;  %v14402_v61 = vld [vmem:[%s12995_s9 + $0xe8] sm:$0xff]   ;;  %v7235_v27 = vshll.u32 %v10551_v5, 16 }
 0x184   : > { %11576 = vmatmul.mubr.msk.bf16.vlgmr.msra.gmra.mrb[16].mxu0 %vm242_vm2, %v5547_v18  ;;  %v10480_v18 = vcombine.low %v5897_v45, %v14184_v62  ;;  %v7021_v62 = vsel %vm255_vm0, %v10544_v63, 0  ;;  %v6191_v45 = vsel %vm255_vm0, %v10495_v48, 0 }
 0x185   : > { %11674 = vmatpush3.bf16.msra.mxu0 %v6851_v32  ;;  %11579 = vmatprep.mubr.msk.bf16.mxu0 %vm242_vm2, %v5549_v8  ;;  %v6837_v56 = vsel %vm205_vm1, %v6832_v4, %v6836_v34  ;;  %v10485_v32 = vld [vmem:[%s15345_s1 + $0x6] sm:$0x3] }
 0x186   : > { %12577 = vmatprep.subr.msk.bf16.mxu0 %vm255_vm0, %v6776_v28  ;;  %v5902_v37 = vrot.slane %v10480_v18, 1  ;;  %v10550_v8 = vld [vmem:[%s15345_s1 + $0x6] sm:$0x3]  ;;  %v6054_v36 = vsel %vm255_vm0, %v10485_v32, 0  ;;  %v7134_v18 = vrot.slane %v14402_v61, 1 }
 0x187   : > { %v7151_v22 = vsel %vm255_vm0, %v10550_v8, 0 }
 0x189   : > { %11490 = vmatmul.mubr.msk.bf16.gmra.mrb[20].mxu1 %vm242_vm2, %v4454_v33  ;;  %v14344_v33 = vld [vmem:[%s12995_s9 + $0xb4] sm:$0xf] }
 0x18a   : > { %11585 = vmatprep.mubr.msk.bf16.mxu1 %vm242_vm2, %v5716_v24  ;;  %v14355_v24 = vld [vmem:[%s12995_s9 + $0xb8] sm:$0xff]  }
 0x18c   : > { %11580 = vmatmul.mubr.msk.bf16.gmra.mrb[20].mxu0 %vm242_vm2, %v5551_v35 }
 0x18d   : > { %11675 = vmatprep.mubr.msk.bf16.mxu0 %vm242_vm2, %v6813_v57  ;;  %v14383_v57 = vld [vmem:[%s12995_s9 + $0xc0] sm:$0xff]  }
 0x18e   : > { %v6035_v59 = vrot.slane %v14383_v57, 1 }
 0x191   : > { %11586 = vmatmul.mubr.msk.bf16.vlgmr.msra.gmra.mrb[24].mxu1 %vm242_vm2, %v5724_v49  ;;  %v14389_v49 = vld [vmem:[%s12995_s9 + $0xc8] sm:$0xff]  }
 0x192   : > { %11594 = vmatpush3.bf16.msra.mxu1 %v5830_v14  ;;  %11589 = vmatprep.mubr.msk.bf16.mxu1 %vm242_vm2, %v5732_v20  ;;  %v6143_v14 = vshrl.u32 %v14355_v24, 16  ;;  %v6146_v20 = vshll.u32 %v14355_v24, 16  ;;  %v6037_v42 = vrot.slane %v14389_v49, 1 }
 0x193   : > { %12569 = vmatprep.subr.msk.bf16.mxu1 %vm255_vm0, %v10479_v23  ;;  %v7007_v23 = vsel %vm406_vm5, %v7004_v3, %v7006_v21  ;;  %v14457_v21 = vld [vmem:[%s15345_s1 + $0xa] sm:$0x3] }
 0x194   : > { %11676 = vmatmul.mubr.msk.bf16.vlgmr.msra.gmra.mrb[24].mxu0 %vm242_vm2, %v6821_v0  ;;  %v7232_v0 = vshrl.u32 %v10551_v5, 16  ;;  %v6145_v4 = vrot.slane %v6143_v14, 1  ;;  %v6148_v34 = vrot.slane %v6146_v20, 2  ;;  %v7258_v20 = vshrl.u32 %v14402_v61, 16 }
 0x195   : > { %11684 = vmatpush3.bf16.msra.mxu0 %v6927_v41  ;;  %11679 = vmatprep.mubr.msk.bf16.mxu0 %vm242_vm2, %v6829_v44  ;;  %v7240_v41 = vshrl.u32 %v14375_v51, 16  ;;  %v7243_v44 = vshll.u32 %v14375_v51, 16 }
 0x196   : > { %12578 = vmatprep.subr.msk.bf16.mxu0 %vm255_vm0, %v10544_v63 }
 0x199   : > { %11590 = vmatmul.mubr.msk.bf16.gmra.mrb[28].mxu1 %vm242_vm2, %v5740_v31 }
 0x19a   : > { %11595 = vmatprep.mubr.msk.bf16.mxu1 %vm242_vm2, %v14194_v47  ;;  %v6994_v47 = vld [vmem:[%s12995_s9 + $0xc0] sm:$0xe] }
 0x19c   : > { %11680 = vmatmul.mubr.msk.bf16.gmra.mrb[28].mxu0 %vm242_vm2, %v6837_v56 }
 0x19d   : > { %11685 = vmatprep.mubr.msk.bf16.mxu0 %vm242_vm2, %v14213_v26  ;;  %v10545_v26 = vcombine.low %v6994_v47, %v14201_v60  ;;  %v5905_v60 = vrot.slane %v14233_v15, 1  ;;  %v6039_v47 = vrot.slane %v12767_v54, 1  ;;  %v7261_v54 = vshll.u32 %v14402_v61, 16 }
 0x19f   : > { %v6999_v2 = vrot.slane %v10545_v26, 1  ;;  %v5908_v40 = vsel %vm406_vm5, %v5905_v60, %v5907_v25  ;;  %v14421_v26 = vld [vmem:[%s15345_s1 + $0xa] sm:$0x3] }
 0x1a1   : > { %11596 = vmatmul.mubr.msk.bf16.vlgmr.msra.gmra.mrb[24].mxu1 %vm242_vm2, %v14208_v30  ;;  %v5904_v30 = vsel %vm406_vm5, %v5902_v37, %v5903_v58  ;;  %v7001_v28 = vsel %vm406_vm5, %v6999_v2, %v7000_v9  ;;  %v12768_v37 = vld [vmem:[%s12995_s9 + $0xf0] ss:$0 sps:$4 sm:$0x11]   ;;  %v6152_v2 = vshrl.u32 %v14383_v57, 16 }
 0x1a2   : > { %11604 = vmatpush3.bf16.msra.mxu1 %v5924_v38  ;;  %11599 = vmatprep.mubr.msk.bf16.mxu1 %vm242_vm2, %v14233_v15  ;;  %v7002_v15 = vrot.slane %v14254_v10, 1  ;;  %v7132_v38 = vrot.slane %v14399_v6, 1  ;;  %v7136_v12 = vrot.slane %v12768_v37, 1 }
 0x1a3   : > { %12570 = vmatprep.subr.msk.bf16.mxu1 %vm255_vm0, %v10485_v32  ;;  %v6038_v32 = vsel %vm406_vm5, %v6035_v59, %v6037_v42 }
 0x1a4   : > { %11686 = vmatmul.mubr.msk.bf16.vlgmr.msra.gmra.mrb[24].mxu0 %vm242_vm2, %v14228_v19  ;;  %v5906_v19 = vsel %vm406_vm5, %v5903_v58, %v5905_v60  ;;  %v7003_v43 = vsel %vm406_vm5, %v7000_v9, %v7002_v15  ;;  %v7005_v35 = vsel %vm406_vm5, %v7002_v15, %v7004_v3  ;;  %v7234_v58 = vrot.slane %v7232_v0, 1 }
 0x1a5   : > { %11694 = vmatpush3.bf16.msra.mxu0 %v7021_v62  ;;  %11689 = vmatprep.mubr.msk.bf16.mxu0 %vm242_vm2, %v14254_v10  ;;  %v5909_v10 = vrot.slane %v14269_v53, 1  ;;  %v10560_v53 = vld [vmem:[%s15345_s1 + $0x8] sm:$0x3]  ;;  %v7237_v62 = vrot.slane %v7235_v27, 2  ;;  %v6155_v9 = vshll.u32 %v14383_v57, 16  ;;  %v6161_v15 = vshrl.u32 %v14389_v49, 16 }
 0x1a6   : > { %12579 = vmatprep.subr.msk.bf16.mxu0 %vm255_vm0, %v10550_v8  ;;  %v7242_v8 = vrot.slane %v7240_v41, 1  ;;  %v7135_v3 = vsel %vm406_vm5, %v7132_v38, %v7134_v18 }
 0x1a7   : > { %v5910_v55 = vsel %vm406_vm5, %v5907_v25, %v5909_v10  ;;  %v14426_v25 = vor.u32 %v6148_v34, %v6145_v4  ;;  %v14447_v10 = vld [vmem:[%s12995_s9 + $0xd0] ss:$0 sps:$4 sm:$0x33]   ;;  %v7137_v4 = vsel %vm406_vm5, %v7134_v18, %v7136_v12 }
 0x1a8   : > { %v6170_v0 = vshrl.u32 %v14447_v10, 16 }
 0x1a9   : > { %11600 = vmatmul.mubr.msk.bf16.gmra.mrb[28].mxu1 %vm242_vm2, %v14241_v11  ;;  %v10486_v11 = vcombine.low %v5999_v29, %v14344_v33  ;;  %v7252_v29 = vshll.u32 %v14399_v6, 16 }
 0x1aa   : > { %11605 = vmatprep.mubr.msk.bf16.mxu1 %vm242_vm2, %v5904_v30  ;;  %v7245_v30 = vrot.slane %v7243_v44, 2  ;;  %v6173_v44 = vshll.u32 %v14447_v10, 16 }
 0x1ab   : > { %v6032_v46 = vrot.slane %v10486_v11, 1  ;;  %v6135_v13 = vshrl.u32 %v10486_v11, 16  ;;  %v6138_v16 = vshll.u32 %v10486_v11, 16  ;;  %v7288_v11 = vsel %vm255_vm0, %v10560_v53, 0 }
 0x1ac   : > { %11690 = vmatmul.mubr.msk.bf16.gmra.mrb[28].mxu0 %vm242_vm2, %v14263_v17  ;;  %v6033_v17 = vrot.slane %v14355_v24, 1  ;;  %v7254_v52 = vrot.slane %v7252_v29, 2 }
 0x1ad   : > { %11695 = vmatprep.mubr.msk.bf16.mxu0 %vm242_vm2, %v7001_v28  ;;  %v6137_v63 = vrot.slane %v6135_v13, 1  ;;  %v6140_v31 = vrot.slane %v6138_v16, 2  ;;  %v7249_v28 = vshrl.u32 %v14399_v6, 16  ;;  %v6163_v16 = vrot.slane %v6161_v15, 1 }
 0x1ae   : > { %v6034_v7 = vsel %vm406_vm5, %v6032_v46, %v6033_v17  ;;  %v6036_v56 = vsel %vm406_vm5, %v6033_v17, %v6035_v59  ;;  %v7238_v46 = vor.u32 %v7237_v62, %v7234_v58  ;;  %v14449_v17 = vor.u32 %v7245_v30, %v7242_v8 }
 0x1af   : > { %v6141_v60 = vor.u32 %v6140_v31, %v6137_v63  ;;  %v7260_v58 = vrot.slane %v7258_v20, 1  ;;  %v6293_v8 = vsel %vm255_vm0, %v14421_v26, 0  ;;  %v7263_v30 = vrot.slane %v7261_v54, 2 }
 0x1b0   : > { %v7247_v34 = vsel %vm641_vm3, %v7238_v46, %v14449_v17  ;;  %v14497_v15 = vrot.slane %v6173_v44, 2 }
 0x1b1   : > { %11606 = vmatmul.mubr.msk.bf16.vlgmr.msra.gmra.mrb[24].mxu1 %vm242_vm2, %v5906_v19  ;;  %v7133_v19 = vsel %vm406_vm5, %v7130_v50, %v7132_v38 }
 0x1b2   : > { %11614 = vmatpush3.bf16.msra.mxu1 %v6054_v36  ;;  %11609 = vmatprep.mubr.msk.bf16.mxu1 %vm242_vm2, %v5908_v40  ;;  %v14434_v36 = vld [vmem:[%s15346_s2] ss:$0 sm:$0xff]  ;;  %v6164_v40 = vshll.u32 %v14389_v49, 16 }
 0x1b3   : > { %12571 = vmatprep.subr.msk.bf16.mxu1 %vm255_vm0, %v10495_v48  ;;  %v6040_v48 = vsel %vm406_vm5, %v6037_v42, %v6039_v47 }
 0x1b4   : > { %11696 = vmatmul.mubr.msk.bf16.vlgmr.msra.gmra.mrb[24].mxu0 %vm242_vm2, %v7003_v43  ;;  %v6166_v14 = vrot.slane %v6164_v40, 2  ;;  %v6266_v40 = vld [vmem:[%s12995_s9 + $0xb0] sm:$0xc] }
 0x1b5   : > { %11704 = vmatpush3.bf16.msra.mxu0 %v7151_v22  ;;  %11699 = vmatprep.mubr.msk.bf16.mxu0 %vm242_vm2, %v7005_v35  ;;  %v6154_v22 = vrot.slane %v6152_v2, 1  ;;  %v6157_v35 = vrot.slane %v6155_v9, 2  ;;  %v14491_v2 = vrot.slane %v6170_v0, 1 }
 0x1b6   : > { %12580 = vmatprep.subr.msk.bf16.mxu0 %vm255_vm0, %v10560_v53  ;;  %v14485_v37 = vor.u32 %v6166_v14, %v6163_v16  ;;  %v7264_v16 = vor.u32 %v7263_v30, %v7260_v58  ;;  %v10507_v14 = vld [vmem:[%s15345_s1 + $0xc] sm:$0x3] }
 0x1b7   : > { %v6158_v41 = vor.u32 %v6157_v35, %v6154_v22 }
 0x1b9   : > { %11610 = vmatmul.mubr.msk.bf16.gmra.mrb[28].mxu1 %vm242_vm2, %v5910_v55  ;;  %v6150_v55 = vsel %vm641_vm3, %v6141_v60, %v14426_v25  ;;  %v6168_v22 = vsel %vm641_vm3, %v6158_v41, %v14485_v37 }
 0x1ba   : > { %11615 = vmatprep.mubr.msk.bf16.mxu1 %vm242_vm2, %v6034_v7  ;;  %v7251_v7 = vrot.slane %v7249_v28, 1 }
 0x1bc   : > { %11700 = vmatmul.mubr.msk.bf16.gmra.mrb[28].mxu0 %vm242_vm2, %v7007_v23 }
 0x1bd   : > { %11705 = vmatprep.mubr.msk.bf16.mxu0 %vm242_vm2, %v7131_v1 }
 0x1c1   : > { %11616 = vmatmul.mubr.msk.bf16.vlgmr.msra.gmra.mrb[24].mxu1 %vm242_vm2, %v6036_v56  ;;  %v14477_v56 = vor.u32 %v7254_v52, %v7251_v7  ;;  %v10502_v52 = vcombine.low %v6266_v40, %v14344_v33 }
 0x1c2   : > { %11624 = vmatpush3.bf16.msra.mxu1 %v6191_v45  ;;  %11619 = vmatprep.mubr.msk.bf16.mxu1 %vm242_vm2, %v6038_v32  ;;  %v14480_v45 = vld [vmem:[%s12995_s9 + $0xf0] ss:$0 sps:$4 sm:$0x33]  }
 0x1c3   : > { %12572 = vmatprep.subr.msk.bf16.mxu1 %vm255_vm0, %v14421_v26  ;;  %v7267_v12 = vshrl.u32 %v14480_v45, 16  ;;  %v7270_v35 = vshll.u32 %v14480_v45, 16  ;;  %v7256_v33 = vsel %vm641_vm3, %v14449_v17, %v14477_v56 }
 0x1c4   : > { %v11307_v43 = vpop.f32.mrb[8].mxu1  ;;  %11706 = vmatmul.mubr.msk.bf16.vlgmr.msra.gmra.mrb[24].mxu0 %vm242_vm2, %v7133_v19  ;;  %v6159_v19 = vsel %vm641_vm3, %v14426_v25, %v6158_v41 }
 0x1c5   : > { %v2358_v5 = vadd.f32 %v11307_v43, %v14434_v36  ;;  %v2310_v53 = vpop.f32.mrb[9].mxu1  ;;  %11714 = vmatpush3.bf16.msra.mxu0 %v7288_v11  ;;  %11709 = vmatprep.mubr.msk.bf16.mxu0 %vm242_vm2, %v7135_v3  ;;  %v7269_v41 = vrot.slane %v7267_v12, 1  ;;  %v14583_v12 = vld [vmem:[%s12995_s9 + $0xe4] sm:$0xf] }
 0x1c6   : > { %v2356_v50 = vadd.f32 %v14434_v36, %v2310_v53  ;;  %v11308_v13 = vpop.f32.mrb[10].mxu1  ;;  %12581 = vmatprep.subr.msk.bf16.mxu0 %vm255_vm0, %v14457_v21 }
 0x1c7   : > { %v2366_v59 = vmax.f32 %v2358_v5, 0.0  ;;  %v2359_v23 = vadd.f32 %v11308_v13, %v14434_v36  ;;  %v2313_v42 = vpop.f32.mrb[11].mxu1  ;;  %v11397_v63 = vpop.f32.mrb[8].mxu0 }
 0x1c8   : > { %v2364_v27 = vmax.f32 %v2356_v50, 0.0  ;;  %v2357_v1 = vadd.f32 %v14434_v36, %v2313_v42  ;;  %v3455_v38 = vadd.f32 %v11397_v63, %v14434_v36  ;;  %v3407_v32 = vpop.f32.mrb[9].mxu0  ;;  %v7363_v42 = vld [vmem:[%s12995_s9 + $0xd0] sm:$0xc]  ;;  %v6271_v63 = vrot.slane %v10502_v52, 2  ;;  %v14606_v52 = vld [vmem:[%s12995_s9 + $0xd8] sm:$0xff]  }
 0x1c9   : > { %2374 = vst [vmem:[%s14005_s25 + $0x50] sm:$0xff] %v2366_v59  ;;  %v2367_v31 = vmax.f32 %v2359_v23, 0.0  ;;  %11620 = vmatmul.mubr.msk.bf16.gmra.mrb[28].mxu1 %vm242_vm2, %v6040_v48  ;;  %v3453_v18 = vadd.f32 %v14434_v36, %v3407_v32  ;;  %v11398_v62 = vpop.f32.mrb[10].mxu0  ;;  %v7390_v23 = vsel %vm255_vm0, %v14457_v21, 0  ;;  %v7272_v21 = vrot.slane %v7270_v35, 2 }
 0x1ca   : > { %2372 = vst [vmem:[%s14005_s25 + $0x40] sm:$0xff] %v2364_v27  ;;  %v2365_v47 = vmax.f32 %v2357_v1, 0.0  ;;  %11625 = vmatprep.mubr.msk.bf16.mxu1 %vm242_vm2, %v6150_v55  ;;  %v3463_v9 = vmax.f32 %v3455_v38, 0.0  ;;  %v3456_v60 = vadd.f32 %v11398_v62, %v14434_v36  ;;  %v3410_v28 = vpop.f32.mrb[11].mxu0  ;;  %v6176_v1 = vor.u32 %v14497_v15, %v14491_v2 }
 0x1cb   : > { %2375 = vst [vmem:[%s14005_s25 + $0x58] sm:$0xff] %v2367_v31  ;;  %v3461_v11 = vmax.f32 %v3453_v18, 0.0  ;;  %v3454_v26 = vadd.f32 %v14434_v36, %v3410_v28  ;;  %v6272_v31 = vrot.slane %v14355_v24, 2  ;;  %v7265_v32 = vsel %vm641_vm3, %v14477_v56, %v7264_v16  ;;  %v10572_v24 = vld [vmem:[%s15345_s1 + $0xc] sm:$0x3] }
 0x1cc   : > { %2373 = vst [vmem:[%s14005_s25 + $0x48] sm:$0xff] %v2365_v47  ;;  %v11311_v29 = vpop.f32.mrb[12].mxu1  ;;  %3471 = vst [vmem:[%s14005_s25 + $0x90] sm:$0xff] %v3463_v9  ;;  %v3464_v43 = vmax.f32 %v3456_v60, 0.0  ;;  %11710 = vmatmul.mubr.msk.bf16.gmra.mrb[28].mxu0 %vm242_vm2, %v7137_v4  ;;  %v10567_v47 = vcombine.low %v7363_v42, %v14364_v39  ;;  %v7273_v39 = vor.u32 %v7272_v21, %v7269_v41  ;;  %v7369_v2 = vrot.slane %v14375_v51, 2 }
 0x1cd   : > { %v2362_v3 = vadd.f32 %v11311_v29, %v14434_v36  ;;  %v2326_v48 = vpop.f32.mrb[13].mxu1  ;;  %3469 = vst [vmem:[%s14005_s25 + $0x80] sm:$0xff] %v3461_v11  ;;  %v3462_v5 = vmax.f32 %v3454_v26, 0.0  ;;  %11715 = vmatprep.mubr.msk.bf16.mxu0 %vm242_vm2, %v7247_v34  ;;  %v6276_v60 = vrot.slane %v14389_v49, 2  ;;  %v6368_v29 = vld [vmem:[%s12995_s9 + $0xc0] sm:$0xc] }
 0x1ce   : > { %v2360_v46 = vadd.f32 %v14434_v36, %v2326_v48  ;;  %v11312_v25 = vpop.f32.mrb[14].mxu1  ;;  %3472 = vst [vmem:[%s14005_s25 + $0x98] sm:$0xff] %v3464_v43  ;;  %v7368_v56 = vrot.slane %v10567_v47, 2  ;;  %v7274_v9 = vsel %vm641_vm3, %v7264_v16, %v7273_v39  ;;  %v14564_v51 = vld [vmem:[%s12995_s9 + $0xc4] sm:$0xf]  ;;  %v6423_v15 = vsel %vm255_vm0, %v10507_v14, 0 }
 0x1cf   : > { %v2370_v53 = vmax.f32 %v2362_v3, 0.0  ;;  %v2363_v55 = vadd.f32 %v11312_v25, %v14434_v36  ;;  %v2329_v7 = vpop.f32.mrb[15].mxu1  ;;  %3470 = vst [vmem:[%s14005_s25 + $0x88] sm:$0xff] %v3462_v5  ;;  %v11401_v20 = vpop.f32.mrb[12].mxu0  ;;  %v10508_v49 = vcombine.low %v6368_v29, %v14564_v51  ;;  %v14574_v11 = vld [vmem:[%s12995_s9 + $0xc8] sm:$0xff]   ;;  %v7373_v26 = vrot.slane %v14402_v61, 2 }
 0x1d0   : > { %v2368_v50 = vmax.f32 %v2360_v46, 0.0  ;;  %v2361_v13 = vadd.f32 %v14434_v36, %v2329_v7  ;;  %v3459_v54 = vadd.f32 %v11401_v20, %v14434_v36  ;;  %v3423_v0 = vpop.f32.mrb[13].mxu0  ;;  %v7370_v28 = vsel %vm780_vm4, %v7368_v56, %v7369_v2  ;;  %v10517_v3 = vld [vmem:[%s15345_s1 + $0xe] sm:$0x3]  ;;  %v7465_v48 = vld [vmem:[%s12995_s9 + $0xe0] sm:$0xc] }
 0x1d1   : > { %2378 = vst [vmem:[%s14005_s25 + $0x70] sm:$0xff] %v2370_v53  ;;  %v2371_v59 = vmax.f32 %v2363_v55, 0.0  ;;  %11626 = vmatmul.mubr.msk.bf16.vlgmr.msra.gmra.mrb[24].mxu1 %vm242_vm2, %v6159_v19  ;;  %v3457_v44 = vadd.f32 %v14434_v36, %v3423_v0  ;;  %v11402_v17 = vpop.f32.mrb[14].mxu0  ;;  %v6401_v46 = vrot.slane %v10508_v49, 2  ;;  %v6402_v61 = vrot.slane %v14574_v11, 2  ;;  %v14594_v5 = vld [vmem:[%s12995_s9 + $0xe8] sm:$0xff]  }
 0x1d2   : > { %2376 = vst [vmem:[%s14005_s25 + $0x60] sm:$0xff] %v2368_v50  ;;  %v2369_v27 = vmax.f32 %v2361_v13, 0.0  ;;  %11634 = vmatpush3.bf16.msra.mxu1 %v6293_v8  ;;  %11629 = vmatprep.mubr.msk.bf16.mxu1 %vm242_vm2, %v6168_v22  ;;  %v3467_v4 = vmax.f32 %v3459_v54, 0.0  ;;  %v3460_v34 = vadd.f32 %v11402_v17, %v14434_v36  ;;  %v3426_v38 = vpop.f32.mrb[15].mxu0  ;;  %v6177_v8 = vsel %vm641_vm3, %v14485_v37, %v6176_v1  ;;  %v14603_v7 = vld [vmem:[%s12995_s9 + $0xd0] sm:$0xff]  }
 0x1d3   : > { %2379 = vst [vmem:[%s14005_s25 + $0x78] sm:$0xff] %v2371_v59  ;;  %12573 = vmatprep.subr.msk.bf16.mxu1 %vm255_vm0, %v10507_v14  ;;  %v3465_v58 = vmax.f32 %v3457_v44, 0.0  ;;  %v3458_v18 = vadd.f32 %v14434_v36, %v3426_v38  ;;  %v6273_v36 = vsel %vm780_vm4, %v6271_v63, %v6272_v31  ;;  %v6274_v37 = vrot.slane %v14383_v57, 2  ;;  %v14614_v14 = vld [vmem:[%s12995_s9 + $0xf0] sm:$0xff]  }
 0x1d4   : > { %2377 = vst [vmem:[%s14005_s25 + $0x68] sm:$0xff] %v2369_v27  ;;  %3475 = vst [vmem:[%s14005_s25 + $0xb0] sm:$0xff] %v3467_v4  ;;  %v3468_v62 = vmax.f32 %v3460_v34, 0.0  ;;  %11716 = vmatmul.mubr.msk.bf16.vlgmr.msra.gmra.mrb[24].mxu0 %vm242_vm2, %v7256_v33  ;;  %v7371_v57 = vrot.slane %v14399_v6, 2  ;;  %v6278_v6 = vrot.slane %v14447_v10, 2  ;;  %v7520_v25 = vsel %vm255_vm0, %v10572_v24, 0 }
 0x1d5   : > { %3473 = vst [vmem:[%s14005_s25 + $0xa0] sm:$0xff] %v3465_v58  ;;  %v3466_v30 = vmax.f32 %v3458_v18, 0.0  ;;  %11724 = vmatpush3.bf16.msra.mxu0 %v7390_v23  ;;  %11719 = vmatprep.mubr.msk.bf16.mxu0 %vm242_vm2, %v7265_v32  ;;  %v6275_v19 = vsel %vm780_vm4, %v6272_v31, %v6274_v37  ;;  %v6277_v40 = vsel %vm780_vm4, %v6274_v37, %v6276_v60  ;;  %v10582_v10 = vld [vmem:[%s15345_s1 + $0xe] sm:$0x3]  ;;  %v7375_v55 = vrot.slane %v14480_v45, 2  ;;  %v14621_v33 = vld [vmem:[%s12995_s9 + $0xf8] sm:$0xff]  }
 0x1d6   : > { %3476 = vst [vmem:[%s14005_s25 + $0xb8] sm:$0xff] %v3468_v62  ;;  %12582 = vmatprep.subr.msk.bf16.mxu0 %vm255_vm0, %v10572_v24  ;;  %v7372_v43 = vsel %vm780_vm4, %v7369_v2, %v7371_v57  ;;  %v7374_v22 = vsel %vm780_vm4, %v7371_v57, %v7373_v26  ;;  %v10573_v35 = vcombine.low %v7465_v48, %v14583_v12  ;;  %v7499_v16 = vrot.slane %v14594_v5, 2  ;;  %v12781_v63 = vld [vmem:[%s12995_s9 + $0xe0] ss:$0 sps:$4 sm:$0x33]  }
 0x1d7   : > { %3474 = vst [vmem:[%s14005_s25 + $0xa8] sm:$0xff] %v3466_v30  ;;  %v6279_v53 = vsel %vm780_vm4, %v6276_v60, %v6278_v6  ;;  %v6403_v50 = vsel %vm780_vm4, %v6401_v46, %v6402_v61  ;;  %v7376_v45 = vsel %vm780_vm4, %v7373_v26, %v7375_v55  ;;  %v6404_v20 = vrot.slane %v14603_v7, 2  ;;  %v10523_v32 = vld [vmem:[%s15345_s1 + $0x10] sm:$0x3] }
 0x1d8   : > { %v7498_v13 = vrot.slane %v10573_v35, 2  ;;  %v6406_v59 = vrot.slane %v14606_v52, 2  ;;  %v6504_v23 = vshrl.u32 %v10508_v49, 16  ;;  %v6507_v42 = vshll.u32 %v10508_v49, 16 }
 0x1d9   : > { %11630 = vmatmul.mubr.msk.bf16.gmra.mrb[28].mxu1 %vm242_vm2, %v6177_v8  ;;  %v6512_v54 = vshrl.u32 %v14574_v11, 16  ;;  %v6515_v0 = vshll.u32 %v14574_v11, 16  ;;  %v7501_v1 = vrot.slane %v14614_v14, 2  ;;  %v6405_v41 = vsel %vm780_vm4, %v6402_v61, %v6404_v20  ;;  %v12782_v2 = vld [vmem:[%s12995_s9 + $0x100] ss:$0 sps:$4 sm:$0x33]  }
 0x1da   : > { %11635 = vmatprep.mubr.msk.bf16.mxu1 %vm242_vm2, %v6273_v36  ;;  %v7500_v27 = vsel %vm780_vm4, %v7498_v13, %v7499_v16  ;;  %v6560_v44 = vsel %vm255_vm0, %v10517_v3, 0  ;;  %v6407_v17 = vsel %vm780_vm4, %v6404_v20, %v6406_v59  ;;  %v7503_v21 = vrot.slane %v14621_v33, 2 }
 0x1db   : > { %v6506_v31 = vrot.slane %v6504_v23, 2  ;;  %v6509_v4 = vrot.slane %v6507_v42, 3  ;;  %v6514_v34 = vrot.slane %v6512_v54, 2  ;;  %v6517_v38 = vrot.slane %v6515_v0, 3 }
 0x1dc   : > { %11720 = vmatmul.mubr.msk.bf16.gmra.mrb[28].mxu0 %vm242_vm2, %v7274_v9  ;;  %v7601_v47 = vshrl.u32 %v10573_v35, 16  ;;  %v7604_v58 = vshll.u32 %v10573_v35, 16  ;;  %v7609_v18 = vshrl.u32 %v14594_v5, 16  ;;  %v7612_v24 = vshll.u32 %v14594_v5, 16 }
 0x1dd   : > { %11725 = vmatprep.mubr.msk.bf16.mxu0 %vm242_vm2, %v7370_v28  ;;  %v7502_v62 = vsel %vm780_vm4, %v7499_v16, %v7501_v1  ;;  %v7657_v8 = vsel %vm255_vm0, %v10582_v10, 0  ;;  %v7504_v30 = vsel %vm780_vm4, %v7501_v1, %v7503_v21  ;;  %v6408_v39 = vrot.slane %v12781_v63, 2  ;;  %v14671_v42 = vld [vmem:[%s12995_s9 + $0x100] ss:$0 sps:$4 sm:$0x77]  }
 0x1de   : > { %v6521_v36 = vshrl.u32 %v14603_v7, 16  ;;  %v6524_v56 = vshll.u32 %v14603_v7, 16  ;;  %v6510_v37 = vor.u32 %v6509_v4, %v6506_v31  ;;  %v6518_v9 = vor.u32 %v6517_v38, %v6514_v34  ;;  %v6635_v1 = vld [vmem:[%s12995_s9 + $0xc0] sm:$0x8] }
 0x1df   : > { %v6530_v60 = vshrl.u32 %v14606_v52, 16  ;;  %v6533_v28 = vshll.u32 %v14606_v52, 16  ;;  %v7603_v29 = vrot.slane %v7601_v47, 2  ;;  %v7614_v57 = vrot.slane %v7612_v24, 3 }
 0x1e0   : > { %v7618_v49 = vshrl.u32 %v14614_v14, 16  ;;  %v6409_v26 = vsel %vm780_vm4, %v6406_v59, %v6408_v39  ;;  %v6526_v48 = vrot.slane %v6524_v56, 3  ;;  %v7621_v6 = vshll.u32 %v14614_v14, 16 }
 0x1e1   : > { %11636 = vmatmul.mubr.msk.bf16.vlgmr.msra.gmra.mrb[24].mxu1 %vm242_vm2, %v6275_v19  ;;  %v7606_v19 = vrot.slane %v7604_v58, 3  ;;  %v7505_v46 = vrot.slane %v12782_v2, 2  ;;  %v6519_v61 = vsel %vm1015_vm6, %v6510_v37, %v6518_v9  ;;  %v7630_v55 = vshll.u32 %v14621_v33, 16  ;;  %v7732_v58 = vld [vmem:[%s12995_s9 + $0xe0] sm:$0x8] }
 0x1e2   : > { %11644 = vmatpush3.bf16.msra.mxu1 %v6423_v15  ;;  %11639 = vmatprep.mubr.msk.bf16.mxu1 %vm242_vm2, %v6277_v40  ;;  %v7611_v15 = vrot.slane %v7609_v18, 2  ;;  %v10588_v40 = vld [vmem:[%s15345_s1 + $0x10] sm:$0x3]  ;;  %v7623_v16 = vrot.slane %v7621_v6, 3  ;;  %v7636_v4 = vshrl.u32 %v14671_v42, 16  ;;  %v7639_v34 = vshll.u32 %v14671_v42, 16 }
 0x1e3   : > { %12574 = vmatprep.subr.msk.bf16.mxu1 %vm255_vm0, %v10517_v3  ;;  %v6523_v3 = vrot.slane %v6521_v36, 2  ;;  %v7607_v35 = vor.u32 %v7606_v19, %v7603_v29  ;;  %v7506_v59 = vsel %vm780_vm4, %v7503_v21, %v7505_v46  ;;  %v10524_v38 = vcombine.low %v6635_v1, %v14564_v51  ;;  %v7865_v2 = vld [vmem:[%s12995_s9 + $0xe0] sm:$0xf]  ;;  %v14697_v37 = vld [vmem:[%s12995_s9 + $0xe4] sm:$0xf] }
 0x1e4   : > { %11726 = vmatmul.mubr.msk.bf16.vlgmr.msra.gmra.mrb[24].mxu0 %vm242_vm2, %v7372_v43  ;;  %v14658_v43 = vld [vmem:[%s12995_s9 + $0xe0] ss:$0 sps:$4 sm:$0x77]   ;;  %v6641_v51 = vrot.slane %v14574_v11, 3  ;;  %v7759_v39 = vsel %vm255_vm0, %v10588_v40, 0  ;;  %v10589_v56 = vcombine.low %v7732_v58, %v14583_v12  ;;  %v14707_v12 = vcombine.low %v7865_v2, %v14697_v37 }
 0x1e5   : > { %11734 = vmatpush3.bf16.msra.mxu0 %v7520_v25  ;;  %11729 = vmatprep.mubr.msk.bf16.mxu0 %vm242_vm2, %v7374_v22  ;;  %v6532_v25 = vrot.slane %v6530_v60, 2  ;;  %v6535_v22 = vrot.slane %v6533_v28, 3  ;;  %v6527_v13 = vor.u32 %v6526_v48, %v6523_v3  ;;  %v6542_v20 = vshll.u32 %v14658_v43, 16  ;;  %v14721_v3 = vld [vmem:[%s12995_s9 + $0xe8] sm:$0xff]  }
 0x1e6   : > { %12583 = vmatprep.subr.msk.bf16.mxu0 %vm255_vm0, %v10582_v10  ;;  %v7615_v10 = vor.u32 %v7614_v57, %v7611_v15  ;;  %v7737_v29 = vrot.slane %v10589_v56, 3  ;;  %v7738_v19 = vrot.slane %v14594_v5, 3  ;;  %v8962_v15 = vld [vmem:[%s12995_s9 + $0x100] sm:$0xf]  ;;  %v14714_v57 = vld [vmem:[%s12995_s9 + $0x104] sm:$0xf] }
 0x1e7   : > { %v6536_v23 = vor.u32 %v6535_v22, %v6532_v25  ;;  %v6544_v31 = vrot.slane %v6542_v20, 3  ;;  %v7902_v5 = vshll.u32 %v14707_v12, 16  ;;  %v14726_v6 = vcombine.low %v8962_v15, %v14714_v57 }
 0x1e8   : > { %v7616_v54 = vsel %vm1015_vm6, %v7607_v35, %v7615_v10  ;;  %v7739_v48 = vsel %vm1154_vm7, %v7737_v29, %v7738_v19  ;;  %v7900_v25 = vshrl.u32 %v14707_v12, 16  ;;  %v7907_v35 = vshll.u32 %v14721_v3, 16 }
 0x1e9   : > { %11640 = vmatmul.mubr.msk.bf16.gmra.mrb[28].mxu1 %vm242_vm2, %v6279_v53  ;;  %v7627_v53 = vshrl.u32 %v14621_v33, 16  ;;  %v6537_v21 = vsel %vm1015_vm6, %v6527_v13, %v6536_v23  ;;  %v7904_v22 = vrot.slane %v7902_v5, 1 }
 0x1ea   : > { %11645 = vmatprep.mubr.msk.bf16.mxu1 %vm242_vm2, %v6403_v50  ;;  %v7620_v50 = vrot.slane %v7618_v49, 2  ;;  %v7909_v20 = vrot.slane %v7907_v35, 1 }
 0x1eb   : > { %v7629_v0 = vrot.slane %v7627_v53, 2  ;;  %v7873_v53 = vld [vmem:[%s15345_s1] sm:$0x3] }
 0x1ec   : > { %11730 = vmatmul.mubr.msk.bf16.gmra.mrb[28].mxu0 %vm242_vm2, %v7376_v45  ;;  %v6539_v45 = vshrl.u32 %v14658_v43, 16 }
 0x1ed   : > { %11735 = vmatprep.mubr.msk.bf16.mxu0 %vm242_vm2, %v7500_v27  ;;  %v7632_v27 = vrot.slane %v7630_v55, 3  ;;  %v14741_v55 = vld [vmem:[%s12995_s9 + $0x108] sm:$0xff]  }
 0x1ee   : > { %v6541_v63 = vrot.slane %v6539_v45, 2  ;;  %v7905_v45 = vor.u32 %v7904_v22, %v7900_v25  ;;  %v10674_v25 = vld [vmem:[%s15345_s1 + $0x4] sm:$0x3] }
 0x1ef   : > { %v7633_v47 = vor.u32 %v7632_v27, %v7629_v0  ;;  %v9004_v27 = vshll.u32 %v14741_v55, 16 }
 0x1f0   : > { %v6545_v24 = vor.u32 %v6544_v31, %v6541_v63  ;;  %v7744_v63 = vrot.slane %v14671_v42, 3  ;;  %v7910_v31 = vsel %vm205_vm1, %v7905_v45, %v7909_v20 }
 0x1f1   : > { %11646 = vmatmul.mubr.msk.bf16.vlgmr.msra.gmra.mrb[24].mxu1 %vm242_vm2, %v6405_v41  ;;  %v6662_v41 = vsel %vm255_vm0, %v10523_v32, 0 }
 0x1f2   : > { %11654 = vmatpush3.bf16.msra.mxu1 %v6560_v44  ;;  %11649 = vmatprep.mubr.msk.bf16.mxu1 %vm242_vm2, %v6407_v17  ;;  %v6528_v44 = vsel %vm1015_vm6, %v6518_v9, %v6527_v13  ;;  %v7624_v17 = vor.u32 %v7623_v16, %v7620_v50  ;;  %v10660_v9 = vld [vmem:[%s15345_s1 + $0x2] sm:$0x3]  ;;  %v6546_v11 = vsel %vm1015_vm6, %v6536_v23, %v6545_v24  ;;  %v14746_v50 = vld [vmem:[%s12995_s9 + $0xf0] sm:$0xff]   ;;  %v6647_v13 = vrot.slane %v14658_v43, 3  ;;  %v8970_v43 = vld [vmem:[%s15345_s1] sm:$0x3] }
 0x1f3   : > { %12575 = vmatprep.subr.msk.bf16.mxu1 %vm255_vm0, %v10523_v32  ;;  %v10595_v32 = vld [vmem:[%s15345_s1 + $0x2] sm:$0x3]  ;;  %v9045_v16 = vsel %vm255_vm0, %v10660_v9, 0  ;;  %v7915_v1 = vshll.u32 %v14746_v50, 16 }
 0x1f4   : > { %11736 = vmatmul.mubr.msk.bf16.vlgmr.msra.gmra.mrb[24].mxu0 %vm242_vm2, %v7502_v62  ;;  %v7625_v18 = vsel %vm1015_vm6, %v7615_v10, %v7624_v17  ;;  %v7638_v62 = vrot.slane %v7636_v4, 2  ;;  %v7634_v36 = vsel %vm1015_vm6, %v7624_v17, %v7633_v47  ;;  %v7742_v10 = vrot.slane %v14621_v33, 3  ;;  %v14767_v17 = vld [vmem:[%s12995_s9 + $0x110] sm:$0xff]  }
 0x1f5   : > { %11744 = vmatpush3.bf16.msra.mxu0 %v7657_v8  ;;  %11739 = vmatprep.mubr.msk.bf16.mxu0 %vm242_vm2, %v7504_v30  ;;  %v7641_v8 = vrot.slane %v7639_v34, 3  ;;  %v6640_v30 = vrot.slane %v10524_v38, 3  ;;  %v9006_v38 = vrot.slane %v9004_v27, 1  ;;  %v9012_v42 = vshll.u32 %v14767_v17, 16 }
 0x1f6   : > { %12584 = vmatprep.subr.msk.bf16.mxu0 %vm255_vm0, %v10588_v40  ;;  %v6643_v40 = vrot.slane %v14603_v7, 3  ;;  %v7740_v7 = vrot.slane %v14614_v14, 3  ;;  %v8999_v14 = vshll.u32 %v14726_v6, 16  ;;  %v7745_v24 = vsel %vm1154_vm7, %v7742_v10, %v7744_v63 }
 0x1f7   : > { %v7642_v60 = vor.u32 %v7641_v8, %v7638_v62  ;;  %v6642_v28 = vsel %vm1154_vm7, %v6640_v30, %v6641_v51  ;;  %v9008_v62 = vshrl.u32 %v14741_v55, 16  ;;  %v9014_v2 = vrot.slane %v9012_v42, 1 }
 0x1f8   : > { %v6644_v46 = vsel %vm1154_vm7, %v6641_v51, %v6643_v40  ;;  %v7741_v33 = vsel %vm1154_vm7, %v7738_v19, %v7740_v7  ;;  %v7743_v23 = vsel %vm1154_vm7, %v7740_v7, %v7742_v10  ;;  %v9001_v0 = vrot.slane %v8999_v14, 1  ;;  %v14797_v19 = vld [vmem:[%s12995_s9 + $0x120] ss:$0 sps:$4 sm:$0x11]   ;;  %v8091_v14 = vld [vmem:[%s12995_s9 + $0xe0] sm:$0xe] }
 0x1f9   : > { %11650 = vmatmul.mubr.msk.bf16.gmra.mrb[28].mxu1 %vm242_vm2, %v6409_v26  ;;  %v7643_v49 = vsel %vm1015_vm6, %v7633_v47, %v7642_v60  ;;  %v6645_v26 = vrot.slane %v14606_v52, 3  ;;  %v14776_v47 = vld [vmem:[%s12995_s9 + $0x118] sm:$0xff]   ;;  %v9010_v60 = vor.u32 %v9008_v62, %v9006_v38  ;;  %v9028_v7 = vshll.u32 %v14797_v19, 16 }
 0x1fa   : > { %11655 = vmatprep.mubr.msk.bf16.mxu1 %vm242_vm2, %v6519_v61  ;;  %v7948_v61 = vsel %vm255_vm0, %v10595_v32, 0 }
 0x1fb   : > { %v6646_v52 = vsel %vm1154_vm7, %v6643_v40, %v6645_v26  ;;  %v9030_v10 = vrot.slane %v9028_v7, 1 }
 0x1fc   : > { %11740 = vmatmul.mubr.msk.bf16.gmra.mrb[28].mxu0 %vm242_vm2, %v7506_v59  ;;  %v14754_v59 = vld [vmem:[%s12995_s9 + $0xf8] sm:$0xff]  }
 0x1fd   : > { %11745 = vmatprep.mubr.msk.bf16.mxu0 %vm242_vm2, %v7616_v54  ;;  %v8997_v54 = vshrl.u32 %v14726_v6, 16  ;;  %v7923_v4 = vshll.u32 %v14754_v59, 16  ;;  %v8101_v27 = vrot.slane %v14754_v59, 1 }
 0x1ff   : > { %v9002_v34 = vor.u32 %v9001_v0, %v8997_v54  ;;  %v7925_v30 = vrot.slane %v7923_v4, 1  ;;  %v9194_v0 = vrot.slane %v14741_v55, 1  ;;  %v10625_v4 = vld [vmem:[%s15345_s1 + $0x8] sm:$0x3] }
 0x201   : > { %11656 = vmatmul.mubr.msk.bf16.vlgmr.msra.gmra.mrb[24].mxu1 %vm242_vm2, %v6528_v44  ;;  %v7911_v44 = vshrl.u32 %v14721_v3, 16  ;;  %v9007_v51 = vsel %vm205_vm1, %v9002_v34, %v9006_v38  ;;  %v9290_v34 = vld [vmem:[%s12995_s9 + $0x110] sm:$0xe]  ;;  %v14877_v38 = vld [vmem:[%s12995_s9 + $0x114] sm:$0xf] }
 0x202   : > { %11664 = vmatpush3.bf16.msra.mxu1 %v6662_v41  ;;  %11659 = vmatprep.mubr.msk.bf16.mxu1 %vm242_vm2, %v6537_v21  ;;  %v6648_v41 = vsel %vm1154_vm7, %v6645_v26, %v6647_v13  ;;  %v7919_v21 = vshrl.u32 %v14746_v50, 16  ;;  %v10681_v62 = vcombine.low %v9290_v34, %v14877_v38 }
 0x203   : > { %12585 = vmatprep.subr.msk.bf16.mxu1 %vm255_vm0, %v10595_v32  ;;  %v7917_v32 = vrot.slane %v7915_v1, 1  ;;  %v7913_v58 = vor.u32 %v7911_v44, %v7909_v20  ;;  %v8097_v20 = vrot.slane %v14721_v3, 1  ;;  %v8193_v1 = vld [vmem:[%s12995_s9 + $0xf0] sm:$0xe] }
 0x204   : > { %11746 = vmatmul.mubr.msk.bf16.vlgmr.msra.gmra.mrb[24].mxu0 %vm242_vm2, %v7625_v18  ;;  %v14782_v18 = vld [vmem:[%s12995_s9 + $0x100] ss:$0 sps:$4 sm:$0x11]  }
 0x205   : > { %11754 = vmatpush3.bf16.msra.mxu0 %v7759_v39  ;;  %11749 = vmatprep.mubr.msk.bf16.mxu0 %vm242_vm2, %v7634_v36  ;;  %v7921_v8 = vor.u32 %v7919_v21, %v7917_v32  ;;  %v9016_v39 = vshrl.u32 %v14767_v17, 16  ;;  %v9020_v36 = vshll.u32 %v14776_v47, 16  ;;  %v7918_v56 = vsel %vm205_vm1, %v7913_v58, %v7917_v32 }
 0x206   : > { %12594 = vmatprep.subr.msk.bf16.mxu0 %vm255_vm0, %v10660_v9  ;;  %v7927_v9 = vshrl.u32 %v14754_v59, 16  ;;  %v9198_v21 = vrot.slane %v14776_v47, 1 }
 0x207   : > { %v7926_v29 = vsel %vm205_vm1, %v7921_v8, %v7925_v30  ;;  %v9018_v15 = vor.u32 %v9016_v39, %v9014_v2  ;;  %v9022_v40 = vrot.slane %v9020_v36, 1  ;;  %v14888_v8 = vld [vmem:[%s12995_s9 + $0x118] sm:$0xff]   ;;  %v9200_v39 = vrot.slane %v14797_v19, 1 }
 0x208   : > { %v7929_v26 = vor.u32 %v7927_v9, %v7925_v30  ;;  %v9324_v9 = vrot.slane %v14888_v8, 1 }
 0x209   : > { %11660 = vmatmul.mubr.msk.bf16.gmra.mrb[28].mxu1 %vm242_vm2, %v6546_v11  ;;  %v7931_v11 = vshll.u32 %v14782_v18, 16 }
 0x20a   : > { %11665 = vmatprep.mubr.msk.bf16.mxu1 %vm242_vm2, %v6642_v28  ;;  %v8024_v28 = vsel %vm255_vm0, %v7873_v53, 0 }
 0x20b   : > { %v7933_v5 = vrot.slane %v7931_v11, 1 }
 0x20c   : > { %11750 = vmatmul.mubr.msk.bf16.gmra.mrb[28].mxu0 %vm242_vm2, %v7643_v49  ;;  %v10609_v49 = vld [vmem:[%s15345_s1 + $0x4] sm:$0x3] }
 0x20d   : > { %11755 = vmatprep.mubr.msk.bf16.mxu0 %vm242_vm2, %v7739_v48  ;;  %v9015_v48 = vsel %vm205_vm1, %v9010_v60, %v9014_v2  ;;  %v7934_v22 = vsel %vm205_vm1, %v7929_v26, %v7933_v5  ;;  %v8118_v13 = vsel %vm255_vm0, %v10609_v49, 0  ;;  %v9323_v2 = vrot.slane %v10681_v62, 1  ;;  %v12807_v5 = vld [vmem:[%s12995_s9 + $0x110] ss:$0 sps:$4 sm:$0x11]  }
 0x20f   : > { %v9325_v7 = vsel %vm406_vm5, %v9323_v2, %v9324_v9 }
 0x211   : > { %11666 = vmatmul.mubr.msk.bf16.vlgmr.msra.gmra.mrb[24].mxu1 %vm242_vm2, %v6644_v46  ;;  %v9024_v46 = vshrl.u32 %v14776_v47, 16 }
 0x212   : > { %11764 = vmatpush3.bf16.msra.mxu1 %v7948_v61  ;;  %11669 = vmatprep.mubr.msk.bf16.mxu1 %vm242_vm2, %v6646_v52  ;;  %v9121_v61 = vsel %vm255_vm0, %v8970_v43, 0  ;;  %v9023_v52 = vsel %vm205_vm1, %v9018_v15, %v9022_v40  ;;  %v14912_v15 = vld [vmem:[%s12995_s9 + $0x120] sm:$0xff]  }
 0x213   : > { %12586 = vmatprep.subr.msk.bf16.mxu1 %vm255_vm0, %v7873_v53  ;;  %v9026_v35 = vor.u32 %v9024_v46, %v9022_v40  ;;  %v14915_v40 = vld [vmem:[%s12995_s9 + $0x128] sm:$0xff]   ;;  %v9429_v46 = vshll.u32 %v10681_v62, 16 }
 0x214   : > { %11756 = vmatmul.mubr.msk.bf16.vlgmr.msra.gmra.mrb[24].mxu0 %vm242_vm2, %v7741_v33  ;;  %v10610_v33 = vcombine.low %v8091_v14, %v14697_v37  ;;  %v9215_v37 = vsel %vm255_vm0, %v10674_v25, 0  ;;  %v8385_v14 = vsel %vm255_vm0, %v10625_v4, 0 }
 0x215   : > { %11854 = vmatpush3.bf16.msra.mxu0 %v9045_v16  ;;  %11759 = vmatprep.mubr.msk.bf16.mxu0 %vm242_vm2, %v7743_v23  ;;  %v9031_v53 = vsel %vm205_vm1, %v9026_v35, %v9030_v10  ;;  %v10615_v16 = vld [vmem:[%s15345_s1 + $0x6] sm:$0x3] }
 0x216   : > { %12595 = vmatprep.subr.msk.bf16.mxu0 %vm255_vm0, %v8970_v43  ;;  %v8096_v45 = vrot.slane %v10610_v33, 1  ;;  %v10680_v23 = vld [vmem:[%s15345_s1 + $0x6] sm:$0x3]  ;;  %v8248_v44 = vsel %vm255_vm0, %v10615_v16, 0  ;;  %v9328_v33 = vrot.slane %v14915_v40, 1 }
 0x217   : > { %v9345_v42 = vsel %vm255_vm0, %v10680_v23, 0 }
 0x219   : > { %11670 = vmatmul.mubr.msk.bf16.gmra.mrb[28].mxu1 %vm242_vm2, %v6648_v41  ;;  %v14857_v41 = vld [vmem:[%s12995_s9 + $0xf4] sm:$0xf] }
 0x21a   : > { %11765 = vmatprep.mubr.msk.bf16.mxu1 %vm242_vm2, %v7910_v31  ;;  %v14868_v31 = vld [vmem:[%s12995_s9 + $0xf8] sm:$0xff]  }
 0x21c   : > { %11760 = vmatmul.mubr.msk.bf16.gmra.mrb[28].mxu0 %vm242_vm2, %v7745_v24 }
 0x21d   : > { %11855 = vmatprep.mubr.msk.bf16.mxu0 %vm242_vm2, %v9007_v51  ;;  %v14896_v51 = vld [vmem:[%s12995_s9 + $0x100] sm:$0xff]  }
 0x21e   : > { %v8229_v19 = vrot.slane %v14896_v51, 1 }
 0x221   : > { %11766 = vmatmul.mubr.msk.bf16.vlgmr.msra.gmra.mrb[32].mxu1 %vm242_vm2, %v7918_v56  ;;  %v14902_v56 = vld [vmem:[%s12995_s9 + $0x108] sm:$0xff]  }
 0x222   : > { %11774 = vmatpush3.bf16.msra.mxu1 %v8024_v28  ;;  %11769 = vmatprep.mubr.msk.bf16.mxu1 %vm242_vm2, %v7926_v29  ;;  %v8337_v28 = vshrl.u32 %v14868_v31, 16  ;;  %v8340_v29 = vshll.u32 %v14868_v31, 16  ;;  %v8231_v26 = vrot.slane %v14902_v56, 1 }
 0x223   : > { %12587 = vmatprep.subr.msk.bf16.mxu1 %vm255_vm0, %v10609_v49  ;;  %v9201_v49 = vsel %vm406_vm5, %v9198_v21, %v9200_v39  ;;  %v14970_v39 = vld [vmem:[%s15345_s1 + $0xa] sm:$0x3] }
 0x224   : > { %11856 = vmatmul.mubr.msk.bf16.vlgmr.msra.gmra.mrb[32].mxu0 %vm242_vm2, %v9015_v48  ;;  %v9426_v48 = vshrl.u32 %v10681_v62, 16  ;;  %v8339_v35 = vrot.slane %v8337_v28, 1  ;;  %v8342_v10 = vrot.slane %v8340_v29, 2  ;;  %v9452_v29 = vshrl.u32 %v14915_v40, 16 }
 0x225   : > { %11864 = vmatpush3.bf16.msra.mxu0 %v9121_v61  ;;  %11859 = vmatprep.mubr.msk.bf16.mxu0 %vm242_vm2, %v9023_v52  ;;  %v9434_v61 = vshrl.u32 %v14888_v8, 16  ;;  %v9437_v52 = vshll.u32 %v14888_v8, 16 }
 0x226   : > { %12596 = vmatprep.subr.msk.bf16.mxu0 %vm255_vm0, %v10674_v25 }
 0x229   : > { %11770 = vmatmul.mubr.msk.bf16.gmra.mrb[36].mxu1 %vm242_vm2, %v7934_v22 }
 0x22a   : > { %11775 = vmatprep.mubr.msk.bf16.mxu1 %vm242_vm2, %v14707_v12  ;;  %v9188_v12 = vld [vmem:[%s12995_s9 + $0x100] sm:$0xe] }
 0x22c   : > { %11860 = vmatmul.mubr.msk.bf16.gmra.mrb[36].mxu0 %vm242_vm2, %v9031_v53 }
 0x22d   : > { %11865 = vmatprep.mubr.msk.bf16.mxu0 %vm242_vm2, %v14726_v6  ;;  %v10675_v6 = vcombine.low %v9188_v12, %v14714_v57  ;;  %v8099_v57 = vrot.slane %v14746_v50, 1  ;;  %v8233_v12 = vrot.slane %v12807_v5, 1  ;;  %v9455_v5 = vshll.u32 %v14915_v40, 16 }
 0x22f   : > { %v9193_v54 = vrot.slane %v10675_v6, 1  ;;  %v8102_v63 = vsel %vm406_vm5, %v8099_v57, %v8101_v27  ;;  %v14934_v6 = vld [vmem:[%s15345_s1 + $0xa] sm:$0x3] }
 0x231   : > { %11776 = vmatmul.mubr.msk.bf16.vlgmr.msra.gmra.mrb[32].mxu1 %vm242_vm2, %v14721_v3  ;;  %v8098_v3 = vsel %vm406_vm5, %v8096_v45, %v8097_v20  ;;  %v9195_v43 = vsel %vm406_vm5, %v9193_v54, %v9194_v0  ;;  %v12808_v45 = vld [vmem:[%s12995_s9 + $0x130] ss:$0 sps:$4 sm:$0x11]   ;;  %v8346_v54 = vshrl.u32 %v14896_v51, 16 }
 0x232   : > { %11784 = vmatpush3.bf16.msra.mxu1 %v8118_v13  ;;  %11779 = vmatprep.mubr.msk.bf16.mxu1 %vm242_vm2, %v14746_v50  ;;  %v9196_v50 = vrot.slane %v14767_v17, 1  ;;  %v9326_v13 = vrot.slane %v14912_v15, 1  ;;  %v9330_v34 = vrot.slane %v12808_v45, 1 }
 0x233   : > { %12588 = vmatprep.subr.msk.bf16.mxu1 %vm255_vm0, %v10615_v16  ;;  %v8232_v16 = vsel %vm406_vm5, %v8229_v19, %v8231_v26 }
 0x234   : > { %11866 = vmatmul.mubr.msk.bf16.vlgmr.msra.gmra.mrb[32].mxu0 %vm242_vm2, %v14741_v55  ;;  %v8100_v55 = vsel %vm406_vm5, %v8097_v20, %v8099_v57  ;;  %v9197_v32 = vsel %vm406_vm5, %v9194_v0, %v9196_v50  ;;  %v9199_v24 = vsel %vm406_vm5, %v9196_v50, %v9198_v21  ;;  %v9428_v20 = vrot.slane %v9426_v48, 1 }
 0x235   : > { %11874 = vmatpush3.bf16.msra.mxu0 %v9215_v37  ;;  %11869 = vmatprep.mubr.msk.bf16.mxu0 %vm242_vm2, %v14767_v17  ;;  %v8103_v17 = vrot.slane %v14782_v18, 1  ;;  %v10690_v18 = vld [vmem:[%s15345_s1 + $0x8] sm:$0x3]  ;;  %v9431_v37 = vrot.slane %v9429_v46, 2  ;;  %v8349_v0 = vshll.u32 %v14896_v51, 16  ;;  %v8355_v50 = vshrl.u32 %v14902_v56, 16 }
 0x236   : > { %12597 = vmatprep.subr.msk.bf16.mxu0 %vm255_vm0, %v10680_v23  ;;  %v9436_v23 = vrot.slane %v9434_v61, 1  ;;  %v9329_v21 = vsel %vm406_vm5, %v9326_v13, %v9328_v33 }
 0x237   : > { %v8104_v30 = vsel %vm406_vm5, %v8101_v27, %v8103_v17  ;;  %v14939_v27 = vor.u32 %v8342_v10, %v8339_v35  ;;  %v14960_v17 = vld [vmem:[%s12995_s9 + $0x110] ss:$0 sps:$4 sm:$0x33]   ;;  %v9331_v35 = vsel %vm406_vm5, %v9328_v33, %v9330_v34 }
 0x238   : > { %v8364_v48 = vshrl.u32 %v14960_v17, 16 }
 0x239   : > { %11780 = vmatmul.mubr.msk.bf16.gmra.mrb[36].mxu1 %vm242_vm2, %v14754_v59  ;;  %v10616_v59 = vcombine.low %v8193_v1, %v14857_v41  ;;  %v9446_v1 = vshll.u32 %v14912_v15, 16 }
 0x23a   : > { %11785 = vmatprep.mubr.msk.bf16.mxu1 %vm242_vm2, %v8098_v3  ;;  %v9439_v3 = vrot.slane %v9437_v52, 2  ;;  %v8367_v52 = vshll.u32 %v14960_v17, 16 }
 0x23b   : > { %v8226_v58 = vrot.slane %v10616_v59, 1  ;;  %v8329_v11 = vshrl.u32 %v10616_v59, 16  ;;  %v8332_v60 = vshll.u32 %v10616_v59, 16  ;;  %v9482_v59 = vsel %vm255_vm0, %v10690_v18, 0 }
 0x23c   : > { %11870 = vmatmul.mubr.msk.bf16.gmra.mrb[36].mxu0 %vm242_vm2, %v14776_v47  ;;  %v8227_v47 = vrot.slane %v14868_v31, 1  ;;  %v9448_v2 = vrot.slane %v9446_v1, 2 }
 0x23d   : > { %11875 = vmatprep.mubr.msk.bf16.mxu0 %vm242_vm2, %v9195_v43  ;;  %v8331_v25 = vrot.slane %v8329_v11, 1  ;;  %v8334_v22 = vrot.slane %v8332_v60, 2  ;;  %v9443_v43 = vshrl.u32 %v14912_v15, 16  ;;  %v8357_v60 = vrot.slane %v8355_v50, 1 }
 0x23e   : > { %v8228_v36 = vsel %vm406_vm5, %v8226_v58, %v8227_v47  ;;  %v8230_v53 = vsel %vm406_vm5, %v8227_v47, %v8229_v19  ;;  %v9432_v58 = vor.u32 %v9431_v37, %v9428_v20  ;;  %v14962_v47 = vor.u32 %v9439_v3, %v9436_v23 }
 0x23f   : > { %v8335_v57 = vor.u32 %v8334_v22, %v8331_v25  ;;  %v9454_v20 = vrot.slane %v9452_v29, 1  ;;  %v8487_v23 = vsel %vm255_vm0, %v14934_v6, 0  ;;  %v9457_v3 = vrot.slane %v9455_v5, 2 }
 0x240   : > { %v9441_v10 = vsel %vm641_vm3, %v9432_v58, %v14962_v47  ;;  %v15010_v50 = vrot.slane %v8367_v52, 2 }
 0x241   : > { %11786 = vmatmul.mubr.msk.bf16.vlgmr.msra.gmra.mrb[32].mxu1 %vm242_vm2, %v8100_v55  ;;  %v9327_v55 = vsel %vm406_vm5, %v9324_v9, %v9326_v13 }
 0x242   : > { %11794 = vmatpush3.bf16.msra.mxu1 %v8248_v44  ;;  %11789 = vmatprep.mubr.msk.bf16.mxu1 %vm242_vm2, %v8102_v63  ;;  %v14947_v44 = vld [vmem:[%s15346_s2] ss:$0 sm:$0xff]  ;;  %v8358_v63 = vshll.u32 %v14902_v56, 16 }
 0x243   : > { %12589 = vmatprep.subr.msk.bf16.mxu1 %vm255_vm0, %v10625_v4  ;;  %v8234_v4 = vsel %vm406_vm5, %v8231_v26, %v8233_v12 }
 0x244   : > { %11876 = vmatmul.mubr.msk.bf16.vlgmr.msra.gmra.mrb[32].mxu0 %vm242_vm2, %v9197_v32  ;;  %v8360_v28 = vrot.slane %v8358_v63, 2  ;;  %v8460_v63 = vld [vmem:[%s12995_s9 + $0xf0] sm:$0xc] }
 0x245   : > { %11884 = vmatpush3.bf16.msra.mxu0 %v9345_v42  ;;  %11879 = vmatprep.mubr.msk.bf16.mxu0 %vm242_vm2, %v9199_v24  ;;  %v8348_v42 = vrot.slane %v8346_v54, 1  ;;  %v8351_v24 = vrot.slane %v8349_v0, 2  ;;  %v15004_v54 = vrot.slane %v8364_v48, 1 }
 0x246   : > { %12598 = vmatprep.subr.msk.bf16.mxu0 %vm255_vm0, %v10690_v18  ;;  %v14998_v45 = vor.u32 %v8360_v28, %v8357_v60  ;;  %v9458_v60 = vor.u32 %v9457_v3, %v9454_v20  ;;  %v10637_v28 = vld [vmem:[%s15345_s1 + $0xc] sm:$0x3] }
 0x247   : > { %v8352_v61 = vor.u32 %v8351_v24, %v8348_v42 }
 0x249   : > { %11790 = vmatmul.mubr.msk.bf16.gmra.mrb[36].mxu1 %vm242_vm2, %v8104_v30  ;;  %v8344_v30 = vsel %vm641_vm3, %v8335_v57, %v14939_v27  ;;  %v8362_v42 = vsel %vm641_vm3, %v8352_v61, %v14998_v45 }
 0x24a   : > { %11795 = vmatprep.mubr.msk.bf16.mxu1 %vm242_vm2, %v8228_v36  ;;  %v9445_v36 = vrot.slane %v9443_v43, 1 }
 0x24c   : > { %11880 = vmatmul.mubr.msk.bf16.gmra.mrb[36].mxu0 %vm242_vm2, %v9201_v49 }
 0x24d   : > { %11885 = vmatprep.mubr.msk.bf16.mxu0 %vm242_vm2, %v9325_v7 }
 0x251   : > { %11796 = vmatmul.mubr.msk.bf16.vlgmr.msra.gmra.mrb[32].mxu1 %vm242_vm2, %v8230_v53  ;;  %v14990_v53 = vor.u32 %v9448_v2, %v9445_v36  ;;  %v10632_v2 = vcombine.low %v8460_v63, %v14857_v41  ;;  %v8617_v63 = vsel %vm255_vm0, %v10637_v28, 0 }
 0x252   : > { %11804 = vmatpush3.bf16.msra.mxu1 %v8385_v14  ;;  %11799 = vmatprep.mubr.msk.bf16.mxu1 %vm242_vm2, %v8232_v16  ;;  %v14993_v14 = vld [vmem:[%s12995_s9 + $0x130] ss:$0 sps:$4 sm:$0x33]  }
 0x253   : > { %12590 = vmatprep.subr.msk.bf16.mxu1 %vm255_vm0, %v14934_v6  ;;  %v9461_v34 = vshrl.u32 %v14993_v14, 16  ;;  %v9464_v24 = vshll.u32 %v14993_v14, 16  ;;  %v9450_v41 = vsel %vm641_vm3, %v14962_v47, %v14990_v53 }
 0x254   : > { %v11487_v32 = vpop.f32.mrb[16].mxu1  ;;  %11886 = vmatmul.mubr.msk.bf16.vlgmr.msra.gmra.mrb[32].mxu0 %vm242_vm2, %v9327_v55  ;;  %v8353_v55 = vsel %vm641_vm3, %v14939_v27, %v8352_v61 }
 0x255   : > { %v4552_v62 = vadd.f32 %v11487_v32, %v14947_v44  ;;  %v4504_v18 = vpop.f32.mrb[17].mxu1  ;;  %11894 = vmatpush3.bf16.msra.mxu0 %v9482_v59  ;;  %11889 = vmatprep.mubr.msk.bf16.mxu0 %vm242_vm2, %v9329_v21  ;;  %v9463_v61 = vrot.slane %v9461_v34, 1  ;;  %v9659_v34 = vld [vmem:[%s12995_s9 + $0x120] sm:$0xc] }
 0x256   : > { %v4550_v9 = vadd.f32 %v14947_v44, %v4504_v18  ;;  %v11488_v11 = vpop.f32.mrb[18].mxu1  ;;  %12599 = vmatprep.subr.msk.bf16.mxu0 %vm255_vm0, %v14970_v39 }
 0x257   : > { %v4560_v19 = vmax.f32 %v4552_v62, 0.0  ;;  %v4553_v49 = vadd.f32 %v11488_v11, %v14947_v44  ;;  %v4507_v26 = vpop.f32.mrb[19].mxu1  ;;  %v11577_v25 = vpop.f32.mrb[16].mxu0 }
 0x258   : > { %v4558_v46 = vmax.f32 %v4550_v9, 0.0  ;;  %v4551_v7 = vadd.f32 %v14947_v44, %v4507_v26  ;;  %v5649_v13 = vadd.f32 %v11577_v25, %v14947_v44  ;;  %v5601_v16 = vpop.f32.mrb[17].mxu0  ;;  %v9557_v26 = vld [vmem:[%s12995_s9 + $0x110] sm:$0xc]  ;;  %v8465_v25 = vrot.slane %v10632_v2, 2 }
 0x259   : > { %4568 = vst [vmem:[%s14005_s25 + $0xd0] sm:$0xff] %v4560_v19  ;;  %v4561_v22 = vmax.f32 %v4553_v49, 0.0  ;;  %11800 = vmatmul.mubr.msk.bf16.gmra.mrb[36].mxu1 %vm242_vm2, %v8234_v4  ;;  %v5647_v33 = vadd.f32 %v14947_v44, %v5601_v16  ;;  %v11578_v37 = vpop.f32.mrb[18].mxu0  ;;  %v9584_v49 = vsel %vm255_vm0, %v14970_v39, 0  ;;  %v9466_v39 = vrot.slane %v9464_v24, 2  ;;  %v15116_v2 = vld [vmem:[%s12995_s9 + $0x110] sm:$0xff]  }
 0x25a   : > { %4566 = vst [vmem:[%s14005_s25 + $0xc0] sm:$0xff] %v4558_v46  ;;  %v4559_v12 = vmax.f32 %v4551_v7, 0.0  ;;  %11805 = vmatprep.mubr.msk.bf16.mxu1 %vm242_vm2, %v8344_v30  ;;  %v5657_v0 = vmax.f32 %v5649_v13, 0.0  ;;  %v5650_v57 = vadd.f32 %v11578_v37, %v14947_v44  ;;  %v5604_v43 = vpop.f32.mrb[19].mxu0  ;;  %v8370_v7 = vor.u32 %v15010_v50, %v15004_v54 }
 0x25b   : > { %4569 = vst [vmem:[%s14005_s25 + $0xd8] sm:$0xff] %v4561_v22  ;;  %v5655_v59 = vmax.f32 %v5647_v33, 0.0  ;;  %v5648_v6 = vadd.f32 %v14947_v44, %v5604_v43  ;;  %v8466_v22 = vrot.slane %v14868_v31, 2  ;;  %v9459_v16 = vsel %vm641_vm3, %v14990_v53, %v9458_v60  ;;  %v10702_v31 = vld [vmem:[%s15345_s1 + $0xc] sm:$0x3] }
 0x25c   : > { %4567 = vst [vmem:[%s14005_s25 + $0xc8] sm:$0xff] %v4559_v12  ;;  %v11491_v1 = vpop.f32.mrb[20].mxu1  ;;  %5665 = vst [vmem:[%s14005_s25 + $0x110] sm:$0xff] %v5657_v0  ;;  %v5658_v32 = vmax.f32 %v5650_v57, 0.0  ;;  %11890 = vmatmul.mubr.msk.bf16.gmra.mrb[36].mxu0 %vm242_vm2, %v9331_v35  ;;  %v10697_v12 = vcombine.low %v9557_v26, %v14877_v38  ;;  %v9467_v38 = vor.u32 %v9466_v39, %v9463_v61  ;;  %v9563_v0 = vrot.slane %v14888_v8, 2 }
 0x25d   : > { %v4556_v21 = vadd.f32 %v11491_v1, %v14947_v44  ;;  %v4520_v4 = vpop.f32.mrb[21].mxu1  ;;  %5663 = vst [vmem:[%s14005_s25 + $0x100] sm:$0xff] %v5655_v59  ;;  %v5656_v62 = vmax.f32 %v5648_v6, 0.0  ;;  %11895 = vmatprep.mubr.msk.bf16.mxu0 %vm242_vm2, %v9441_v10  ;;  %v8467_v53 = vsel %vm780_vm4, %v8465_v25, %v8466_v22  ;;  %v8470_v43 = vrot.slane %v14902_v56, 2  ;;  %v15077_v8 = vld [vmem:[%s12995_s9 + $0x104] sm:$0xf] }
 0x25e   : > { %v4554_v58 = vadd.f32 %v14947_v44, %v4520_v4  ;;  %v11492_v27 = vpop.f32.mrb[22].mxu1  ;;  %5666 = vst [vmem:[%s14005_s25 + $0x118] sm:$0xff] %v5658_v32  ;;  %v9562_v54 = vrot.slane %v10697_v12, 2  ;;  %v9468_v57 = vsel %vm641_vm3, %v9458_v60, %v9467_v38  ;;  %v15087_v6 = vld [vmem:[%s12995_s9 + $0x108] sm:$0xff]   ;;  %v15096_v32 = vld [vmem:[%s12995_s9 + $0x124] sm:$0xf] }
 0x25f   : > { %v4564_v18 = vmax.f32 %v4556_v21, 0.0  ;;  %v4557_v30 = vadd.f32 %v11492_v27, %v14947_v44  ;;  %v4523_v36 = vpop.f32.mrb[23].mxu1  ;;  %5664 = vst [vmem:[%s14005_s25 + $0x108] sm:$0xff] %v5656_v62  ;;  %v11581_v29 = vpop.f32.mrb[20].mxu0  ;;  %v9567_v21 = vrot.slane %v14915_v40, 2  ;;  %v8596_v40 = vrot.slane %v15087_v6, 2 }
 0x260   : > { %v4562_v9 = vmax.f32 %v4554_v58, 0.0  ;;  %v4555_v11 = vadd.f32 %v14947_v44, %v4523_v36  ;;  %v5653_v5 = vadd.f32 %v11581_v29, %v14947_v44  ;;  %v5617_v48 = vpop.f32.mrb[21].mxu0  ;;  %v9564_v1 = vsel %vm780_vm4, %v9562_v54, %v9563_v0  ;;  %v10647_v4 = vld [vmem:[%s15345_s1 + $0xe] sm:$0x3]  ;;  %v15127_v29 = vld [vmem:[%s12995_s9 + $0x130] sm:$0xff]  }
 0x261   : > { %4572 = vst [vmem:[%s14005_s25 + $0xf0] sm:$0xff] %v4564_v18  ;;  %v4565_v19 = vmax.f32 %v4557_v30, 0.0  ;;  %11806 = vmatmul.mubr.msk.bf16.vlgmr.msra.gmra.mrb[32].mxu1 %vm242_vm2, %v8353_v55  ;;  %v5651_v52 = vadd.f32 %v14947_v44, %v5617_v48  ;;  %v11582_v47 = vpop.f32.mrb[22].mxu0  ;;  %v8562_v55 = vld [vmem:[%s12995_s9 + $0x100] sm:$0xc]  ;;  %v10703_v62 = vcombine.low %v9659_v34, %v15096_v32  ;;  %v15107_v18 = vld [vmem:[%s12995_s9 + $0x128] sm:$0xff]  }
 0x262   : > { %4570 = vst [vmem:[%s14005_s25 + $0xe0] sm:$0xff] %v4562_v9  ;;  %v4563_v46 = vmax.f32 %v4555_v11, 0.0  ;;  %11814 = vmatpush3.bf16.msra.mxu1 %v8487_v23  ;;  %11809 = vmatprep.mubr.msk.bf16.mxu1 %vm242_vm2, %v8362_v42  ;;  %v5661_v35 = vmax.f32 %v5653_v5, 0.0  ;;  %v5654_v10 = vadd.f32 %v11582_v47, %v14947_v44  ;;  %v5620_v13 = vpop.f32.mrb[23].mxu0  ;;  %v8371_v23 = vsel %vm641_vm3, %v14998_v45, %v8370_v7  ;;  %v15119_v9 = vld [vmem:[%s12995_s9 + $0x118] sm:$0xff]  }
 0x263   : > { %4573 = vst [vmem:[%s14005_s25 + $0xf8] sm:$0xff] %v4565_v19  ;;  %12591 = vmatprep.subr.msk.bf16.mxu1 %vm255_vm0, %v10637_v28  ;;  %v5659_v20 = vmax.f32 %v5651_v52, 0.0  ;;  %v5652_v33 = vadd.f32 %v14947_v44, %v5620_v13  ;;  %v8468_v45 = vrot.slane %v14896_v51, 2  ;;  %v9565_v51 = vrot.slane %v14912_v15, 2  ;;  %v10653_v12 = vld [vmem:[%s15345_s1 + $0x10] sm:$0x3] }
 0x264   : > { %4571 = vst [vmem:[%s14005_s25 + $0xe8] sm:$0xff] %v4563_v46  ;;  %5669 = vst [vmem:[%s14005_s25 + $0x130] sm:$0xff] %v5661_v35  ;;  %v5662_v37 = vmax.f32 %v5654_v10, 0.0  ;;  %11896 = vmatmul.mubr.msk.bf16.vlgmr.msra.gmra.mrb[32].mxu0 %vm242_vm2, %v9450_v41  ;;  %v10638_v56 = vcombine.low %v8562_v55, %v15077_v8  ;;  %v8472_v15 = vrot.slane %v14960_v17, 2  ;;  %v9714_v42 = vsel %vm255_vm0, %v10702_v31, 0 }
 0x265   : > { %5667 = vst [vmem:[%s14005_s25 + $0x120] sm:$0xff] %v5659_v20  ;;  %v5660_v3 = vmax.f32 %v5652_v33, 0.0  ;;  %11904 = vmatpush3.bf16.msra.mxu0 %v9584_v49  ;;  %11899 = vmatprep.mubr.msk.bf16.mxu0 %vm242_vm2, %v9459_v16  ;;  %v8469_v50 = vsel %vm780_vm4, %v8466_v22, %v8468_v45  ;;  %v8471_v59 = vsel %vm780_vm4, %v8468_v45, %v8470_v43  ;;  %v10712_v17 = vld [vmem:[%s15345_s1 + $0xe] sm:$0x3]  ;;  %v9569_v36 = vrot.slane %v14993_v14, 2  ;;  %v15134_v49 = vld [vmem:[%s12995_s9 + $0x138] sm:$0xff]  }
 0x266   : > { %5670 = vst [vmem:[%s14005_s25 + $0x138] sm:$0xff] %v5662_v37  ;;  %12600 = vmatprep.subr.msk.bf16.mxu0 %vm255_vm0, %v10702_v31  ;;  %v9566_v58 = vsel %vm780_vm4, %v9563_v0, %v9565_v51  ;;  %v8595_v27 = vrot.slane %v10638_v56, 2  ;;  %v9568_v24 = vsel %vm780_vm4, %v9565_v51, %v9567_v21  ;;  %v8473_v30 = vsel %vm780_vm4, %v8470_v43, %v8472_v15  ;;  %v12821_v22 = vld [vmem:[%s12995_s9 + $0x120] ss:$0 sps:$4 sm:$0x33]  }
 0x267   : > { %5668 = vst [vmem:[%s14005_s25 + $0x128] sm:$0xff] %v5660_v3  ;;  %v9692_v60 = vrot.slane %v10703_v62, 2  ;;  %v9693_v28 = vrot.slane %v15107_v18, 2  ;;  %v9570_v14 = vsel %vm780_vm4, %v9567_v21, %v9569_v36  ;;  %v8598_v19 = vrot.slane %v15116_v2, 2 }
 0x268   : > { %v8597_v11 = vsel %vm780_vm4, %v8595_v27, %v8596_v40  ;;  %v8600_v41 = vrot.slane %v15119_v9, 2  ;;  %v8698_v26 = vshrl.u32 %v10638_v56, 16  ;;  %v8701_v5 = vshll.u32 %v10638_v56, 16  ;;  %v12822_v45 = vld [vmem:[%s12995_s9 + $0x140] ss:$0 sps:$4 sm:$0x33]  }
 0x269   : > { %11810 = vmatmul.mubr.msk.bf16.gmra.mrb[36].mxu1 %vm242_vm2, %v8371_v23  ;;  %v8706_v48 = vshrl.u32 %v15087_v6, 16  ;;  %v8709_v46 = vshll.u32 %v15087_v6, 16  ;;  %v9694_v7 = vsel %vm780_vm4, %v9692_v60, %v9693_v28  ;;  %v9695_v61 = vrot.slane %v15127_v29, 2  ;;  %v10718_v56 = vld [vmem:[%s15345_s1 + $0x10] sm:$0x3] }
 0x26a   : > { %11815 = vmatprep.mubr.msk.bf16.mxu1 %vm242_vm2, %v8467_v53  ;;  %v8599_v52 = vsel %vm780_vm4, %v8596_v40, %v8598_v19  ;;  %v8754_v47 = vsel %vm255_vm0, %v10647_v4, 0  ;;  %v8601_v39 = vsel %vm780_vm4, %v8598_v19, %v8600_v41  ;;  %v9697_v25 = vrot.slane %v15134_v49, 2  ;;  %v15171_v27 = vld [vmem:[%s12995_s9 + $0x120] ss:$0 sps:$4 sm:$0x77]  }
 0x26b   : > { %v8700_v35 = vrot.slane %v8698_v26, 2  ;;  %v8703_v10 = vrot.slane %v8701_v5, 3  ;;  %v8708_v13 = vrot.slane %v8706_v48, 2  ;;  %v8711_v16 = vrot.slane %v8709_v46, 3 }
 0x26c   : > { %11900 = vmatmul.mubr.msk.bf16.gmra.mrb[36].mxu0 %vm242_vm2, %v9468_v57  ;;  %v9795_v20 = vshrl.u32 %v10703_v62, 16  ;;  %v9798_v33 = vshll.u32 %v10703_v62, 16  ;;  %v9803_v31 = vshrl.u32 %v15107_v18, 16  ;;  %v9806_v37 = vshll.u32 %v15107_v18, 16 }
 0x26d   : > { %11905 = vmatprep.mubr.msk.bf16.mxu0 %vm242_vm2, %v9564_v1  ;;  %v9696_v23 = vsel %vm780_vm4, %v9693_v28, %v9695_v61  ;;  %v9851_v3 = vsel %vm255_vm0, %v10712_v17, 0  ;;  %v9698_v38 = vsel %vm780_vm4, %v9695_v61, %v9697_v25  ;;  %v8602_v53 = vrot.slane %v12821_v22, 2  ;;  %v12824_v48 = vld [vmem:[%s12995_s9 + $0x140] ss:$0 sps:$4 sm:$0x77]  }
 0x26e   : > { %v8715_v54 = vshrl.u32 %v15116_v2, 16  ;;  %v8718_v0 = vshll.u32 %v15116_v2, 16  ;;  %v8704_v57 = vor.u32 %v8703_v10, %v8700_v35  ;;  %v8712_v43 = vor.u32 %v8711_v16, %v8708_v13 }
 0x26f   : > { %v8724_v1 = vshrl.u32 %v15119_v9, 16  ;;  %v8727_v55 = vshll.u32 %v15119_v9, 16  ;;  %v9805_v51 = vrot.slane %v9803_v31, 2  ;;  %v9812_v21 = vshrl.u32 %v15127_v29, 16  ;;  %v9926_v31 = vld [vmem:[%s12995_s9 + $0x120] sm:$0x8] }
 0x270   : > { %v8717_v34 = vrot.slane %v8715_v54, 2  ;;  %v8720_v15 = vrot.slane %v8718_v0, 3  ;;  %v9699_v40 = vrot.slane %v12822_v45, 2  ;;  %v9821_v36 = vshrl.u32 %v15134_v49, 16 }
 0x271   : > { %11816 = vmatmul.mubr.msk.bf16.vlgmr.msra.gmra.mrb[32].mxu1 %vm242_vm2, %v8469_v50  ;;  %v9797_v50 = vrot.slane %v9795_v20, 2  ;;  %v8729_v62 = vrot.slane %v8727_v55, 3  ;;  %v9814_v60 = vrot.slane %v9812_v21, 2  ;;  %v8733_v19 = vshrl.u32 %v15171_v27, 16 }
 0x272   : > { %11824 = vmatpush3.bf16.msra.mxu1 %v8617_v63  ;;  %11819 = vmatprep.mubr.msk.bf16.mxu1 %vm242_vm2, %v8471_v59  ;;  %v9800_v63 = vrot.slane %v9798_v33, 3  ;;  %v9808_v59 = vrot.slane %v9806_v37, 3  ;;  %v8721_v28 = vor.u32 %v8720_v15, %v8717_v34  ;;  %v9700_v26 = vsel %vm780_vm4, %v9697_v25, %v9699_v40 }
 0x273   : > { %12592 = vmatprep.subr.msk.bf16.mxu1 %vm255_vm0, %v10647_v4  ;;  %v8603_v4 = vsel %vm780_vm4, %v8600_v41, %v8602_v53  ;;  %v8736_v41 = vshll.u32 %v15171_v27, 16  ;;  %v8735_v35 = vrot.slane %v8733_v19, 2  ;;  %v9830_v13 = vshrl.u32 %v12824_v48, 16 }
 0x274   : > { %11906 = vmatmul.mubr.msk.bf16.vlgmr.msra.gmra.mrb[32].mxu0 %vm242_vm2, %v9566_v58  ;;  %v9815_v58 = vshll.u32 %v15127_v29, 16  ;;  %v9833_v16 = vshll.u32 %v12824_v48, 16  ;;  %v8835_v53 = vrot.slane %v15087_v6, 3  ;;  %v9953_v54 = vsel %vm255_vm0, %v10718_v56, 0 }
 0x275   : > { %11914 = vmatpush3.bf16.msra.mxu0 %v9714_v42  ;;  %11909 = vmatprep.mubr.msk.bf16.mxu0 %vm242_vm2, %v9568_v24  ;;  %v8713_v42 = vsel %vm1015_vm6, %v8704_v57, %v8712_v43  ;;  %v8726_v24 = vrot.slane %v8724_v1, 2  ;;  %v8738_v10 = vrot.slane %v8736_v41, 3  ;;  %v9932_v55 = vrot.slane %v15107_v18, 3 }
 0x276   : > { %12601 = vmatprep.subr.msk.bf16.mxu0 %vm255_vm0, %v10712_v17  ;;  %v9801_v17 = vor.u32 %v9800_v63, %v9797_v50  ;;  %v8837_v6 = vrot.slane %v15116_v2, 3  ;;  %v8839_v50 = vrot.slane %v15119_v9, 3  ;;  %v9934_v18 = vrot.slane %v15127_v29, 3 }
 0x277   : > { %v8730_v5 = vor.u32 %v8729_v62, %v8726_v24  ;;  %v8739_v37 = vor.u32 %v8738_v10, %v8735_v35  ;;  %v8841_v2 = vrot.slane %v15171_v27, 3  ;;  %v9938_v29 = vrot.slane %v12824_v48, 3 }
 0x278   : > { %v9935_v9 = vsel %vm1154_vm7, %v9932_v55, %v9934_v18 }
 0x279   : > { %11820 = vmatmul.mubr.msk.bf16.gmra.mrb[36].mxu1 %vm242_vm2, %v8473_v30  ;;  %v9809_v30 = vor.u32 %v9808_v59, %v9805_v51  ;;  %v8731_v25 = vsel %vm1015_vm6, %v8721_v28, %v8730_v5  ;;  %v8740_v45 = vsel %vm1015_vm6, %v8730_v5, %v8739_v37  ;;  %v8838_v51 = vsel %vm1154_vm7, %v8835_v53, %v8837_v6 }
 0x27a   : > { %11825 = vmatprep.mubr.msk.bf16.mxu1 %vm242_vm2, %v8597_v11  ;;  %v9824_v11 = vshll.u32 %v15134_v49, 16  ;;  %v8840_v59 = vsel %vm1154_vm7, %v8837_v6, %v8839_v50 }
 0x27b   : > { %v9810_v46 = vsel %vm1015_vm6, %v9801_v17, %v9809_v30 }
 0x27c   : > { %11910 = vmatmul.mubr.msk.bf16.gmra.mrb[36].mxu0 %vm242_vm2, %v9570_v14  ;;  %v9817_v14 = vrot.slane %v9815_v58, 3  ;;  %v9826_v61 = vrot.slane %v9824_v11, 3 }
 0x27d   : > { %11915 = vmatprep.mubr.msk.bf16.mxu0 %vm242_vm2, %v9694_v7  ;;  %v9823_v7 = vrot.slane %v9821_v36, 2 }
 0x27e   : > { %v9818_v22 = vor.u32 %v9817_v14, %v9814_v60 }
 0x27f   : > { %v9827_v33 = vor.u32 %v9826_v61, %v9823_v7 }
 0x281   : > { %11826 = vmatmul.mubr.msk.bf16.vlgmr.msra.gmra.mrb[32].mxu1 %vm242_vm2, %v8599_v52  ;;  %v8829_v52 = vld [vmem:[%s12995_s9 + $0x100] sm:$0x8]  ;;  %v9828_v0 = vsel %vm1015_vm6, %v9818_v22, %v9827_v33  ;;  %s12605_s9 = smul.u32 9216, %s12935_s16 }
 0x282   : > { %11834 = vmatpush3.bf16.msra.mxu1 %v8754_v47  ;;  %11829 = vmatprep.mubr.msk.bf16.mxu1 %vm242_vm2, %v8601_v39  ;;  %v8856_v47 = vsel %vm255_vm0, %v10653_v12, 0  ;;  %v8722_v39 = vsel %vm1015_vm6, %v8712_v43, %v8721_v28  ;;  %v10654_v20 = vcombine.low %v8829_v52, %v15077_v8  ;;  %v10719_v8 = vcombine.low %v9926_v31, %v15096_v32 }
 0x283   : > { %12593 = vmatprep.subr.msk.bf16.mxu1 %vm255_vm0, %v10653_v12  ;;  %v9819_v12 = vsel %vm1015_vm6, %v9809_v30, %v9818_v22  ;;  %s15294_s26 = scalar_lea.hbm %s15347_s3, %s12605_s9 }
 0x284   : > { %11916 = vmatmul.mubr.msk.bf16.vlgmr.msra.gmra.mrb[32].mxu0 %vm242_vm2, %v9696_v23  ;;  %v9832_v23 = vrot.slane %v9830_v13, 2  ;;  %v9931_v1 = vrot.slane %v10719_v8, 3 }
 0x285   : > { %11924 = vmatpush3.bf16.msra.mxu0 %v9851_v3  ;;  %11919 = vmatprep.mubr.msk.bf16.mxu0 %vm242_vm2, %v9698_v38  ;;  %v9835_v3 = vrot.slane %v9833_v16, 3  ;;  %v8834_v38 = vrot.slane %v10654_v20, 3 }
 0x286   : > { %12602 = vmatprep.subr.msk.bf16.mxu0 %vm255_vm0, %v10718_v56  ;;  %v9933_v63 = vsel %vm1154_vm7, %v9931_v1, %v9932_v55  ;;  %v9936_v56 = vrot.slane %v15134_v49, 3 }
 0x287   : > { %v9836_v57 = vor.u32 %v9835_v3, %v9832_v23  ;;  %v8836_v43 = vsel %vm1154_vm7, %v8834_v38, %v8835_v53 }
 0x288   : > { %v9937_v21 = vsel %vm1154_vm7, %v9934_v18, %v9936_v56  ;;  %v9939_v49 = vsel %vm1154_vm7, %v9936_v56, %v9938_v29 }
 0x289   : > { %11830 = vmatmul.mubr.msk.bf16.gmra.mrb[36].mxu1 %vm242_vm2, %v8603_v4  ;;  %v9837_v32 = vsel %vm1015_vm6, %v9827_v33, %v9836_v57  ;;  %v8842_v4 = vsel %vm1154_vm7, %v8839_v50, %v8841_v2 }
 0x28a   : > { %11835 = vmatprep.mubr.msk.bf16.mxu1 %vm242_vm2, %v8713_v42 }
 0x28c   : > { %11920 = vmatmul.mubr.msk.bf16.gmra.mrb[36].mxu0 %vm242_vm2, %v9700_v26 }
 0x28d   : > { %11925 = vmatprep.mubr.msk.bf16.mxu0 %vm242_vm2, %v9810_v46 }
 0x291   : > { %11836 = vmatmul.mubr.msk.bf16.vlgmr.msra.gmra.mrb[32].mxu1 %vm242_vm2, %v8722_v39 }
 0x292   : > { %11844 = vmatpush3.bf16.msra.mxu1 %v8856_v47  ;;  %11839 = vmatprep.mubr.msk.bf16.mxu1 %vm242_vm2, %v8731_v25 }
 0x294   : > { %11926 = vmatmul.mubr.msk.bf16.vlgmr.msra.gmra.mrb[32].mxu0 %vm242_vm2, %v9819_v12 }
 0x295   : > { %11934 = vmatpush3.bf16.msra.mxu0 %v9953_v54  ;;  %11929 = vmatprep.mubr.msk.bf16.mxu0 %vm242_vm2, %v9828_v0 }
 0x299   : > { %11840 = vmatmul.mubr.msk.bf16.gmra.mrb[36].mxu1 %vm242_vm2, %v8740_v45 }
 0x29a   : > { %11845 = vmatprep.mubr.msk.bf16.mxu1 %vm242_vm2, %v8836_v43 }
 0x29c   : > { %11930 = vmatmul.mubr.msk.bf16.gmra.mrb[36].mxu0 %vm242_vm2, %v9837_v32 }
 0x29d   : > { %11935 = vmatprep.mubr.msk.bf16.mxu0 %vm242_vm2, %v9933_v63 }
 0x2a1   : > { %11846 = vmatmul.mubr.msk.bf16.vlgmr.msra.gmra.mrb[32].mxu1 %vm242_vm2, %v8838_v51 }
 0x2a2   : > { %11849 = vmatprep.mubr.msk.bf16.mxu1 %vm242_vm2, %v8840_v59 }
 0x2a4   : > { %11936 = vmatmul.mubr.msk.bf16.vlgmr.msra.gmra.mrb[32].mxu0 %vm242_vm2, %v9935_v9 }
 0x2a5   : > { %11939 = vmatprep.mubr.msk.bf16.mxu0 %vm242_vm2, %v9937_v21 }
 0x2a9   : > { %11850 = vmatmul.mubr.msk.bf16.gmra.mrb[36].mxu1 %vm242_vm2, %v8842_v4 }
 0x2ac   : > { %11940 = vmatmul.mubr.msk.bf16.gmra.mrb[36].mxu0 %vm242_vm2, %v9939_v49 }
 0x2e4   : > { %v11667_v34 = vpop.f32.mrb[24].mxu1 }
 0x2e5   : > { %v6746_v15 = vadd.f32 %v11667_v34, %v14947_v44  ;;  %v6698_v58 = vpop.f32.mrb[25].mxu1 }
 0x2e6   : > { %v6744_v27 = vadd.f32 %v14947_v44, %v6698_v58  ;;  %v11668_v40 = vpop.f32.mrb[26].mxu1 }
 0x2e7   : > { %v6754_v42 = vmax.f32 %v6746_v15, 0.0  ;;  %v6747_v24 = vadd.f32 %v11668_v40, %v14947_v44  ;;  %v6701_v62 = vpop.f32.mrb[27].mxu1  ;;  %v11757_v36 = vpop.f32.mrb[24].mxu0 }
 0x2e8   : > { %v6752_v17 = vmax.f32 %v6744_v27, 0.0  ;;  %v6745_v30 = vadd.f32 %v14947_v44, %v6701_v62  ;;  %v7843_v60 = vadd.f32 %v11757_v36, %v14947_v44  ;;  %v7795_v28 = vpop.f32.mrb[25].mxu0 }
 0x2e9   : > { %6762 = vst [vmem:[%s14005_s25 + $0x150] sm:$0xff] %v6754_v42  ;;  %v6755_v11 = vmax.f32 %v6747_v24, 0.0  ;;  %v7841_v19 = vadd.f32 %v14947_v44, %v7795_v28  ;;  %v11758_v41 = vpop.f32.mrb[26].mxu0 }
 0x2ea   : > { %6760 = vst [vmem:[%s14005_s25 + $0x140] sm:$0xff] %v6752_v17  ;;  %v6753_v14 = vmax.f32 %v6745_v30, 0.0  ;;  %v7851_v26 = vmax.f32 %v7843_v60, 0.0  ;;  %v7844_v5 = vadd.f32 %v11758_v41, %v14947_v44  ;;  %v7798_v48 = vpop.f32.mrb[27].mxu0 }
 0x2eb   : > { %6763 = vst [vmem:[%s14005_s25 + $0x158] sm:$0xff] %v6755_v11  ;;  %v7849_v7 = vmax.f32 %v7841_v19, 0.0  ;;  %v7842_v61 = vadd.f32 %v14947_v44, %v7798_v48 }
 0x2ec   : > { %6761 = vst [vmem:[%s14005_s25 + $0x148] sm:$0xff] %v6753_v14  ;;  %v11671_v46 = vpop.f32.mrb[28].mxu1  ;;  %7859 = vst [vmem:[%s14005_s25 + $0x190] sm:$0xff] %v7851_v26  ;;  %v7852_v39 = vmax.f32 %v7844_v5, 0.0 }
 0x2ed   : > { %v6750_v52 = vadd.f32 %v11671_v46, %v14947_v44  ;;  %v6714_v47 = vpop.f32.mrb[29].mxu1  ;;  %7857 = vst [vmem:[%s14005_s25 + $0x180] sm:$0xff] %v7849_v7  ;;  %v7850_v10 = vmax.f32 %v7842_v61, 0.0 }
 0x2ee   : > { %v6748_v22 = vadd.f32 %v14947_v44, %v6714_v47  ;;  %v11672_v35 = vpop.f32.mrb[30].mxu1  ;;  %7860 = vst [vmem:[%s14005_s25 + $0x198] sm:$0xff] %v7852_v39 }
 0x2ef   : > { %v6758_v25 = vmax.f32 %v6750_v52, 0.0  ;;  %v6751_v13 = vadd.f32 %v11672_v35, %v14947_v44  ;;  %v6717_v16 = vpop.f32.mrb[31].mxu1  ;;  %7858 = vst [vmem:[%s14005_s25 + $0x188] sm:$0xff] %v7850_v10  ;;  %v11761_v31 = vpop.f32.mrb[28].mxu0 }
 0x2f0   : > { %v6756_v20 = vmax.f32 %v6748_v22, 0.0  ;;  %v6749_v33 = vadd.f32 %v14947_v44, %v6717_v16  ;;  %v7847_v37 = vadd.f32 %v11761_v31, %v14947_v44  ;;  %v7811_v23 = vpop.f32.mrb[29].mxu0 }
 0x2f1   : > { %6766 = vst [vmem:[%s14005_s25 + $0x170] sm:$0xff] %v6758_v25  ;;  %v6759_v12 = vmax.f32 %v6751_v13, 0.0  ;;  %v7845_v38 = vadd.f32 %v14947_v44, %v7811_v23  ;;  %v11762_v53 = vpop.f32.mrb[30].mxu0 }
 0x2f2   : > { %6764 = vst [vmem:[%s14005_s25 + $0x160] sm:$0xff] %v6756_v20  ;;  %v6757_v3 = vmax.f32 %v6749_v33, 0.0  ;;  %v7855_v54 = vmax.f32 %v7847_v37, 0.0  ;;  %v7848_v0 = vadd.f32 %v11762_v53, %v14947_v44  ;;  %v7814_v8 = vpop.f32.mrb[31].mxu0 }
 0x2f3   : > { %6767 = vst [vmem:[%s14005_s25 + $0x178] sm:$0xff] %v6759_v12  ;;  %v7853_v45 = vmax.f32 %v7845_v38, 0.0  ;;  %v7846_v57 = vadd.f32 %v14947_v44, %v7814_v8 }
 0x2f4   : > { %6765 = vst [vmem:[%s14005_s25 + $0x168] sm:$0xff] %v6757_v3  ;;  %7863 = vst [vmem:[%s14005_s25 + $0x1b0] sm:$0xff] %v7855_v54  ;;  %v7856_v43 = vmax.f32 %v7848_v0, 0.0 }
 0x2f5   : > { %7861 = vst [vmem:[%s14005_s25 + $0x1a0] sm:$0xff] %v7853_v45  ;;  %v7854_v1 = vmax.f32 %v7846_v57, 0.0 }
 0x2f6   : > { %7864 = vst [vmem:[%s14005_s25 + $0x1b8] sm:$0xff] %v7856_v43 }
 0x2f7   : > { %7862 = vst [vmem:[%s14005_s25 + $0x1a8] sm:$0xff] %v7854_v1 }
 0x374   : > { %v11847_v55 = vpop.f32.mrb[32].mxu1 }
 0x375   : > { %v8940_v6 = vadd.f32 %v11847_v55, %v14947_v44  ;;  %v8892_v32 = vpop.f32.mrb[33].mxu1 }
 0x376   : > { %v8938_v50 = vadd.f32 %v14947_v44, %v8892_v32  ;;  %v11848_v63 = vpop.f32.mrb[34].mxu1 }
 0x377   : > { %v8948_v51 = vmax.f32 %v8940_v6, 0.0  ;;  %v8941_v18 = vadd.f32 %v11848_v63, %v14947_v44  ;;  %v8895_v59 = vpop.f32.mrb[35].mxu1  ;;  %v11937_v9 = vpop.f32.mrb[32].mxu0 }
 0x378   : > { %v8946_v56 = vmax.f32 %v8938_v50, 0.0  ;;  %v8939_v2 = vadd.f32 %v14947_v44, %v8895_v59  ;;  %v10037_v4 = vadd.f32 %v11937_v9, %v14947_v44  ;;  %v9989_v29 = vpop.f32.mrb[33].mxu0 }
 0x379   : > { %8956 = vst [vmem:[%s14005_s25 + $0x1d0] sm:$0xff] %v8948_v51  ;;  %v8949_v21 = vmax.f32 %v8941_v18, 0.0  ;;  %v10035_v34 = vadd.f32 %v14947_v44, %v9989_v29  ;;  %v11938_v15 = vpop.f32.mrb[34].mxu0 }
 0x37a   : > { %8954 = vst [vmem:[%s14005_s25 + $0x1c0] sm:$0xff] %v8946_v56  ;;  %v8947_v49 = vmax.f32 %v8939_v2, 0.0  ;;  %v10045_v58 = vmax.f32 %v10037_v4, 0.0  ;;  %v10038_v27 = vadd.f32 %v11938_v15, %v14947_v44  ;;  %v9992_v40 = vpop.f32.mrb[35].mxu0 }
 0x37b   : > { %8957 = vst [vmem:[%s14005_s25 + $0x1d8] sm:$0xff] %v8949_v21  ;;  %v10043_v24 = vmax.f32 %v10035_v34, 0.0  ;;  %v10036_v62 = vadd.f32 %v14947_v44, %v9992_v40 }
 0x37c   : > { %8955 = vst [vmem:[%s14005_s25 + $0x1c8] sm:$0xff] %v8947_v49  ;;  %v11851_v42 = vpop.f32.mrb[36].mxu1  ;;  %10053 = vst [vmem:[%s14005_s25 + $0x210] sm:$0xff] %v10045_v58  ;;  %v10046_v36 = vmax.f32 %v10038_v27, 0.0 }
 0x37d   : > { %v8944_v17 = vadd.f32 %v11851_v42, %v14947_v44  ;;  %v8908_v30 = vpop.f32.mrb[37].mxu1  ;;  %10051 = vst [vmem:[%s14005_s25 + $0x200] sm:$0xff] %v10043_v24  ;;  %v10044_v28 = vmax.f32 %v10036_v62, 0.0 }
 0x37e   : > { %v8942_v11 = vadd.f32 %v14947_v44, %v8908_v30  ;;  %v11852_v60 = vpop.f32.mrb[38].mxu1  ;;  %10054 = vst [vmem:[%s14005_s25 + $0x218] sm:$0xff] %v10046_v36 }
 0x37f   : > { %v8952_v14 = vmax.f32 %v8944_v17, 0.0  ;;  %v8945_v19 = vadd.f32 %v11852_v60, %v14947_v44  ;;  %v8911_v41 = vpop.f32.mrb[39].mxu1  ;;  %10052 = vst [vmem:[%s14005_s25 + $0x208] sm:$0xff] %v10044_v28  ;;  %v11941_v48 = vpop.f32.mrb[36].mxu0 }
 0x380   : > { %v8950_v26 = vmax.f32 %v8942_v11, 0.0  ;;  %v8943_v5 = vadd.f32 %v14947_v44, %v8911_v41  ;;  %v10041_v7 = vadd.f32 %v11941_v48, %v14947_v44  ;;  %v10005_v61 = vpop.f32.mrb[37].mxu0 }
 0x381   : > { %8960 = vst [vmem:[%s14005_s25 + $0x1f0] sm:$0xff] %v8952_v14  ;;  %v8953_v46 = vmax.f32 %v8945_v19, 0.0  ;;  %v10039_v47 = vadd.f32 %v14947_v44, %v10005_v61  ;;  %v11942_v39 = vpop.f32.mrb[38].mxu0 }
 0x382   : > { %8958 = vst [vmem:[%s14005_s25 + $0x1e0] sm:$0xff] %v8950_v26  ;;  %v8951_v52 = vmax.f32 %v8943_v5, 0.0  ;;  %v10049_v22 = vmax.f32 %v10041_v7, 0.0  ;;  %v10042_v35 = vadd.f32 %v11942_v39, %v14947_v44  ;;  %v10008_v10 = vpop.f32.mrb[39].mxu0 }
 0x383   : > { %8961 = vst [vmem:[%s14005_s25 + $0x1f8] sm:$0xff] %v8953_v46  ;;  %v10047_v25 = vmax.f32 %v10039_v47, 0.0  ;;  %v10040_v13 = vadd.f32 %v14947_v44, %v10008_v10 }
 0x384   : > { %8959 = vst [vmem:[%s14005_s25 + $0x1e8] sm:$0xff] %v8951_v52  ;;  %10057 = vst [vmem:[%s14005_s25 + $0x230] sm:$0xff] %v10049_v22  ;;  %v10050_v16 = vmax.f32 %v10042_v35, 0.0 }
 0x385   : > { %10055 = vst [vmem:[%s14005_s25 + $0x220] sm:$0xff] %v10047_v25  ;;  %v10048_v20 = vmax.f32 %v10040_v13, 0.0 }
 0x386   : > { %10058 = vst [vmem:[%s14005_s25 + $0x238] sm:$0xff] %v10050_v16 }
 0x387   : > { %10056 = vst [vmem:[%s14005_s25 + $0x228] sm:$0xff] %v10048_v20 }
 0x388   : > { %12840 = shalt.err (!%p12837_p3)
}
 0x389   : > { %s12841_s17 = scalar_lea.hbm %s15294_s26, 9216  ;;  %s12845_s6 = scalar_lea.hbm %s15347_s3, 18432 }
 0x38a   : > { %p12842_p4 = scmp.ne.s32.totalorder %s15294_s26, %s12841_s17  ;;  %p12846_p9 = scmp.lt.u32.totalorder %s15294_s26, %s15347_s3 }
 0x38b   : > { %p12847_p10 = scmp.lt.u32.totalorder %s12845_s6, %s12841_s17  ;;  %p12849_p12 = scmp.lt.u32.totalorder %s12841_s17, %s15294_s26 }
 0x38c   : > { %p12843_p7 = pnand %p12842_p4, %p12952_p5 }
 0x38d   : > { %p12848_p11 = por %p12847_p10, %p12846_p9 }
 0x38e   : > { %p12844_p8 = pneg %p12843_p7 }
 0x38f   : > { %p12850_p13 = por %p12849_p12, %p12848_p11 }
 0x391   : > { %p12851_p0 = pnand %p12850_p13, %p12844_p8 }
 0x393   : > { %12854 = shalt.err (!%p12851_p0)
}
 0x394   : > { %s12892_s10 = smov 128   ;;  %s12893_s11 = smov 8  }
 0x395   : > { %12606 = dma.vmem_to_hbm [thread:$0]  (%p12952_p5), %s15296_s20, 9216, %s15294_s26, %s15303_s27, %s12892_s10, %s12892_s10, %s12893_s11  }
 0x396 PF: > { %p12612_p1 = scmp.ge.s32.totalorder %s12889_s15, 2  ;;  %s10088_s19 = sand.u32 1, %s12877_s12  }
 0x397   : > { %s10089_s9 = scalar_lea.sflag [#allocation3], %s10088_s19 }
 0x398   : > { %p12609_p2 = pnand %p12612_p1, %p12956_p6 }
 0x39a   : > { %12872 = dma.done.wait (!%p12609_p2), %s10089_s9, 9216  }
 0x39b   : > { %12874 = vsyncadd (!%p12609_p2), %s10089_s9, 4294958080  ;;  %p13_p3 = scmp.ge.s32.totalorder %s12939_s18, 4   ;;  %s15350_s12 = smov %s12881_s13 }
 0x39c   : > { %s15351_s13 = smov %s12885_s14  ;;  %s15352_s14 = smov %s12950_s21 }
 0x39d   : > { %s15353_s15 = smov %s12939_s18  ;;  %15 = sbr.rel (!%p13_p3) target bundleno = 3 (0x3), region = 75 }
 0x3a4   :  { %10094 = vsyncpa [#allocation3], 1 }
 0x3a5   :  { %10096 = vsyncpa [#allocation3 + $0x1], 1 }

</bundles_post_ra>
